<compile_context>
chip_gen: v7x
topology: tpu7x:2x2x1
jax: 0.10.0
libtpu: 0.0.40
codegen_flags: <defaults>
</compile_context>

<pallas_src>
import jax
import jax.numpy as jnp
from jax import lax
from jax.experimental import pallas as pl
from jax.experimental.pallas import tpu as pltpu


# ----------------------------------------------------------------------------
# Fused kernel (one batch tile per grid step, weights resident across steps)
# ----------------------------------------------------------------------------
def _vae_fused_kernel(label_ref, feat_ref, fe_mu_ref,
                      fx1_w, fx1_b, fx2_w, fx2_b, fx3_w, fx3_b, fx4_w, fx4_b,
                      fxmv_w, fxmv_b,
                      fd1a_w, fd1b_w, fd1_b, fd2_w, fd2_b,
                      lkT_w,
                      ad1_w, ad1_b, ad2_w, ad2_b,
                      slab_ref):
    f32, bf16 = jnp.float32, jnp.bfloat16
    TB = feat_ref.shape[0]
    latent = fxmv_w.shape[1] // 2
    emb = fd2_w.shape[1]
    nl = lkT_w.shape[1]
    numl = ad2_w.shape[1]

    def lin(x, w_ref, b_ref):
        # bf16 operands on the MXU, f32 accumulation, f32 bias add (VPU).
        xb = x if x.dtype == bf16 else x.astype(bf16)
        return jnp.dot(xb, w_ref[...], preferred_element_type=f32) + b_ref[...]

    def relu(x):
        return jnp.maximum(x, 0.0)

    lab = label_ref[...]                      # f32 [TB, nl]
    featb = feat_ref[...].astype(bf16)        # bf16 [TB, F] (cast once)

    # ---------------- adaptive head: Linear->ReLU->Linear->Softmax(dim=1) ----
    ha = relu(lin(featb, ad1_w, ad1_b))                              # [TB, 128]
    logits = lin(ha, ad2_w, ad2_b)                                   # [TB, numl]
    m = jnp.max(logits, axis=1, keepdims=True)
    e = jnp.exp(logits - m)
    w1 = e * pl.reciprocal(jnp.sum(e, axis=1, keepdims=True), approx=True)

    # ---------------- label mixing (fe_mu precomputed outside the kernel) ----
    # z_lab = (label @ fe_mu) / label.sum(1, keepdim=True)
    z_num = jnp.dot(lab.astype(bf16), fe_mu_ref[...],
                    preferred_element_type=f32)                      # [TB, latent]
    z_lab = z_num * pl.reciprocal(jnp.sum(lab, axis=1, keepdims=True), approx=True)

    # ---------------- feature encoder ----------------------------------------
    hx = relu(lin(featb, fx1_w, fx1_b))
    hx = relu(lin(hx, fx2_w, fx2_b))
    hx = relu(lin(hx, fx3_w, fx3_b))
    hx = relu(lin(hx, fx4_w, fx4_b))                                 # [TB, 256]
    fx_muvar = lin(hx, fxmv_w, fxmv_b)                               # [TB, 2*latent]
    fx_mu = fx_muvar[:, :latent]                                     # eval: z = z2 = mu

    # ---------------- shared decoder (fd1 split, feat@W_a computed once) -----
    xa = jnp.dot(featb, fd1a_w[...], preferred_element_type=f32)     # [TB, 512] shared
    h_lab = relu(xa + jnp.dot(z_lab.astype(bf16), fd1b_w[...],
                              preferred_element_type=f32) + fd1_b[...])
    h_ft = relu(xa + jnp.dot(fx_mu.astype(bf16), fd1b_w[...],
                             preferred_element_type=f32) + fd1_b[...])
    hd = jnp.concatenate([h_lab, h_ft], axis=0)                      # [2*TB, 512]
    d = jnp.dot(hd.astype(bf16), fd2_w[...],
                preferred_element_type=f32) + fd2_b[...]             # [2*TB, emb]
    d = jnp.where(d > 0, d, 0.01 * d)                                # LeakyReLU(0.01)
    ss = jnp.sum(d * d, axis=1, keepdims=True)
    d = d * lax.rsqrt(jnp.maximum(ss, 1e-24))                        # F.normalize eps=1e-12

    # output projection against embs = label_lookup.weight (pre-transposed [emb, nl])
    proj = jnp.dot(d.astype(bf16), lkT_w[...],
                   preferred_element_type=f32)                       # [2*TB, nl]

    # ---------------- lane-dense packed batch output -------------------------
    pieces = [fx_muvar,              # [TB, 2*latent]  (fx_mu | fx_logvar)
              d[:TB], d[TB:],        # label_emb, feat_emb
              proj[:TB], proj[TB:],  # label_out, feat_out
              w1]                    # weight_loss
    natural = 2 * latent + 2 * emb + 2 * nl + numl
    pad_w = slab_ref.shape[1] - natural
    if pad_w > 0:
        pieces.append(jnp.zeros((TB, pad_w), f32))
    slab_ref[...] = jnp.concatenate(pieces, axis=1).astype(slab_ref.dtype)


def _weight_spec(shape):
    # Whole-array block, constant across the batch grid axis (stays VMEM-resident).
    nd = len(shape)
    return pl.BlockSpec(shape, lambda i: (0,) * nd)


def _round_up(x, m):
    return ((x + m - 1) // m) * m


# ----------------------------------------------------------------------------
# Parameter construction, precompute & packing
# ----------------------------------------------------------------------------
def init_linear(key, fan_in, fan_out):
    kw, kb = jax.random.split(key)
    bound = 1.0 / (fan_in ** 0.5)
    w = jax.random.uniform(kw, (fan_in, fan_out), jnp.float32, -bound, bound)
    b = jax.random.uniform(kb, (fan_out,), jnp.float32, -bound, bound)
    return w, b


def make_params(key, feature_dim, latent_dim, emb_size, label_dim, num_labels):
    names_dims = {
        "fx1": (feature_dim, 256), "fx2": (256, 512),
        "fx3": (512, 512), "fx4": (512, 256),
        "fx_mu": (256, latent_dim), "fx_logvar": (256, latent_dim),
        "label_lookup": (label_dim, emb_size),
        "fe1": (emb_size, 512), "fe2": (512, 256),
        "fe_mu": (256, latent_dim), "fe_logvar": (256, latent_dim),
        "fd1": (feature_dim + latent_dim, 512), "fd2": (512, emb_size),
        "ad1": (256, 128), "ad2": (128, num_labels),
    }
    params = {}
    keys = jax.random.split(key, len(names_dims))
    for k, (name, (fi, fo)) in zip(keys, names_dims.items()):
        params[name] = init_linear(k, fi, fo)
    return params


def pack_params(p, feature_dim):
    """bf16 weights (f32 in-kernel accumulation), fused mu/logvar, split fd1,
    pre-transposed projection weight, and the PRECOMPUTED label-encoder chain."""
    bf = lambda w: w.astype(jnp.bfloat16)
    rb = lambda b: b.reshape(1, -1).astype(jnp.float32)
    fd1_w, fd1_b = p["fd1"]

    # ---- input-independent label-encoder chain, computed once (f32) ----
    # label_lookup(eye(nl)) = eye @ W^T + b  ==  stored_lk_w + b
    lk_w, lk_b = p["label_lookup"]                      # [nl, emb], [emb]
    h = jax.nn.relu(lk_w + lk_b[None, :])               # [nl, emb]
    h = jax.nn.relu(h @ p["fe1"][0] + p["fe1"][1])      # [nl, 512]
    h = jax.nn.relu(h @ p["fe2"][0] + p["fe2"][1])      # [nl, 256]
    fe_mu = h @ p["fe_mu"][0] + p["fe_mu"][1]           # [nl, latent]
    fe_logvar = h @ p["fe_logvar"][0] + p["fe_logvar"][1]

    return {
        "fx1_w": bf(p["fx1"][0]), "fx1_b": rb(p["fx1"][1]),
        "fx2_w": bf(p["fx2"][0]), "fx2_b": rb(p["fx2"][1]),
        "fx3_w": bf(p["fx3"][0]), "fx3_b": rb(p["fx3"][1]),
        "fx4_w": bf(p["fx4"][0]), "fx4_b": rb(p["fx4"][1]),
        "fx_muvar_w": bf(jnp.concatenate([p["fx_mu"][0], p["fx_logvar"][0]], axis=1)),
        "fx_muvar_b": rb(jnp.concatenate([p["fx_mu"][1], p["fx_logvar"][1]], axis=0)),
        "fd1a_w": bf(fd1_w[:feature_dim]), "fd1b_w": bf(fd1_w[feature_dim:]),
        "fd1_b": rb(fd1_b),
        "fd2_w": bf(p["fd2"][0]), "fd2_b": rb(p["fd2"][1]),
        "lkT_w": bf(lk_w.T),                 # embs = label_lookup.weight, [emb, nl]
        "ad1_w": bf(p["ad1"][0]), "ad1_b": rb(p["ad1"][1]),
        "ad2_w": bf(p["ad2"][0]), "ad2_b": rb(p["ad2"][1]),
        # precomputed label-encoder outputs
        "fe_mu_f32": fe_mu, "fe_logvar_f32": fe_logvar,
        "fe_mu_bf16": bf(fe_mu),
        # embs = PyTorch label_lookup.weight (our storage is its transpose)
        "embs_f32": lk_w.T,
    }


_ARG_ORDER = (
    "fx1_w", "fx1_b", "fx2_w", "fx2_b", "fx3_w", "fx3_b", "fx4_w", "fx4_b",
    "fx_muvar_w", "fx_muvar_b",
    "fd1a_w", "fd1b_w", "fd1_b", "fd2_w", "fd2_b",
    "lkT_w",
    "ad1_w", "ad1_b", "ad2_w", "ad2_b",
)


# ----------------------------------------------------------------------------
# VAE forward (eval mode) — single fused pallas_call, batch-tiled grid
# ----------------------------------------------------------------------------
def vae_forward(pk, label, feature, *, batch_tile=128):
    B, F = feature.shape
    nl = label.shape[1]
    latent = pk["fx_muvar_w"].shape[1] // 2
    emb = pk["fd2_w"].shape[1]
    numl = pk["ad2_w"].shape[1]

    # Pad batch to a multiple of 16 (bf16 MXU sublane tile) and pick a batch tile
    # that divides the padded batch.  Weights are DMA'd once and stay VMEM-resident
    # across batch tiles (constant index_map), only the batch tile is re-DMA'd.
    Bp = _round_up(B, 16)
    TB = _round_up(min(batch_tile, Bp), 16)
    Bp = _round_up(Bp, TB)
    if Bp != B:
        feature_p = jnp.zeros((Bp, F), feature.dtype).at[:B].set(feature)
        label_p = jnp.zeros((Bp, nl), label.dtype).at[:B].set(label)
    else:
        feature_p, label_p = feature, label

    natural = 2 * latent + 2 * emb + 2 * nl + numl
    slab_w = _round_up(natural, 128)                 # lane-dense (multiple of 128)

    args = [label_p, feature_p, pk["fe_mu_bf16"]] + [pk[k] for k in _ARG_ORDER]
    in_specs = ([pl.BlockSpec((TB, nl), lambda i: (i, 0)),
                 pl.BlockSpec((TB, F), lambda i: (i, 0))]
                + [_weight_spec(a.shape) for a in args[2:]])
    out_shape = jax.ShapeDtypeStruct((Bp, slab_w), jnp.float32)
    out_spec = pl.BlockSpec((TB, slab_w), lambda i: (i, 0))

    slab = pl.pallas_call(
        _vae_fused_kernel,
        out_shape=out_shape,
        grid=(Bp // TB,),
        in_specs=in_specs,
        out_specs=out_spec,
        compiler_params=pltpu.CompilerParams(
            dimension_semantics=("parallel",),       # v7x: shard batch tiles over 2 TCs
        ),
    )(*args)

    # unpack the lane-dense slab, drop padded rows
    slab = slab[:B]
    fx_mu = slab[:, :latent]
    fx_logvar = slab[:, latent:2 * latent]
    o = 2 * latent
    label_emb = slab[:, o:o + emb]; o += emb
    feat_emb = slab[:, o:o + emb]; o += emb
    label_out = slab[:, o:o + nl]; o += nl
    feat_out = slab[:, o:o + nl]; o += nl
    weight_loss = slab[:, o:o + numl]

    return {
        "fe_mu": pk["fe_mu_f32"], "fe_logvar": pk["fe_logvar_f32"],
        "label_emb": label_emb,
        "fx_mu": fx_mu, "fx_logvar": fx_logvar,
        "feat_emb": feat_emb, "feat_emb2": feat_emb,      # eval: z2 == z -> alias
        "embs": pk["embs_f32"], "label_out": label_out,
        "feat_out": feat_out, "feat_out2": feat_out,      # alias
        "feat": feature, "weight_loss": weight_loss,
    }


# ----------------------------------------------------------------------------
if __name__ == "__main__":
    # args: feature_dim=256 (forced by adaptive's Linear(256,...)), latent_dim=32,
    #       emb_size=64, label_dim=16, num_labels=label_dim
    B, feature_dim, latent_dim, emb_size, label_dim = 4, 256, 32, 64, 16
    num_labels = label_dim

    root = jax.random.PRNGKey(0)
    k_params, k_feat, k_label = jax.random.split(root, 3)

    params = make_params(k_params, feature_dim, latent_dim, emb_size,
                         label_dim, num_labels)
    packed = pack_params(params, feature_dim)

    feature = jax.random.normal(k_feat, (B, feature_dim), jnp.float32)
    label = (jax.random.uniform(k_label, (B, label_dim)) > 0.5).astype(jnp.float32)
    label = label.at[:, 0].set(1.0)  # guarantee non-zero row sums (division in z)

    out = jax.jit(vae_forward)(packed, label, feature)
    jax.block_until_ready(out)

    # light sanity checks on shapes / finiteness of the real (non-padded) rows
    assert out["label_out"].shape == (B, label_dim)
    assert out["feat_out"].shape == (B, label_dim)
    assert out["label_emb"].shape == (B, emb_size)
    assert out["feat_emb"].shape == (B, emb_size)
    assert out["fx_mu"].shape == (B, latent_dim)
    assert out["fe_mu"].shape == (label_dim, latent_dim)
    assert out["weight_loss"].shape == (B, num_labels)
    assert out["embs"].shape == (emb_size, label_dim)
    assert bool(jnp.isfinite(out["label_out"]).all())
    assert bool(jnp.isfinite(out["feat_out"]).all())

    print("KERNEL_OK")
</pallas_src>

<mosaic_0001>
module attributes {stable_mosaic.version = 11 : i64} {
  func.func @_vae_fused_kernel(%arg0: i32, %arg1: memref<16x16xf32, #tpu.memory_space<vmem>>, %arg2: memref<16x256xf32, #tpu.memory_space<vmem>>, %arg3: memref<16x32xbf16, #tpu.memory_space<vmem>>, %arg4: memref<256x256xbf16, #tpu.memory_space<vmem>>, %arg5: memref<1x256xf32, #tpu.memory_space<vmem>>, %arg6: memref<256x512xbf16, #tpu.memory_space<vmem>>, %arg7: memref<1x512xf32, #tpu.memory_space<vmem>>, %arg8: memref<512x512xbf16, #tpu.memory_space<vmem>>, %arg9: memref<1x512xf32, #tpu.memory_space<vmem>>, %arg10: memref<512x256xbf16, #tpu.memory_space<vmem>>, %arg11: memref<1x256xf32, #tpu.memory_space<vmem>>, %arg12: memref<256x64xbf16, #tpu.memory_space<vmem>>, %arg13: memref<1x64xf32, #tpu.memory_space<vmem>>, %arg14: memref<256x512xbf16, #tpu.memory_space<vmem>>, %arg15: memref<32x512xbf16, #tpu.memory_space<vmem>>, %arg16: memref<1x512xf32, #tpu.memory_space<vmem>>, %arg17: memref<512x64xbf16, #tpu.memory_space<vmem>>, %arg18: memref<1x64xf32, #tpu.memory_space<vmem>>, %arg19: memref<64x16xbf16, #tpu.memory_space<vmem>>, %arg20: memref<256x128xbf16, #tpu.memory_space<vmem>>, %arg21: memref<1x128xf32, #tpu.memory_space<vmem>>, %arg22: memref<128x16xbf16, #tpu.memory_space<vmem>>, %arg23: memref<1x16xf32, #tpu.memory_space<vmem>>, %arg24: memref<16x256xf32, #tpu.memory_space<vmem>>) attributes {dimension_semantics = [#tpu.dimension_semantics<parallel>], iteration_bounds = array<i64: 1>, scalar_prefetch = 0 : i64, scratch_operands = 0 : i64, tpu.core_type = #tpu.core_type<tc>, window_params = [{transform_indices = @transform_0, window_bounds = array<i64: 16, 16>}, {transform_indices = @transform_1, window_bounds = array<i64: 16, 256>}, {pipeline_mode = #tpu.pipeline_mode<synchronous>, transform_indices = @transform_2, window_bounds = array<i64: 16, 32>}, {pipeline_mode = #tpu.pipeline_mode<synchronous>, transform_indices = @transform_3, window_bounds = array<i64: 256, 256>}, {pipeline_mode = #tpu.pipeline_mode<synchronous>, transform_indices = @transform_4, window_bounds = array<i64: 1, 256>}, {pipeline_mode = #tpu.pipeline_mode<synchronous>, transform_indices = @transform_5, window_bounds = array<i64: 256, 512>}, {pipeline_mode = #tpu.pipeline_mode<synchronous>, transform_indices = @transform_6, window_bounds = array<i64: 1, 512>}, {pipeline_mode = #tpu.pipeline_mode<synchronous>, transform_indices = @transform_7, window_bounds = array<i64: 512, 512>}, {pipeline_mode = #tpu.pipeline_mode<synchronous>, transform_indices = @transform_8, window_bounds = array<i64: 1, 512>}, {pipeline_mode = #tpu.pipeline_mode<synchronous>, transform_indices = @transform_9, window_bounds = array<i64: 512, 256>}, {pipeline_mode = #tpu.pipeline_mode<synchronous>, transform_indices = @transform_10, window_bounds = array<i64: 1, 256>}, {pipeline_mode = #tpu.pipeline_mode<synchronous>, transform_indices = @transform_11, window_bounds = array<i64: 256, 64>}, {pipeline_mode = #tpu.pipeline_mode<synchronous>, transform_indices = @transform_12, window_bounds = array<i64: 1, 64>}, {pipeline_mode = #tpu.pipeline_mode<synchronous>, transform_indices = @transform_13, window_bounds = array<i64: 256, 512>}, {pipeline_mode = #tpu.pipeline_mode<synchronous>, transform_indices = @transform_14, window_bounds = array<i64: 32, 512>}, {pipeline_mode = #tpu.pipeline_mode<synchronous>, transform_indices = @transform_15, window_bounds = array<i64: 1, 512>}, {pipeline_mode = #tpu.pipeline_mode<synchronous>, transform_indices = @transform_16, window_bounds = array<i64: 512, 64>}, {pipeline_mode = #tpu.pipeline_mode<synchronous>, transform_indices = @transform_17, window_bounds = array<i64: 1, 64>}, {pipeline_mode = #tpu.pipeline_mode<synchronous>, transform_indices = @transform_18, window_bounds = array<i64: 64, 16>}, {pipeline_mode = #tpu.pipeline_mode<synchronous>, transform_indices = @transform_19, window_bounds = array<i64: 256, 128>}, {pipeline_mode = #tpu.pipeline_mode<synchronous>, transform_indices = @transform_20, window_bounds = array<i64: 1, 128>}, {pipeline_mode = #tpu.pipeline_mode<synchronous>, transform_indices = @transform_21, window_bounds = array<i64: 128, 16>}, {pipeline_mode = #tpu.pipeline_mode<synchronous>, transform_indices = @transform_22, window_bounds = array<i64: 1, 16>}, {transform_indices = @transform_23, window_bounds = array<i64: 16, 256>}]} {
    %c0 = arith.constant 0 : index
    %c0_0 = arith.constant 0 : index
    %0 = vector.load %arg1[%c0, %c0_0] : memref<16x16xf32, #tpu.memory_space<vmem>>, vector<16x16xf32>
    %c0_1 = arith.constant 0 : index
    %c0_2 = arith.constant 0 : index
    %1 = vector.load %arg2[%c0_1, %c0_2] : memref<16x256xf32, #tpu.memory_space<vmem>>, vector<16x256xf32>
    %2 = arith.truncf %1 : vector<16x256xf32> to vector<16x256xbf16>
    %c0_3 = arith.constant 0 : index
    %c0_4 = arith.constant 0 : index
    %3 = vector.load %arg20[%c0_3, %c0_4] : memref<256x128xbf16, #tpu.memory_space<vmem>>, vector<256x128xbf16>
    %cst = arith.constant dense<0.000000e+00> : vector<16x128xf32>
    %4 = tpu.matmul %2, %3, %cst {dimension_numbers = #tpu.dot_dimension_numbers<[1], [0], [0], [1], [0, 0, 1, 1], [], []>} : vector<16x256xbf16>, vector<256x128xbf16>, vector<16x128xf32> -> vector<16x128xf32>
    %c0_5 = arith.constant 0 : index
    %c0_6 = arith.constant 0 : index
    %5 = vector.load %arg21[%c0_5, %c0_6] : memref<1x128xf32, #tpu.memory_space<vmem>>, vector<1x128xf32>
    %6 = vector.broadcast %5 : vector<1x128xf32> to vector<16x128xf32>
    %7 = arith.addf %4, %6 : vector<16x128xf32>
    %cst_7 = arith.constant 0.000000e+00 : f32
    %8 = vector.broadcast %cst_7 : f32 to vector<16x128xf32>
    %9 = arith.maximumf %7, %8 : vector<16x128xf32>
    %10 = arith.truncf %9 : vector<16x128xf32> to vector<16x128xbf16>
    %c0_8 = arith.constant 0 : index
    %c0_9 = arith.constant 0 : index
    %11 = vector.load %arg22[%c0_8, %c0_9] : memref<128x16xbf16, #tpu.memory_space<vmem>>, vector<128x16xbf16>
    %cst_10 = arith.constant dense<0.000000e+00> : vector<16x16xf32>
    %12 = tpu.matmul %10, %11, %cst_10 {dimension_numbers = #tpu.dot_dimension_numbers<[1], [0], [0], [1], [0, 0, 1, 1], [], []>} : vector<16x128xbf16>, vector<128x16xbf16>, vector<16x16xf32> -> vector<16x16xf32>
    %c0_11 = arith.constant 0 : index
    %c0_12 = arith.constant 0 : index
    %13 = vector.load %arg23[%c0_11, %c0_12] : memref<1x16xf32, #tpu.memory_space<vmem>>, vector<1x16xf32>
    %14 = vector.broadcast %13 : vector<1x16xf32> to vector<16x16xf32>
    %15 = arith.addf %12, %14 : vector<16x16xf32>
    %cst_13 = arith.constant dense<0xFF800000> : vector<16xf32>
    %16 = vector.multi_reduction <maximumf>, %15, %cst_13 [1] : vector<16x16xf32> to vector<16xf32>
    %17 = vector.shape_cast %16 : vector<16xf32> to vector<16x1xf32>
    %18 = vector.broadcast %17 : vector<16x1xf32> to vector<16x16xf32>
    %19 = arith.subf %15, %18 : vector<16x16xf32>
    %20 = math.exp %19 : vector<16x16xf32>
    %cst_14 = arith.constant dense<0.000000e+00> : vector<16xf32>
    %21 = vector.multi_reduction <add>, %20, %cst_14 [1] : vector<16x16xf32> to vector<16xf32>
    %22 = vector.shape_cast %21 : vector<16xf32> to vector<16x1xf32>
    %23 = tpu.reciprocal %22 {approx = true} : vector<16x1xf32> -> vector<16x1xf32>
    %24 = vector.broadcast %23 : vector<16x1xf32> to vector<16x16xf32>
    %25 = arith.mulf %20, %24 : vector<16x16xf32>
    %26 = arith.truncf %0 : vector<16x16xf32> to vector<16x16xbf16>
    %c0_15 = arith.constant 0 : index
    %c0_16 = arith.constant 0 : index
    %27 = vector.load %arg3[%c0_15, %c0_16] : memref<16x32xbf16, #tpu.memory_space<vmem>>, vector<16x32xbf16>
    %cst_17 = arith.constant dense<0.000000e+00> : vector<16x32xf32>
    %28 = tpu.matmul %26, %27, %cst_17 {dimension_numbers = #tpu.dot_dimension_numbers<[1], [0], [0], [1], [0, 0, 1, 1], [], []>} : vector<16x16xbf16>, vector<16x32xbf16>, vector<16x32xf32> -> vector<16x32xf32>
    %cst_18 = arith.constant dense<0.000000e+00> : vector<16xf32>
    %29 = vector.multi_reduction <add>, %0, %cst_18 [1] : vector<16x16xf32> to vector<16xf32>
    %30 = vector.shape_cast %29 : vector<16xf32> to vector<16x1xf32>
    %31 = tpu.reciprocal %30 {approx = true} : vector<16x1xf32> -> vector<16x1xf32>
    %32 = vector.broadcast %31 : vector<16x1xf32> to vector<16x32xf32>
    %33 = arith.mulf %28, %32 : vector<16x32xf32>
    %c0_19 = arith.constant 0 : index
    %c0_20 = arith.constant 0 : index
    %34 = vector.load %arg4[%c0_19, %c0_20] : memref<256x256xbf16, #tpu.memory_space<vmem>>, vector<256x256xbf16>
    %cst_21 = arith.constant dense<0.000000e+00> : vector<16x256xf32>
    %35 = tpu.matmul %2, %34, %cst_21 {dimension_numbers = #tpu.dot_dimension_numbers<[1], [0], [0], [1], [0, 0, 1, 1], [], []>} : vector<16x256xbf16>, vector<256x256xbf16>, vector<16x256xf32> -> vector<16x256xf32>
    %c0_22 = arith.constant 0 : index
    %c0_23 = arith.constant 0 : index
    %36 = vector.load %arg5[%c0_22, %c0_23] : memref<1x256xf32, #tpu.memory_space<vmem>>, vector<1x256xf32>
    %37 = vector.broadcast %36 : vector<1x256xf32> to vector<16x256xf32>
    %38 = arith.addf %35, %37 : vector<16x256xf32>
    %cst_24 = arith.constant 0.000000e+00 : f32
    %39 = vector.broadcast %cst_24 : f32 to vector<16x256xf32>
    %40 = arith.maximumf %38, %39 : vector<16x256xf32>
    %41 = arith.truncf %40 : vector<16x256xf32> to vector<16x256xbf16>
    %c0_25 = arith.constant 0 : index
    %c0_26 = arith.constant 0 : index
    %42 = vector.load %arg6[%c0_25, %c0_26] : memref<256x512xbf16, #tpu.memory_space<vmem>>, vector<256x512xbf16>
    %cst_27 = arith.constant dense<0.000000e+00> : vector<16x512xf32>
    %43 = tpu.matmul %41, %42, %cst_27 {dimension_numbers = #tpu.dot_dimension_numbers<[1], [0], [0], [1], [0, 0, 1, 1], [], []>} : vector<16x256xbf16>, vector<256x512xbf16>, vector<16x512xf32> -> vector<16x512xf32>
    %c0_28 = arith.constant 0 : index
    %c0_29 = arith.constant 0 : index
    %44 = vector.load %arg7[%c0_28, %c0_29] : memref<1x512xf32, #tpu.memory_space<vmem>>, vector<1x512xf32>
    %45 = vector.broadcast %44 : vector<1x512xf32> to vector<16x512xf32>
    %46 = arith.addf %43, %45 : vector<16x512xf32>
    %cst_30 = arith.constant 0.000000e+00 : f32
    %47 = vector.broadcast %cst_30 : f32 to vector<16x512xf32>
    %48 = arith.maximumf %46, %47 : vector<16x512xf32>
    %49 = arith.truncf %48 : vector<16x512xf32> to vector<16x512xbf16>
    %c0_31 = arith.constant 0 : index
    %c0_32 = arith.constant 0 : index
    %50 = vector.load %arg8[%c0_31, %c0_32] : memref<512x512xbf16, #tpu.memory_space<vmem>>, vector<512x512xbf16>
    %cst_33 = arith.constant dense<0.000000e+00> : vector<16x512xf32>
    %51 = tpu.matmul %49, %50, %cst_33 {dimension_numbers = #tpu.dot_dimension_numbers<[1], [0], [0], [1], [0, 0, 1, 1], [], []>} : vector<16x512xbf16>, vector<512x512xbf16>, vector<16x512xf32> -> vector<16x512xf32>
    %c0_34 = arith.constant 0 : index
    %c0_35 = arith.constant 0 : index
    %52 = vector.load %arg9[%c0_34, %c0_35] : memref<1x512xf32, #tpu.memory_space<vmem>>, vector<1x512xf32>
    %53 = vector.broadcast %52 : vector<1x512xf32> to vector<16x512xf32>
    %54 = arith.addf %51, %53 : vector<16x512xf32>
    %cst_36 = arith.constant 0.000000e+00 : f32
    %55 = vector.broadcast %cst_36 : f32 to vector<16x512xf32>
    %56 = arith.maximumf %54, %55 : vector<16x512xf32>
    %57 = arith.truncf %56 : vector<16x512xf32> to vector<16x512xbf16>
    %c0_37 = arith.constant 0 : index
    %c0_38 = arith.constant 0 : index
    %58 = vector.load %arg10[%c0_37, %c0_38] : memref<512x256xbf16, #tpu.memory_space<vmem>>, vector<512x256xbf16>
    %cst_39 = arith.constant dense<0.000000e+00> : vector<16x256xf32>
    %59 = tpu.matmul %57, %58, %cst_39 {dimension_numbers = #tpu.dot_dimension_numbers<[1], [0], [0], [1], [0, 0, 1, 1], [], []>} : vector<16x512xbf16>, vector<512x256xbf16>, vector<16x256xf32> -> vector<16x256xf32>
    %c0_40 = arith.constant 0 : index
    %c0_41 = arith.constant 0 : index
    %60 = vector.load %arg11[%c0_40, %c0_41] : memref<1x256xf32, #tpu.memory_space<vmem>>, vector<1x256xf32>
    %61 = vector.broadcast %60 : vector<1x256xf32> to vector<16x256xf32>
    %62 = arith.addf %59, %61 : vector<16x256xf32>
    %cst_42 = arith.constant 0.000000e+00 : f32
    %63 = vector.broadcast %cst_42 : f32 to vector<16x256xf32>
    %64 = arith.maximumf %62, %63 : vector<16x256xf32>
    %65 = arith.truncf %64 : vector<16x256xf32> to vector<16x256xbf16>
    %c0_43 = arith.constant 0 : index
    %c0_44 = arith.constant 0 : index
    %66 = vector.load %arg12[%c0_43, %c0_44] : memref<256x64xbf16, #tpu.memory_space<vmem>>, vector<256x64xbf16>
    %cst_45 = arith.constant dense<0.000000e+00> : vector<16x64xf32>
    %67 = tpu.matmul %65, %66, %cst_45 {dimension_numbers = #tpu.dot_dimension_numbers<[1], [0], [0], [1], [0, 0, 1, 1], [], []>} : vector<16x256xbf16>, vector<256x64xbf16>, vector<16x64xf32> -> vector<16x64xf32>
    %c0_46 = arith.constant 0 : index
    %c0_47 = arith.constant 0 : index
    %68 = vector.load %arg13[%c0_46, %c0_47] : memref<1x64xf32, #tpu.memory_space<vmem>>, vector<1x64xf32>
    %69 = vector.broadcast %68 : vector<1x64xf32> to vector<16x64xf32>
    %70 = arith.addf %67, %69 : vector<16x64xf32>
    %71 = vector.extract_strided_slice %70 {offsets = [0, 0], sizes = [16, 32], strides = [1, 1]} : vector<16x64xf32> to vector<16x32xf32>
    %c0_48 = arith.constant 0 : index
    %c0_49 = arith.constant 0 : index
    %72 = vector.load %arg14[%c0_48, %c0_49] : memref<256x512xbf16, #tpu.memory_space<vmem>>, vector<256x512xbf16>
    %cst_50 = arith.constant dense<0.000000e+00> : vector<16x512xf32>
    %73 = tpu.matmul %2, %72, %cst_50 {dimension_numbers = #tpu.dot_dimension_numbers<[1], [0], [0], [1], [0, 0, 1, 1], [], []>} : vector<16x256xbf16>, vector<256x512xbf16>, vector<16x512xf32> -> vector<16x512xf32>
    %74 = arith.truncf %33 : vector<16x32xf32> to vector<16x32xbf16>
    %c0_51 = arith.constant 0 : index
    %c0_52 = arith.constant 0 : index
    %75 = vector.load %arg15[%c0_51, %c0_52] : memref<32x512xbf16, #tpu.memory_space<vmem>>, vector<32x512xbf16>
    %cst_53 = arith.constant dense<0.000000e+00> : vector<16x512xf32>
    %76 = tpu.matmul %74, %75, %cst_53 {dimension_numbers = #tpu.dot_dimension_numbers<[1], [0], [0], [1], [0, 0, 1, 1], [], []>} : vector<16x32xbf16>, vector<32x512xbf16>, vector<16x512xf32> -> vector<16x512xf32>
    %77 = arith.addf %73, %76 : vector<16x512xf32>
    %c0_54 = arith.constant 0 : index
    %c0_55 = arith.constant 0 : index
    %78 = vector.load %arg16[%c0_54, %c0_55] : memref<1x512xf32, #tpu.memory_space<vmem>>, vector<1x512xf32>
    %79 = vector.broadcast %78 : vector<1x512xf32> to vector<16x512xf32>
    %80 = arith.addf %77, %79 : vector<16x512xf32>
    %cst_56 = arith.constant 0.000000e+00 : f32
    %81 = vector.broadcast %cst_56 : f32 to vector<16x512xf32>
    %82 = arith.maximumf %80, %81 : vector<16x512xf32>
    %83 = arith.truncf %71 : vector<16x32xf32> to vector<16x32xbf16>
    %c0_57 = arith.constant 0 : index
    %c0_58 = arith.constant 0 : index
    %84 = vector.load %arg15[%c0_57, %c0_58] : memref<32x512xbf16, #tpu.memory_space<vmem>>, vector<32x512xbf16>
    %cst_59 = arith.constant dense<0.000000e+00> : vector<16x512xf32>
    %85 = tpu.matmul %83, %84, %cst_59 {dimension_numbers = #tpu.dot_dimension_numbers<[1], [0], [0], [1], [0, 0, 1, 1], [], []>} : vector<16x32xbf16>, vector<32x512xbf16>, vector<16x512xf32> -> vector<16x512xf32>
    %86 = arith.addf %73, %85 : vector<16x512xf32>
    %c0_60 = arith.constant 0 : index
    %c0_61 = arith.constant 0 : index
    %87 = vector.load %arg16[%c0_60, %c0_61] : memref<1x512xf32, #tpu.memory_space<vmem>>, vector<1x512xf32>
    %88 = vector.broadcast %87 : vector<1x512xf32> to vector<16x512xf32>
    %89 = arith.addf %86, %88 : vector<16x512xf32>
    %cst_62 = arith.constant 0.000000e+00 : f32
    %90 = vector.broadcast %cst_62 : f32 to vector<16x512xf32>
    %91 = arith.maximumf %89, %90 : vector<16x512xf32>
    %92 = tpu.concatenate %82, %91 in 0 : vector<16x512xf32>, vector<16x512xf32> -> vector<32x512xf32>
    %93 = arith.truncf %92 : vector<32x512xf32> to vector<32x512xbf16>
    %c0_63 = arith.constant 0 : index
    %c0_64 = arith.constant 0 : index
    %94 = vector.load %arg17[%c0_63, %c0_64] : memref<512x64xbf16, #tpu.memory_space<vmem>>, vector<512x64xbf16>
    %cst_65 = arith.constant dense<0.000000e+00> : vector<32x64xf32>
    %95 = tpu.matmul %93, %94, %cst_65 {dimension_numbers = #tpu.dot_dimension_numbers<[1], [0], [0], [1], [0, 0, 1, 1], [], []>} : vector<32x512xbf16>, vector<512x64xbf16>, vector<32x64xf32> -> vector<32x64xf32>
    %c0_66 = arith.constant 0 : index
    %c0_67 = arith.constant 0 : index
    %96 = vector.load %arg18[%c0_66, %c0_67] : memref<1x64xf32, #tpu.memory_space<vmem>>, vector<1x64xf32>
    %97 = vector.broadcast %96 : vector<1x64xf32> to vector<32x64xf32>
    %98 = arith.addf %95, %97 : vector<32x64xf32>
    %cst_68 = arith.constant 0.000000e+00 : f32
    %99 = vector.broadcast %cst_68 : f32 to vector<32x64xf32>
    %100 = arith.cmpf ogt, %98, %99 : vector<32x64xf32>
    %cst_69 = arith.constant 0.00999999977 : f32
    %101 = vector.broadcast %cst_69 : f32 to vector<32x64xf32>
    %102 = arith.mulf %101, %98 : vector<32x64xf32>
    %103 = arith.select %100, %98, %102 : vector<32x64xi1>, vector<32x64xf32>
    %104 = arith.mulf %103, %103 : vector<32x64xf32>
    %cst_70 = arith.constant dense<0.000000e+00> : vector<32xf32>
    %105 = vector.multi_reduction <add>, %104, %cst_70 [1] : vector<32x64xf32> to vector<32xf32>
    %106 = vector.shape_cast %105 : vector<32xf32> to vector<32x1xf32>
    %cst_71 = arith.constant 1.000000e-24 : f32
    %107 = vector.broadcast %cst_71 : f32 to vector<32x1xf32>
    %108 = arith.maximumf %106, %107 : vector<32x1xf32>
    %109 = math.rsqrt %108 : vector<32x1xf32>
    %110 = vector.broadcast %109 : vector<32x1xf32> to vector<32x64xf32>
    %111 = arith.mulf %103, %110 : vector<32x64xf32>
    %112 = arith.truncf %111 : vector<32x64xf32> to vector<32x64xbf16>
    %c0_72 = arith.constant 0 : index
    %c0_73 = arith.constant 0 : index
    %113 = vector.load %arg19[%c0_72, %c0_73] : memref<64x16xbf16, #tpu.memory_space<vmem>>, vector<64x16xbf16>
    %cst_74 = arith.constant dense<0.000000e+00> : vector<32x16xf32>
    %114 = tpu.matmul %112, %113, %cst_74 {dimension_numbers = #tpu.dot_dimension_numbers<[1], [0], [0], [1], [0, 0, 1, 1], [], []>} : vector<32x64xbf16>, vector<64x16xbf16>, vector<32x16xf32> -> vector<32x16xf32>
    %115 = vector.extract_strided_slice %111 {offsets = [0, 0], sizes = [16, 64], strides = [1, 1]} : vector<32x64xf32> to vector<16x64xf32>
    %116 = vector.extract_strided_slice %111 {offsets = [16, 0], sizes = [16, 64], strides = [1, 1]} : vector<32x64xf32> to vector<16x64xf32>
    %117 = vector.extract_strided_slice %114 {offsets = [0, 0], sizes = [16, 16], strides = [1, 1]} : vector<32x16xf32> to vector<16x16xf32>
    %118 = vector.extract_strided_slice %114 {offsets = [16, 0], sizes = [16, 16], strides = [1, 1]} : vector<32x16xf32> to vector<16x16xf32>
    %cst_75 = arith.constant 0.000000e+00 : f32
    %119 = vector.broadcast %cst_75 : f32 to vector<16x16xf32>
    %120 = tpu.concatenate %70, %115, %116, %117, %118, %25, %119 in 1 : vector<16x64xf32>, vector<16x64xf32>, vector<16x64xf32>, vector<16x16xf32>, vector<16x16xf32>, vector<16x16xf32>, vector<16x16xf32> -> vector<16x256xf32>
    %c0_76 = arith.constant 0 : index
    %c0_77 = arith.constant 0 : index
    %121 = vector.load %arg24[%c0_76, %c0_77] : memref<16x256xf32, #tpu.memory_space<vmem>>, vector<16x256xf32>
    tpu.vector_store %arg24[%c0_76, %c0_77], %120 {strides = array<i32>} : memref<16x256xf32, #tpu.memory_space<vmem>>, vector<16x256xf32>,
    return
  }
  func.func @transform_0(%arg0: i32) -> (i32, i32) {
    %c0_i32 = arith.constant 0 : i32
    %c0_i32_0 = arith.constant 0 : i32
    return %arg0, %c0_i32 : i32, i32
  }
  func.func @transform_1(%arg0: i32) -> (i32, i32) {
    %c0_i32 = arith.constant 0 : i32
    %c0_i32_0 = arith.constant 0 : i32
    return %arg0, %c0_i32 : i32, i32
  }
  func.func @transform_2(%arg0: i32) -> (i32, i32) {
    %c0_i32 = arith.constant 0 : i32
    %c0_i32_0 = arith.constant 0 : i32
    %c0_i32_1 = arith.constant 0 : i32
    return %c0_i32, %c0_i32_0 : i32, i32
  }
  func.func @transform_3(%arg0: i32) -> (i32, i32) {
    %c0_i32 = arith.constant 0 : i32
    %c0_i32_0 = arith.constant 0 : i32
    %c0_i32_1 = arith.constant 0 : i32
    return %c0_i32, %c0_i32_0 : i32, i32
  }
  func.func @transform_4(%arg0: i32) -> (i32, i32) {
    %c0_i32 = arith.constant 0 : i32
    %c0_i32_0 = arith.constant 0 : i32
    %c0_i32_1 = arith.constant 0 : i32
    return %c0_i32, %c0_i32_0 : i32, i32
  }
  func.func @transform_5(%arg0: i32) -> (i32, i32) {
    %c0_i32 = arith.constant 0 : i32
    %c0_i32_0 = arith.constant 0 : i32
    %c0_i32_1 = arith.constant 0 : i32
    return %c0_i32, %c0_i32_0 : i32, i32
  }
  func.func @transform_6(%arg0: i32) -> (i32, i32) {
    %c0_i32 = arith.constant 0 : i32
    %c0_i32_0 = arith.constant 0 : i32
    %c0_i32_1 = arith.constant 0 : i32
    return %c0_i32, %c0_i32_0 : i32, i32
  }
  func.func @transform_7(%arg0: i32) -> (i32, i32) {
    %c0_i32 = arith.constant 0 : i32
    %c0_i32_0 = arith.constant 0 : i32
    %c0_i32_1 = arith.constant 0 : i32
    return %c0_i32, %c0_i32_0 : i32, i32
  }
  func.func @transform_8(%arg0: i32) -> (i32, i32) {
    %c0_i32 = arith.constant 0 : i32
    %c0_i32_0 = arith.constant 0 : i32
    %c0_i32_1 = arith.constant 0 : i32
    return %c0_i32, %c0_i32_0 : i32, i32
  }
  func.func @transform_9(%arg0: i32) -> (i32, i32) {
    %c0_i32 = arith.constant 0 : i32
    %c0_i32_0 = arith.constant 0 : i32
    %c0_i32_1 = arith.constant 0 : i32
    return %c0_i32, %c0_i32_0 : i32, i32
  }
  func.func @transform_10(%arg0: i32) -> (i32, i32) {
    %c0_i32 = arith.constant 0 : i32
    %c0_i32_0 = arith.constant 0 : i32
    %c0_i32_1 = arith.constant 0 : i32
    return %c0_i32, %c0_i32_0 : i32, i32
  }
  func.func @transform_11(%arg0: i32) -> (i32, i32) {
    %c0_i32 = arith.constant 0 : i32
    %c0_i32_0 = arith.constant 0 : i32
    %c0_i32_1 = arith.constant 0 : i32
    return %c0_i32, %c0_i32_0 : i32, i32
  }
  func.func @transform_12(%arg0: i32) -> (i32, i32) {
    %c0_i32 = arith.constant 0 : i32
    %c0_i32_0 = arith.constant 0 : i32
    %c0_i32_1 = arith.constant 0 : i32
    return %c0_i32, %c0_i32_0 : i32, i32
  }
  func.func @transform_13(%arg0: i32) -> (i32, i32) {
    %c0_i32 = arith.constant 0 : i32
    %c0_i32_0 = arith.constant 0 : i32
    %c0_i32_1 = arith.constant 0 : i32
    return %c0_i32, %c0_i32_0 : i32, i32
  }
  func.func @transform_14(%arg0: i32) -> (i32, i32) {
    %c0_i32 = arith.constant 0 : i32
    %c0_i32_0 = arith.constant 0 : i32
    %c0_i32_1 = arith.constant 0 : i32
    return %c0_i32, %c0_i32_0 : i32, i32
  }
  func.func @transform_15(%arg0: i32) -> (i32, i32) {
    %c0_i32 = arith.constant 0 : i32
    %c0_i32_0 = arith.constant 0 : i32
    %c0_i32_1 = arith.constant 0 : i32
    return %c0_i32, %c0_i32_0 : i32, i32
  }
  func.func @transform_16(%arg0: i32) -> (i32, i32) {
    %c0_i32 = arith.constant 0 : i32
    %c0_i32_0 = arith.constant 0 : i32
    %c0_i32_1 = arith.constant 0 : i32
    return %c0_i32, %c0_i32_0 : i32, i32
  }
  func.func @transform_17(%arg0: i32) -> (i32, i32) {
    %c0_i32 = arith.constant 0 : i32
    %c0_i32_0 = arith.constant 0 : i32
    %c0_i32_1 = arith.constant 0 : i32
    return %c0_i32, %c0_i32_0 : i32, i32
  }
  func.func @transform_18(%arg0: i32) -> (i32, i32) {
    %c0_i32 = arith.constant 0 : i32
    %c0_i32_0 = arith.constant 0 : i32
    %c0_i32_1 = arith.constant 0 : i32
    return %c0_i32, %c0_i32_0 : i32, i32
  }
  func.func @transform_19(%arg0: i32) -> (i32, i32) {
    %c0_i32 = arith.constant 0 : i32
    %c0_i32_0 = arith.constant 0 : i32
    %c0_i32_1 = arith.constant 0 : i32
    return %c0_i32, %c0_i32_0 : i32, i32
  }
  func.func @transform_20(%arg0: i32) -> (i32, i32) {
    %c0_i32 = arith.constant 0 : i32
    %c0_i32_0 = arith.constant 0 : i32
    %c0_i32_1 = arith.constant 0 : i32
    return %c0_i32, %c0_i32_0 : i32, i32
  }
  func.func @transform_21(%arg0: i32) -> (i32, i32) {
    %c0_i32 = arith.constant 0 : i32
    %c0_i32_0 = arith.constant 0 : i32
    %c0_i32_1 = arith.constant 0 : i32
    return %c0_i32, %c0_i32_0 : i32, i32
  }
  func.func @transform_22(%arg0: i32) -> (i32, i32) {
    %c0_i32 = arith.constant 0 : i32
    %c0_i32_0 = arith.constant 0 : i32
    %c0_i32_1 = arith.constant 0 : i32
    return %c0_i32, %c0_i32_0 : i32, i32
  }
  func.func @transform_23(%arg0: i32) -> (i32, i32) {
    %c0_i32 = arith.constant 0 : i32
    %c0_i32_0 = arith.constant 0 : i32
    return %arg0, %c0_i32 : i32, i32
  }
}

</mosaic_0001>

<bundles_post_ra>
// kernel: vae_forward.1
= control target key start
LH: loop header
LB: loop body
LE: loop exit
PB: predicated region body
PF: predicated region fallthrough
CT: control target
= control target key end

     0   :  { %s6940_s0 = inlined_call_operand.vmem [shape: f32[16,16], index: 0, kind: input, shape index: {}]   ;;  %s6941_s1 = inlined_call_operand.vmem [shape: f32[16,256], index: 1, kind: input, shape index: {}]   ;;  %s6942_s2 = inlined_call_operand.hbm [shape: bf16[16,32], index: 2, kind: input, shape index: {}]   ;;  %s6943_s3 = inlined_call_operand.vmem [shape: bf16[256,256], index: 3, kind: input, shape index: {}]   ;;  %s6944_s4 = inlined_call_operand.hbm [shape: f32[1,256], index: 4, kind: input, shape index: {}]   ;;  %s6945_s5 = inlined_call_operand.vmem [shape: bf16[256,512], index: 5, kind: input, shape index: {}]   ;;  %s6946_s6 = inlined_call_operand.hbm [shape: f32[1,512], index: 6, kind: input, shape index: {}]   ;;  %s6947_s7 = inlined_call_operand.hbm [shape: bf16[512,512], index: 7, kind: input, shape index: {}]   ;;  %s6948_s8 = inlined_call_operand.hbm [shape: f32[1,512], index: 8, kind: input, shape index: {}]   ;;  %s6949_s9 = inlined_call_operand.hbm [shape: bf16[512,256], index: 9, kind: input, shape index: {}]   ;;  %s6950_s10 = inlined_call_operand.hbm [shape: f32[1,256], index: 10, kind: input, shape index: {}]   ;;  %s6951_s11 = inlined_call_operand.vmem [shape: bf16[256,64], index: 11, kind: input, shape index: {}]   ;;  %s6952_s12 = inlined_call_operand.vmem [shape: f32[1,64], index: 12, kind: input, shape index: {}]   ;;  %s6953_s13 = inlined_call_operand.hbm [shape: bf16[256,512], index: 13, kind: input, shape index: {}]   ;;  %s6954_s14 = inlined_call_operand.hbm [shape: bf16[32,512], index: 14, kind: input, shape index: {}]   ;;  %s6955_s15 = inlined_call_operand.hbm [shape: f32[1,512], index: 15, kind: input, shape index: {}]   ;;  %s6956_s16 = inlined_call_operand.vmem [shape: bf16[512,64], index: 16, kind: input, shape index: {}]   ;;  %s6957_s17 = inlined_call_operand.hbm [shape: f32[1,64], index: 17, kind: input, shape index: {}]   ;;  %s6958_s18 = inlined_call_operand.vmem [shape: bf16[64,16], index: 18, kind: input, shape index: {}]   ;;  %s6959_s19 = inlined_call_operand.hbm [shape: bf16[256,128], index: 19, kind: input, shape index: {}]   ;;  %s6960_s20 = inlined_call_operand.hbm [shape: f32[1,128], index: 20, kind: input, shape index: {}]   ;;  %s6961_s21 = inlined_call_operand.vmem [shape: bf16[128,16], index: 21, kind: input, shape index: {}]   ;;  %s6962_s22 = inlined_call_operand.hbm [shape: f32[1,16], index: 22, kind: input, shape index: {}]   ;;  %s6963_s23 = inlined_call_operand.vmem [shape: f32[16,256], index: 23, kind: output, shape index: {}]  }
   0x1   :  { %6977 = sst [smem:[#allocation32_spill]] %s6940_s0 }
   0x2   :  { %6978 = sst [smem:[#allocation33_spill]] %s6941_s1 }
   0x3   :  { %6979 = sst [smem:[#allocation34_spill]] %s6942_s2 }
   0x4   :  { %6980 = sst [smem:[#allocation35_spill]] %s6943_s3 }
   0x5   :  { %6981 = sst [smem:[#allocation36_spill]] %s6944_s4 }
   0x6   :  { %6982 = sst [smem:[#allocation37_spill]] %s6945_s5 }
   0x7   :  { %6983 = sst [smem:[#allocation38_spill]] %s6946_s6 }
   0x8   :  { %6984 = sst [smem:[#allocation39_spill]] %s6947_s7 }
   0x9   :  { %6985 = sst [smem:[#allocation40_spill]] %s6963_s23 }
   0xa   :  { %28 = vsyncpa [#allocation3], 0 }
   0xb   :  { %29 = vsyncpa [#allocation5], 0 }
   0xc   :  { %30 = vsyncpa [#allocation8], 0 }
   0xd   :  { %31 = vsyncpa [#allocation11], 0 }
   0xe   :  { %32 = vsyncpa [#allocation14], 0 }
   0xf   :  { %33 = vsyncpa [#allocation17], 0 }
  0x10   :  { %34 = vsyncpa [#allocation20], 0 }
  0x11   :  { %35 = vsyncpa [#allocation23], 0  ;;  %s5971_s4 = smov [#allocation4]   ;;  %s5972_s24 = smov [#allocation7]  }
  0x12   :  { %s60_s30 = sshll.u32 %s5971_s4, 4  ;;  %s81_s25 = sshll.u32 %s5972_s24, 4  ;;  %s61_s30 = int_to_ptr.vmem [resolvable:$true] %s60_s30  ;;  %s6116_s25 = int_to_ptr.vmem [resolvable:$true] %s81_s25 }
  0x13   :  { %s6986_s26 = sld [smem:[#allocation36_spill]] }
  0x19   :  { %s5647_s2 = scalar_lea.hbm %s6986_s26, 32 }
  0x1a   :  { %p5648_p0 = scmp.ne.s32.totalorder %s6986_s26, %s5647_s2  ;;  %p5651_p1 = scmp.lt.u32.totalorder %s5647_s2, %s6986_s26 }
  0x1c   :  { %p5653_p2 = pnand %p5651_p1, %p5648_p0 }
  0x1e   :  { %5656 = shalt.err (!%p5653_p2)
}
  0x1f   :  { %s5657_s29 = scalar_lea.vmem %s61_s30, 32  ;;  %p5662_p4 = scmp.lt.s32.totalorder %s61_s30, %s61_s30 }
  0x20   :  { %p5658_p3 = scmp.ne.s32.totalorder %s61_s30, %s5657_s29  ;;  %p5663_p5 = scmp.lt.s32.totalorder %s5657_s29, %s5657_s29 }
  0x22   :  { %p5664_p6 = por %p5663_p5, %p5662_p4 }
  0x24   :  { %p5665_p7 = pnand %p5664_p6, %p5658_p3 }
  0x26   :  { %5668 = shalt.err (!%p5665_p7)
}
  0x27   :  { %63 = dma.hbm_to_vmem [thread:$0]  %s6986_s26, 32, %s61_s30, [#allocation5]  }
  0x28   :  { %s6987_s5 = sld [smem:[#allocation39_spill]] }
  0x2e   :  { %s5669_s1 = scalar_lea.hbm %s6987_s5, 16384 }
  0x2f   :  { %p5670_p8 = scmp.ne.s32.totalorder %s6987_s5, %s5669_s1  ;;  %p5673_p9 = scmp.lt.u32.totalorder %s5669_s1, %s6987_s5 }
  0x31   :  { %p5675_p10 = pnand %p5673_p9, %p5670_p8 }
  0x33   :  { %5678 = shalt.err (!%p5675_p10)
}
  0x34   :  { %s5679_s28 = scalar_lea.vmem %s6116_s25, 16384  ;;  %p5684_p12 = scmp.lt.s32.totalorder %s6116_s25, %s6116_s25 }
  0x35   :  { %p5680_p11 = scmp.ne.s32.totalorder %s6116_s25, %s5679_s28  ;;  %p5685_p13 = scmp.lt.s32.totalorder %s5679_s28, %s5679_s28 }
  0x37   :  { %p5686_p0 = por %p5685_p13, %p5684_p12 }
  0x39   :  { %p5687_p1 = pnand %p5686_p0, %p5680_p11 }
  0x3b   :  { %5690 = shalt.err (!%p5687_p1)
}
  0x3c   :  { %s6973_s30 = smov 256   ;;  %s6975_s26 = smov 16  }
  0x3d   :  { %87 = dma.hbm_to_vmem [thread:$0]  %s6987_s5, 16384, %s6116_s25, [#allocation8], %s6973_s30, %s6973_s30, %s6975_s26  }
  0x3e   :  { %s5975_s0 = smov [#allocation10]   ;;  %s5691_s6 = scalar_lea.hbm %s6949_s9, 8192 }
  0x3f   :  { %s103_s4 = sshll.u32 %s5975_s0, 4  ;;  %p5692_p2 = scmp.ne.s32.totalorder %s6949_s9, %s5691_s6  ;;  %s104_s4 = int_to_ptr.vmem [resolvable:$true] %s103_s4 }
  0x40   :  { %p5695_p3 = scmp.lt.u32.totalorder %s5691_s6, %s6949_s9 }
  0x42   :  { %p5697_p4 = pnand %p5695_p3, %p5692_p2 }
  0x44   :  { %5700 = shalt.err (!%p5697_p4)
}
  0x45   :  { %s5701_s23 = scalar_lea.vmem %s104_s4, 8192  ;;  %p5706_p6 = scmp.lt.s32.totalorder %s104_s4, %s104_s4 }
  0x46   :  { %p5702_p5 = scmp.ne.s32.totalorder %s104_s4, %s5701_s23  ;;  %p5707_p7 = scmp.lt.s32.totalorder %s5701_s23, %s5701_s23 }
  0x48   :  { %p5708_p8 = por %p5707_p7, %p5706_p6 }
  0x4a   :  { %p5709_p9 = pnand %p5708_p8, %p5702_p5 }
  0x4c   :  { %5712 = shalt.err (!%p5709_p9)
}
  0x4d   :  { %s5976_s25 = smov 128   ;;  %s5977_s5 = smov 8  }
  0x4e   :  { %109 = dma.hbm_to_vmem [thread:$0]  %s6949_s9, 8192, %s104_s4, [#allocation11], %s5976_s25, %s5976_s25, %s5977_s5  }
  0x4f   :  { %s5978_s0 = smov [#allocation13]   ;;  %s5979_s1 = smov [#allocation16]  }
  0x50   :  { %s129_s24 = sshll.u32 %s5978_s0, 4  ;;  %s154_s6 = sshll.u32 %s5979_s1, 4  ;;  %s130_s24 = int_to_ptr.vmem [resolvable:$true] %s129_s24  ;;  %s155_s6 = int_to_ptr.vmem [resolvable:$true] %s154_s6 }
  0x51   :  { %s5713_s7 = scalar_lea.hbm %s6953_s13, 8192 }
  0x52   :  { %p5714_p10 = scmp.ne.s32.totalorder %s6953_s13, %s5713_s7  ;;  %p5717_p11 = scmp.lt.u32.totalorder %s5713_s7, %s6953_s13 }
  0x54   :  { %p5719_p12 = pnand %p5717_p11, %p5714_p10 }
  0x56   :  { %5722 = shalt.err (!%p5719_p12)
}
  0x57   :  { %s5723_s9 = scalar_lea.vmem %s130_s24, 8192  ;;  %p5728_p0 = scmp.lt.s32.totalorder %s130_s24, %s130_s24 }
  0x58   :  { %p5724_p13 = scmp.ne.s32.totalorder %s130_s24, %s5723_s9  ;;  %p5729_p1 = scmp.lt.s32.totalorder %s5723_s9, %s5723_s9 }
  0x5a   :  { %p5730_p2 = por %p5729_p1, %p5728_p0 }
  0x5c   :  { %p5731_p3 = pnand %p5730_p2, %p5724_p13 }
  0x5e   :  { %5734 = shalt.err (!%p5731_p3)
}
  0x5f   :  { %s6988_s4 = smov 16   ;;  %s6989_s25 = smov 256  }
  0x60   :  { %135 = dma.hbm_to_vmem [thread:$0]  %s6953_s13, 8192, %s130_s24, [#allocation14], %s6989_s25, %s6989_s25, %s6988_s4  }
  0x61   :  { %s5735_s26 = scalar_lea.hbm %s6955_s15, 64 }
  0x62   :  { %p5736_p4 = scmp.ne.s32.totalorder %s6955_s15, %s5735_s26  ;;  %p5739_p5 = scmp.lt.u32.totalorder %s5735_s26, %s6955_s15 }
  0x64   :  { %p5741_p6 = pnand %p5739_p5, %p5736_p4 }
  0x66   :  { %5744 = shalt.err (!%p5741_p6)
}
  0x67   :  { %s5745_s7 = scalar_lea.vmem %s155_s6, 64  ;;  %p5750_p8 = scmp.lt.s32.totalorder %s155_s6, %s155_s6 }
  0x68   :  { %p5746_p7 = scmp.ne.s32.totalorder %s155_s6, %s5745_s7  ;;  %p5751_p9 = scmp.lt.s32.totalorder %s5745_s7, %s5745_s7 }
  0x6a   :  { %p5752_p10 = por %p5751_p9, %p5750_p8 }
  0x6c   :  { %p5753_p11 = pnand %p5752_p10, %p5746_p7 }
  0x6e   :  { %5756 = shalt.err (!%p5753_p11)
}
  0x6f   :  { %157 = dma.hbm_to_vmem [thread:$0]  %s6955_s15, 64, %s155_s6, [#allocation17]  }
  0x70   :  { %s5980_s28 = smov [#allocation19]   ;;  %s5981_s9 = smov [#allocation2]  }
  0x71   :  { %s177_s23 = sshll.u32 %s5980_s28, 4  ;;  %s45_s5 = sshll.u32 %s5981_s9, 4  ;;  %s178_s23 = int_to_ptr.vmem [resolvable:$true] %s177_s23  ;;  %s46_s5 = int_to_ptr.vmem [resolvable:$true] %s45_s5 }
  0x72   :  { %s5757_s30 = scalar_lea.hbm %s6959_s19, 2048 }
  0x73   :  { %p5758_p12 = scmp.ne.s32.totalorder %s6959_s19, %s5757_s30  ;;  %p5761_p13 = scmp.lt.u32.totalorder %s5757_s30, %s6959_s19 }
  0x75   :  { %p5763_p0 = pnand %p5761_p13, %p5758_p12 }
  0x77   :  { %5766 = shalt.err (!%p5763_p0)
}
  0x78   :  { %s5767_s15 = scalar_lea.vmem %s178_s23, 2048  ;;  %p5772_p2 = scmp.lt.s32.totalorder %s178_s23, %s178_s23 }
  0x79   :  { %p5768_p1 = scmp.ne.s32.totalorder %s178_s23, %s5767_s15  ;;  %p5773_p3 = scmp.lt.s32.totalorder %s5767_s15, %s5767_s15 }
  0x7b   :  { %p5774_p4 = por %p5773_p3, %p5772_p2 }
  0x7d   :  { %p5775_p5 = pnand %p5774_p4, %p5768_p1 }
  0x7f   :  { %5778 = shalt.err (!%p5775_p5)
}
  0x80   :  { %s5982_s6 = smov 64   ;;  %s5983_s2 = smov 4  }
  0x81   :  { %183 = dma.hbm_to_vmem [thread:$0]  %s6959_s19, 2048, %s178_s23, [#allocation20], %s5982_s6, %s5982_s6, %s5983_s2  }
  0x82   :  { %s6990_s9 = sld [smem:[#allocation34_spill]] }
  0x88   :  { %s5779_s29 = scalar_lea.hbm %s6990_s9, 128 }
  0x89   :  { %p5780_p6 = scmp.ne.s32.totalorder %s6990_s9, %s5779_s29  ;;  %p5783_p7 = scmp.lt.u32.totalorder %s5779_s29, %s6990_s9 }
  0x8b   :  { %p5785_p8 = pnand %p5783_p7, %p5780_p6 }
  0x8d   :  { %5788 = shalt.err (!%p5785_p8)
}
  0x8e   :  { %s5789_s1 = scalar_lea.vmem %s46_s5, 128  ;;  %p5794_p10 = scmp.lt.s32.totalorder %s46_s5, %s46_s5 }
  0x8f   :  { %p5790_p9 = scmp.ne.s32.totalorder %s46_s5, %s5789_s1  ;;  %p5795_p11 = scmp.lt.s32.totalorder %s5789_s1, %s5789_s1 }
  0x91   :  { %p5796_p12 = por %p5795_p11, %p5794_p10 }
  0x93   :  { %p5797_p13 = pnand %p5796_p12, %p5790_p9 }
  0x95   :  { %5800 = shalt.err (!%p5797_p13)
}
  0x96   :  { %51 = dma.hbm_to_vmem [thread:$0]  %s6990_s9, 128, %s46_s5, [#allocation3], %s5982_s6, %s5982_s6, %s5983_s2  }
  0x97   :  { %s5984_s27 = smov [#allocation6]   ;;  %s5985_s7 = smov [#allocation9]  }
  0x98   :  { %s72_s15 = sshll.u32 %s5984_s27, 4  ;;  %s94_s13 = sshll.u32 %s5985_s7, 4  ;;  %s73_s15 = int_to_ptr.vmem [resolvable:$true] %s72_s15  ;;  %s95_s13 = int_to_ptr.vmem [resolvable:$true] %s94_s13 }
  0x99   :  { %s6991_s29 = sld [smem:[#allocation38_spill]] }
  0x9f   :  { %s5801_s3 = scalar_lea.hbm %s6991_s29, 64 }
  0xa0   :  { %p5802_p0 = scmp.ne.s32.totalorder %s6991_s29, %s5801_s3  ;;  %p5805_p1 = scmp.lt.u32.totalorder %s5801_s3, %s6991_s29 }
  0xa2   :  { %p5807_p2 = pnand %p5805_p1, %p5802_p0 }
  0xa4   :  { %5810 = shalt.err (!%p5807_p2)
}
  0xa5   :  { %s5811_s5 = scalar_lea.vmem %s73_s15, 64  ;;  %p5816_p4 = scmp.lt.s32.totalorder %s73_s15, %s73_s15 }
  0xa6   :  { %p5812_p3 = scmp.ne.s32.totalorder %s73_s15, %s5811_s5  ;;  %p5817_p5 = scmp.lt.s32.totalorder %s5811_s5, %s5811_s5 }
  0xa8   :  { %p5818_p6 = por %p5817_p5, %p5816_p4 }
  0xaa   :  { %p5819_p7 = pnand %p5818_p6, %p5812_p3 }
  0xac   :  { %5822 = shalt.err (!%p5819_p7)
}
  0xad   :  { %75 = dma.hbm_to_vmem [thread:$0]  %s6991_s29, 64, %s73_s15, [#allocation5]  }
  0xae   :  { %s5823_s27 = scalar_lea.hbm %s6948_s8, 64 }
  0xaf   :  { %p5824_p8 = scmp.ne.s32.totalorder %s6948_s8, %s5823_s27  ;;  %p5827_p9 = scmp.lt.u32.totalorder %s5823_s27, %s6948_s8 }
  0xb1   :  { %p5829_p10 = pnand %p5827_p9, %p5824_p8 }
  0xb3   :  { %5832 = shalt.err (!%p5829_p10)
}
  0xb4   :  { %s5833_s30 = scalar_lea.vmem %s95_s13, 64  ;;  %p5838_p12 = scmp.lt.s32.totalorder %s95_s13, %s95_s13 }
  0xb5   :  { %p5834_p11 = scmp.ne.s32.totalorder %s95_s13, %s5833_s30  ;;  %p5839_p13 = scmp.lt.s32.totalorder %s5833_s30, %s5833_s30 }
  0xb7   :  { %p5840_p0 = por %p5839_p13, %p5838_p12 }
  0xb9   :  { %p5841_p1 = pnand %p5840_p0, %p5834_p11 }
  0xbb   :  { %5844 = shalt.err (!%p5841_p1)
}
  0xbc   :  { %97 = dma.hbm_to_vmem [thread:$0]  %s6948_s8, 64, %s95_s13, [#allocation8]  }
  0xbd   :  { %s5986_s26 = smov [#allocation12]   ;;  %s5987_s1 = smov [#allocation15]  }
  0xbe   :  { %s116_s0 = sshll.u32 %s5986_s26, 4  ;;  %s141_s5 = sshll.u32 %s5987_s1, 4  ;;  %s117_s0 = int_to_ptr.vmem [resolvable:$true] %s116_s0  ;;  %s142_s5 = int_to_ptr.vmem [resolvable:$true] %s141_s5 }
  0xbf   :  { %s5845_s19 = scalar_lea.hbm %s6950_s10, 32 }
  0xc0   :  { %p5846_p2 = scmp.ne.s32.totalorder %s6950_s10, %s5845_s19  ;;  %p5849_p3 = scmp.lt.u32.totalorder %s5845_s19, %s6950_s10 }
  0xc2   :  { %p5851_p4 = pnand %p5849_p3, %p5846_p2 }
  0xc4   :  { %5854 = shalt.err (!%p5851_p4)
}
  0xc5   :  { %s5855_s8 = scalar_lea.vmem %s117_s0, 32  ;;  %p5860_p6 = scmp.lt.s32.totalorder %s117_s0, %s117_s0 }
  0xc6   :  { %p5856_p5 = scmp.ne.s32.totalorder %s117_s0, %s5855_s8  ;;  %p5861_p7 = scmp.lt.s32.totalorder %s5855_s8, %s5855_s8 }
  0xc8   :  { %p5862_p8 = por %p5861_p7, %p5860_p6 }
  0xca   :  { %p5863_p9 = pnand %p5862_p8, %p5856_p5 }
  0xcc   :  { %5866 = shalt.err (!%p5863_p9)
}
  0xcd   :  { %119 = dma.hbm_to_vmem [thread:$0]  %s6950_s10, 32, %s117_s0, [#allocation11]  }
  0xce   :  { %s5867_s15 = scalar_lea.hbm %s6954_s14, 1024 }
  0xcf   :  { %p5868_p10 = scmp.ne.s32.totalorder %s6954_s14, %s5867_s15  ;;  %p5871_p11 = scmp.lt.u32.totalorder %s5867_s15, %s6954_s14 }
  0xd1   :  { %p5873_p12 = pnand %p5871_p11, %p5868_p10 }
  0xd3   :  { %5876 = shalt.err (!%p5873_p12)
}
  0xd4   :  { %s5877_s9 = scalar_lea.vmem %s142_s5, 1024  ;;  %p5882_p0 = scmp.lt.s32.totalorder %s142_s5, %s142_s5 }
  0xd5   :  { %p5878_p13 = scmp.ne.s32.totalorder %s142_s5, %s5877_s9  ;;  %p5883_p1 = scmp.lt.s32.totalorder %s5877_s9, %s5877_s9 }
  0xd7   :  { %p5884_p2 = por %p5883_p1, %p5882_p0 }
  0xd9   :  { %p5885_p3 = pnand %p5884_p2, %p5878_p13 }
  0xdb   :  { %5888 = shalt.err (!%p5885_p3)
}
  0xdc   :  { %147 = dma.hbm_to_vmem [thread:$0]  %s6954_s14, 1024, %s142_s5, [#allocation14], %s6989_s25, %s6989_s25, %s6988_s4  }
  0xdd   :  { %s5988_s19 = smov [#allocation18]   ;;  %s5989_s27 = smov [#allocation21]  }
  0xde   :  { %s166_s23 = sshll.u32 %s5988_s19, 4  ;;  %s190_s7 = sshll.u32 %s5989_s27, 4  ;;  %s167_s23 = int_to_ptr.vmem [resolvable:$true] %s166_s23  ;;  %s191_s7 = int_to_ptr.vmem [resolvable:$true] %s190_s7 }
  0xdf   :  { %s5889_s13 = scalar_lea.hbm %s6957_s17, 16 }
  0xe0   :  { %p5890_p4 = scmp.ne.s32.totalorder %s6957_s17, %s5889_s13  ;;  %p5893_p5 = scmp.lt.u32.totalorder %s5889_s13, %s6957_s17 }
  0xe2   :  { %p5895_p6 = pnand %p5893_p5, %p5890_p4 }
  0xe4   :  { %5898 = shalt.err (!%p5895_p6)
}
  0xe5   :  { %s5899_s14 = scalar_lea.vmem %s167_s23, 16  ;;  %s5903_s4 = scalar_lea.vmem %s167_s23, 32 }
  0xe6   :  { %p5900_p7 = scmp.ne.s32.totalorder %s167_s23, %s5899_s14  ;;  %p5904_p8 = scmp.lt.s32.totalorder %s167_s23, %s167_s23 }
  0xe7   :  { %p5905_p9 = scmp.lt.s32.totalorder %s5903_s4, %s5899_s14 }
  0xe9   :  { %p5906_p10 = por %p5905_p9, %p5904_p8 }
  0xeb   :  { %p5907_p11 = pnand %p5906_p10, %p5900_p7 }
  0xed   :  { %5910 = shalt.err (!%p5907_p11)
}
  0xee   :  { %169 = dma.hbm_to_vmem [thread:$0]  %s6957_s17, 16, %s167_s23, [#allocation17]  }
  0xef   :  { %s5911_s1 = scalar_lea.hbm %s6960_s20, 16 }
  0xf0   :  { %p5912_p12 = scmp.ne.s32.totalorder %s6960_s20, %s5911_s1  ;;  %p5915_p13 = scmp.lt.u32.totalorder %s5911_s1, %s6960_s20 }
  0xf2   :  { %p5917_p0 = pnand %p5915_p13, %p5912_p12 }
  0xf4   :  { %5920 = shalt.err (!%p5917_p0)
}
  0xf5   :  { %s5921_s19 = scalar_lea.vmem %s191_s7, 16  ;;  %s5925_s27 = scalar_lea.vmem %s191_s7, 32 }
  0xf6   :  { %p5922_p1 = scmp.ne.s32.totalorder %s191_s7, %s5921_s19  ;;  %p5926_p2 = scmp.lt.s32.totalorder %s191_s7, %s191_s7 }
  0xf7   :  { %p5927_p3 = scmp.lt.s32.totalorder %s5925_s27, %s5921_s19 }
  0xf9   :  { %p5928_p4 = por %p5927_p3, %p5926_p2 }
  0xfb   :  { %p5929_p5 = pnand %p5928_p4, %p5922_p1 }
  0xfd   :  { %5932 = shalt.err (!%p5929_p5)
}
  0xfe   :  { %193 = dma.hbm_to_vmem [thread:$0]  %s6960_s20, 16, %s191_s7, [#allocation20]  }
  0xff   :  { %s5990_s24 = smov [#allocation22]   ;;  %s5933_s3 = scalar_lea.hbm %s6962_s22, 16 }
 0x100   :  { %s202_s8 = sshll.u32 %s5990_s24, 4  ;;  %p5934_p6 = scmp.ne.s32.totalorder %s6962_s22, %s5933_s3  ;;  %s203_s8 = int_to_ptr.vmem [resolvable:$true] %s202_s8 }
 0x101   :  { %p5937_p7 = scmp.lt.u32.totalorder %s5933_s3, %s6962_s22 }
 0x103   :  { %p5939_p8 = pnand %p5937_p7, %p5934_p6 }
 0x105   :  { %5942 = shalt.err (!%p5939_p8)
}
 0x106   :  { %s5943_s25 = scalar_lea.vmem %s203_s8, 16  ;;  %s5947_s20 = scalar_lea.vmem %s203_s8, 32 }
 0x107   :  { %p5944_p9 = scmp.ne.s32.totalorder %s203_s8, %s5943_s25  ;;  %p5948_p10 = scmp.lt.s32.totalorder %s203_s8, %s203_s8 }
 0x108   :  { %p5949_p11 = scmp.lt.s32.totalorder %s5947_s20, %s5943_s25 }
 0x10a   :  { %p5950_p12 = por %p5949_p11, %p5948_p10 }
 0x10c   :  { %p5951_p13 = pnand %p5950_p12, %p5944_p9 }
 0x10e   :  { %5954 = shalt.err (!%p5951_p13)
}
 0x10f   :  { %205 = dma.hbm_to_vmem [thread:$0]  %s6962_s22, 16, %s203_s8, [#allocation23]  }
 0x110   :  { %5955 = dma.done.wait [#allocation3], 128  }
 0x111   :  { %5956 = vsyncadd [#allocation3], 4294967168 }
 0x112   :  { %5957 = dma.done.wait [#allocation5], 96  }
 0x113   :  { %5958 = vsyncadd [#allocation5], 4294967200 }
 0x114   :  { %5959 = dma.done.wait [#allocation8], 16448  }
 0x115   :  { %5960 = vsyncadd [#allocation8], 4294950848 }
 0x116   :  { %5961 = dma.done.wait [#allocation11], 8224  }
 0x117   :  { %5962 = vsyncadd [#allocation11], 4294959072 }
 0x118   :  { %5963 = dma.done.wait [#allocation14], 9216  }
 0x119   :  { %5964 = vsyncadd [#allocation14], 4294958080 }
 0x11a   :  { %5965 = dma.done.wait [#allocation17], 80  }
 0x11b   :  { %5966 = vsyncadd [#allocation17], 4294967216 }
 0x11c   :  { %5967 = dma.done.wait [#allocation20], 2064  }
 0x11d   :  { %5968 = vsyncadd [#allocation20], 4294965232 }
 0x11e   :  { %5969 = dma.done.wait [#allocation23], 16  }
 0x11f   :  { %5970 = vsyncadd [#allocation23], 4294967280  ;;  %v5991_v0 = vmov 0.0   ;;  %v5010_v1 = vld [vmem:[#allocation19 + $0x40] sm:$0xff]   ;;  %v5012_v3 = vld [vmem:[#allocation19 + $0x48] sm:$0xff]   ;;  %s6992_s26 = sld [smem:[#allocation33_spill]] }
 0x120   :  { %4923 = vmatprep.subr.bf16.mxu1 %v5991_v0  ;;  %v5011_v2 = vld [vmem:[#allocation19] sm:$0xff]   ;;  %4806 = vmatprep.subr.bf16.mxu0 %v5010_v1  ;;  %v5013_v4 = vld [vmem:[#allocation19 + $0x8] sm:$0xff]   ;;  %v5014_v5 = vld [vmem:[#allocation19 + $0x50] sm:$0xff]   ;;  %vm5992_vm0 = vmmov 0   ;;  %s6994_s3 = sld [smem:[#allocation32_spill]]  ;;  %s6995_s4 = sld [smem:[#allocation37_spill]] }
 0x121   :  { %4807 = vmatpush3.bf16.msra.mxu0 %v5011_v2  ;;  %v5015_v6 = vld [vmem:[#allocation19 + $0x10] sm:$0xff]   ;;  %v5016_v7 = vld [vmem:[#allocation19 + $0x58] sm:$0xff]   ;;  %v5018_v9 = vld [vmem:[#allocation19 + $0x60] sm:$0xff]   ;;  %4939 = vmatprep.mubr.msk.bf16.mxu1 %vm5992_vm0, %v5991_v0  ;;  %vm548_vm1 = vcmask 130048   ;;  %vm3548_vm2 = vcmask 261120   ;;  %vm4183_vm4 = vcmask 523264  }
 0x122   :  { %4808 = vmatprep.subr.bf16.mxu0 %v5012_v3  ;;  %v5017_v8 = vld [vmem:[#allocation19 + $0x18] sm:$0xff]   ;;  %v5019_v10 = vld [vmem:[#allocation19 + $0x20] sm:$0xff]   ;;  %v5020_v11 = vld [vmem:[#allocation19 + $0x68] sm:$0xff]   ;;  %s5995_s15 = smov 80   ;;  %vm4333_vm8 = vcmask 654336   ;;  %vm4336_vm9 = vcmask 785408  }
 0x123   :  { %v5021_v14 = vld [vmem:[#allocation19 + $0x28] sm:$0xff]   ;;  %v5022_v17 = vld [vmem:[#allocation19 + $0x70] sm:$0xff]   ;;  %v5024_v20 = vld [vmem:[#allocation19 + $0x78] sm:$0xff]   ;;  %vm4339_vm10 = vcmask 916480   ;;  %s6996_s25 = sld [smem:[#allocation40_spill]] }
 0x124   :  { %v5026_v16 = vld [vmem:[%s6961_s21] sm:$0xff]   ;;  %v5027_v18 = vld [vmem:[%s6961_s21 + $0x8] sm:$0xff]   ;;  %v5028_v21 = vld [vmem:[%s6961_s21 + $0x10] sm:$0xff]  }
 0x125   :  { %4809 = vmatpush3.bf16.msra.mxu0 %v5013_v4  ;;  %v252_v12 = vld [vmem:[%s6992_s26 + $0x8] sm:$0xff]  ;;  %v254_v13 = vld [vmem:[%s6992_s26 + $0x18] sm:$0xff]  ;;  %4924 = vmatpush3.bf16.msra.mxu1 %v5026_v16  ;;  %v251_v23 = vld [vmem:[%s6992_s26] sm:$0xff] }
 0x126   :  { %4810 = vmatprep.subr.bf16.mxu0 %v5014_v5  ;;  %v6311_v15 = vpack.c.bf16 %v254_v13, %v252_v12  ;;  %v5023_v19 = vld [vmem:[#allocation19 + $0x30] sm:$0xff]   ;;  %4925 = vmatprep.subr.bf16.mxu1 %v5991_v0  ;;  %v5025_v22 = vld [vmem:[#allocation19 + $0x38] sm:$0xff]   ;;  %v5030_v27 = vld [vmem:[%s6961_s21 + $0x20] sm:$0xff]  }
 0x127   :  { %v253_v24 = vld [vmem:[%s6992_s26 + $0x10] sm:$0xff]  ;;  %v5029_v25 = vld [vmem:[%s6961_s21 + $0x18] sm:$0xff]   ;;  %v5031_v28 = vld [vmem:[%s6961_s21 + $0x28] sm:$0xff]   ;;  %s6993_s26 = sld [smem:[#allocation35_spill]] }
 0x128   :  { %424 = vmatprep.mubr.bf16.mxu0 %v6311_v15  ;;  %v6335_v26 = vpack.c.bf16 %v253_v24, %v251_v23  ;;  %v5032_v29 = vld [vmem:[%s6961_s21 + $0x30] sm:$0xff]   ;;  %v5033_v30 = vld [vmem:[%s6961_s21 + $0x38] sm:$0xff]   ;;  %v6458_v12 = vld [vmem:[%s6994_s3] sm:$0xff] }
 0x129   :  { %4811 = vmatpush3.bf16.msra.mxu0 %v5015_v6  ;;  %4926 = vmatpush3.bf16.msra.mxu1 %v5027_v18  ;;  %v4358_v33 = vld [vmem:[#allocation21] ss:$0 sm:$0xff]  ;;  %v6463_v13 = vld [vmem:[%s6994_s3 + $0x8] sm:$0xff]  ;;  %v5085_v16 = vld [vmem:[%s6995_s4 + $0x4] ss:$16 sps:$4 sm:$0xff]  }
 0x12a   :  { %4812 = vmatprep.subr.bf16.mxu0 %v5016_v7  ;;  %4927 = vmatprep.subr.bf16.mxu1 %v5991_v0  ;;  %v5083_v18 = vld [vmem:[%s6995_s4] ss:$16 sps:$4 sm:$0xff]   ;;  %v5100_v24 = vld [vmem:[%s6995_s4 + $0x4c] ss:$16 sps:$4 sm:$0xff]  }
 0x12b   :  { %v5089_v23 = vld [vmem:[%s6995_s4 + $0x20] ss:$16 sps:$4 sm:$0xff]  }
 0x12d   :  { %4813 = vmatpush3.bf16.msra.mxu0 %v5017_v8  ;;  %4928 = vmatpush3.bf16.msra.mxu1 %v5028_v21  ;;  %v5036_v31 = vld [vmem:[%s6993_s26 + $0x4] ss:$8 sps:$4 sm:$0xff]   ;;  %v5034_v43 = vld [vmem:[%s6993_s26] ss:$8 sps:$4 sm:$0xff]   ;;  %v5039_v45 = vld [vmem:[%s6993_s26 + $0x14] ss:$8 sps:$4 sm:$0xff]  }
 0x12e   :  { %4814 = vmatprep.subr.bf16.mxu0 %v5018_v9  ;;  %4929 = vmatprep.subr.bf16.mxu1 %v5991_v0  ;;  %v5037_v46 = vld [vmem:[%s6993_s26 + $0x10] ss:$8 sps:$4 sm:$0xff]   ;;  %v5042_v47 = vld [vmem:[%s6993_s26 + $0x24] ss:$8 sps:$4 sm:$0xff]   ;;  %v5040_v48 = vld [vmem:[%s6993_s26 + $0x20] ss:$8 sps:$4 sm:$0xff]  }
 0x12f   :  { %v5045_v49 = vld [vmem:[%s6993_s26 + $0x34] ss:$8 sps:$4 sm:$0xff]   ;;  %v5043_v50 = vld [vmem:[%s6993_s26 + $0x30] ss:$8 sps:$4 sm:$0xff]   ;;  %v5048_v51 = vld [vmem:[%s6993_s26 + $0x44] ss:$8 sps:$4 sm:$0xff]  }
 0x130   :  { %v5046_v52 = vld [vmem:[%s6993_s26 + $0x40] ss:$8 sps:$4 sm:$0xff]   ;;  %v5051_v53 = vld [vmem:[%s6993_s26 + $0x54] ss:$8 sps:$4 sm:$0xff]   ;;  %v5049_v54 = vld [vmem:[%s6993_s26 + $0x50] ss:$8 sps:$4 sm:$0xff]  }
 0x131   :  { %4815 = vmatpush3.bf16.msra.mxu0 %v5019_v10  ;;  %4930 = vmatpush3.bf16.msra.mxu1 %v5029_v25  ;;  %v5054_v55 = vld [vmem:[%s6993_s26 + $0x64] ss:$8 sps:$4 sm:$0xff]   ;;  %v5052_v56 = vld [vmem:[%s6993_s26 + $0x60] ss:$8 sps:$4 sm:$0xff]   ;;  %v5057_v57 = vld [vmem:[%s6993_s26 + $0x74] ss:$8 sps:$4 sm:$0xff]  }
 0x132   :  { %4816 = vmatprep.subr.bf16.mxu0 %v5020_v11  ;;  %4931 = vmatprep.subr.bf16.mxu1 %v5991_v0  ;;  %v5055_v58 = vld [vmem:[%s6993_s26 + $0x70] ss:$8 sps:$4 sm:$0xff]   ;;  %v5060_v59 = vld [vmem:[%s6993_s26 + $0x84] ss:$8 sps:$4 sm:$0xff]   ;;  %v5058_v60 = vld [vmem:[%s6993_s26 + $0x80] ss:$8 sps:$4 sm:$0xff]  }
 0x133   :  { %v5063_v61 = vld [vmem:[%s6993_s26 + $0x94] ss:$8 sps:$4 sm:$0xff]   ;;  %v5061_v62 = vld [vmem:[%s6993_s26 + $0x90] ss:$8 sps:$4 sm:$0xff]   ;;  %v5066_v63 = vld [vmem:[%s6993_s26 + $0xa4] ss:$8 sps:$4 sm:$0xff]  }
 0x134   :  { %v5069_v1 = vld [vmem:[%s6993_s26 + $0xb4] ss:$8 sps:$4 sm:$0xff]   ;;  %v5067_v2 = vld [vmem:[%s6993_s26 + $0xb0] ss:$8 sps:$4 sm:$0xff]   ;;  %v5072_v3 = vld [vmem:[%s6993_s26 + $0xc4] ss:$8 sps:$4 sm:$0xff]  }
 0x135   :  { %4817 = vmatpush3.bf16.msra.mxu0 %v5021_v14  ;;  %4932 = vmatpush3.bf16.msra.mxu1 %v5030_v27  ;;  %v5070_v4 = vld [vmem:[%s6993_s26 + $0xc0] ss:$8 sps:$4 sm:$0xff]   ;;  %v5075_v5 = vld [vmem:[%s6993_s26 + $0xd4] ss:$8 sps:$4 sm:$0xff]   ;;  %v5073_v6 = vld [vmem:[%s6993_s26 + $0xd0] ss:$8 sps:$4 sm:$0xff]   ;;  %v571_v14 = vpack.c.bf16 %v6463_v13, %v6458_v12 }
 0x136   :  { %4818 = vmatprep.subr.bf16.mxu0 %v5022_v17  ;;  %4933 = vmatprep.subr.bf16.mxu1 %v5991_v0  ;;  %v5078_v7 = vld [vmem:[%s6993_s26 + $0xe4] ss:$8 sps:$4 sm:$0xff]   ;;  %v5076_v8 = vld [vmem:[%s6993_s26 + $0xe0] ss:$8 sps:$4 sm:$0xff]   ;;  %v5081_v9 = vld [vmem:[%s6993_s26 + $0xf4] ss:$8 sps:$4 sm:$0xff]  }
 0x137   :  { %v5079_v10 = vld [vmem:[%s6993_s26 + $0xf0] ss:$8 sps:$4 sm:$0xff]   ;;  %v5082_v11 = vld [vmem:[#allocation2] sm:$0xff]   ;;  %v5094_v21 = vld [vmem:[%s6995_s4 + $0x2c] ss:$16 sps:$4 sm:$0xff]  }
 0x138   :  { %v5086_v17 = vld [vmem:[%s6995_s4 + $0x8] ss:$16 sps:$4 sm:$0xff]   ;;  %v5097_v25 = vld [vmem:[%s6995_s4 + $0x44] ss:$16 sps:$4 sm:$0xff]  }
 0x139   :  { %4819 = vmatpush3.bf16.msra.mxu0 %v5023_v19  ;;  %4934 = vmatpush3.bf16.msra.mxu1 %v5031_v28  ;;  %v5088_v19 = vld [vmem:[%s6995_s4 + $0xc] ss:$16 sps:$4 sm:$0xff]   ;;  %v5098_v27 = vld [vmem:[%s6995_s4 + $0x48] ss:$16 sps:$4 sm:$0xff]   ;;  %v5095_v28 = vld [vmem:[%s6995_s4 + $0x40] ss:$16 sps:$4 sm:$0xff]  }
 0x13a   :  { %4820 = vmatprep.subr.bf16.mxu0 %v5024_v20  ;;  %4935 = vmatprep.subr.bf16.mxu1 %v5991_v0  ;;  %v5091_v20 = vld [vmem:[%s6995_s4 + $0x24] ss:$16 sps:$4 sm:$0xff]  }
 0x13d   :  { %4821 = vmatpush3.bf16.msra.mxu0 %v5025_v22  ;;  %4936 = vmatpush3.bf16.msra.mxu1 %v5032_v29  ;;  %v5092_v22 = vld [vmem:[%s6995_s4 + $0x28] ss:$16 sps:$4 sm:$0xff]   ;;  %v5106_v29 = vld [vmem:[%s6995_s4 + $0x6c] ss:$16 sps:$4 sm:$0xff]  }
 0x13e   :  { %4943 = vmatprep.subr.bf16.mxu0 %v5991_v0  ;;  %4937 = vmatprep.subr.bf16.mxu1 %v5991_v0 }
 0x140   :  { %425 = vmatmul.mubr.bf16.vlgmr.msra.gmra.mrb[0].mxu0 %v6335_v26 }
 0x141   :  { %4938 = vmatpush3.bf16.msra.mxu1 %v5033_v30  ;;  %4945 = vmatprep.mubr.msk.bf16.mxu0 %vm5992_vm0, %v5991_v0  ;;  %v5064_v0 = vld [vmem:[%s6993_s26 + $0xa0] ss:$8 sps:$4 sm:$0xff]   ;;  %v5103_v30 = vld [vmem:[%s6995_s4 + $0x64] ss:$16 sps:$4 sm:$0xff]  }
 0x142   :  { %838 = vmatprep.subr.bf16.mxu1 %v5036_v31  ;;  %4944 = vmatpush3.bf16.msra.mxu0 %v5082_v11  ;;  %v5104_v31 = vld [vmem:[%s6995_s4 + $0x68] ss:$16 sps:$4 sm:$0xff]  }
 0x143   :  { %1293 = vmatprep.subr.bf16.mxu0 %v5085_v16  ;;  %v5167_v11 = vld [vmem:[%s6995_s4 + $0x1c8] ss:$16 sps:$4 sm:$0xff]   ;;  %v5170_v16 = vld [vmem:[%s6995_s4 + $0x1c0] ss:$16 sps:$4 sm:$0xff]  }
 0x148   :  { %4946 = vmatmul.mubr.msk.bf16.vlgmr.msra.gmra.mrb[4].mxu0 %vm548_vm1, %v571_v14  ;;  %v624_v14 = vsel %vm548_vm1, %v6458_v12, 0.0  ;;  %v5173_v12 = vld [vmem:[%s6995_s4 + $0x1e8] ss:$16 sps:$4 sm:$0xff]  }
 0x149   :  { %1294 = vmatpush1.bf16.msra.mxu0 %v5083_v18  ;;  %625 = vadd.xlane.f32.xlu0 %v624_v14  ;;  %v5178_v18 = vld [vmem:[%s6995_s4 + $0x1e4] ss:$16 sps:$4 sm:$0xff]  }
 0x14a   :  { %1295 = vmatprep.subr.bf16.mxu0 %v5091_v20  ;;  %v5176_v20 = vld [vmem:[%s6995_s4 + $0x1e0] ss:$16 sps:$4 sm:$0xff]  }
 0x14b   :  { %v5217_v14 = vld [vmem:[#allocation7 + $0xc4] ss:$16 sps:$4 sm:$0xff]  }
 0x14d   :  { %1296 = vmatpush1.bf16.msra.mxu0 %v5089_v23 }
 0x14e   :  { %1297 = vmatprep.subr.bf16.mxu0 %v5097_v25 }
 0x151   :  { %1298 = vmatpush1.bf16.msra.mxu0 %v5095_v28 }
 0x152   :  { %1299 = vmatprep.subr.bf16.mxu0 %v5103_v30  ;;  %v666_v30 = vld [vmem:[#allocation4] sm:$0x3] }
 0x213   :  { %v4822_v32 = vpop.f32.mrb[0].mxu0 }
 0x214   :  { %v4823_v34 = vpop.f32.mrb[1].mxu0 }
 0x215   :  { %v4824_v35 = vadd.f32 %v4823_v34, %v4822_v32  ;;  %v4825_v36 = vpop.f32.mrb[2].mxu0  ;;  %v5101_v32 = vld [vmem:[%s6995_s4 + $0x60] ss:$16 sps:$4 sm:$0xff]   ;;  %v5109_v34 = vld [vmem:[%s6995_s4 + $0x84] ss:$16 sps:$4 sm:$0xff]  }
 0x216   :  { %v4826_v37 = vpop.f32.mrb[3].mxu0  ;;  %1300 = vmatpush1.bf16.msra.mxu0 %v5101_v32 }
 0x217   :  { %v427_v38 = vadd.f32 %v4824_v35, %v4358_v33  ;;  %v4827_v39 = vadd.f32 %v4826_v37, %v4825_v36  ;;  %v5110_v35 = vld [vmem:[%s6995_s4 + $0x88] ss:$16 sps:$4 sm:$0xff]   ;;  %v5107_v36 = vld [vmem:[%s6995_s4 + $0x80] ss:$16 sps:$4 sm:$0xff]   ;;  %v5118_v37 = vld [vmem:[%s6995_s4 + $0xac] ss:$16 sps:$4 sm:$0xff]   ;;  %1301 = vmatprep.subr.bf16.mxu0 %v5109_v34 }
 0x219   :  { %v430_v40 = vadd.f32 %v4827_v39, %v4358_v33  ;;  %v433_v41 = vmax.f32 %v427_v38, 0.0  ;;  %v5112_v33 = vld [vmem:[%s6995_s4 + $0x8c] ss:$16 sps:$4 sm:$0xff]   ;;  %v5115_v38 = vld [vmem:[%s6995_s4 + $0xa4] ss:$16 sps:$4 sm:$0xff]  }
 0x21a   :  { %v5116_v39 = vld [vmem:[%s6995_s4 + $0xa8] ss:$16 sps:$4 sm:$0xff]   ;;  %1302 = vmatpush1.bf16.msra.mxu0 %v5107_v36 }
 0x21b   :  { %v434_v42 = vmax.f32 %v430_v40, 0.0  ;;  %v5113_v40 = vld [vmem:[%s6995_s4 + $0xa0] ss:$16 sps:$4 sm:$0xff]   ;;  %1303 = vmatprep.subr.bf16.mxu0 %v5115_v38 }
 0x21d   :  { %v435_v44 = vpack.c.bf16 %v434_v42, %v433_v41  ;;  %v5124_v41 = vld [vmem:[%s6995_s4 + $0xcc] ss:$16 sps:$4 sm:$0xff]   ;;  %v5121_v42 = vld [vmem:[%s6995_s4 + $0xc4] ss:$16 sps:$4 sm:$0xff]  }
 0x21e   :  { %1304 = vmatpush1.bf16.msra.mxu0 %v5113_v40 }
 0x21f   :  { %4940 = vmatmul.mubr.bf16.vlgmr.msra.gmra.mrb[0].mxu1 %v435_v44  ;;  %v5119_v44 = vld [vmem:[%s6995_s4 + $0xc0] ss:$16 sps:$4 sm:$0xff]   ;;  %1305 = vmatprep.subr.bf16.mxu0 %v5121_v42 }
 0x220   :  { %839 = vmatpush1.bf16.msra.mxu1 %v5034_v43  ;;  %870 = vmatprep.mubr.bf16.mxu1 %v6311_v15  ;;  %v5122_v43 = vld [vmem:[%s6995_s4 + $0xc8] ss:$16 sps:$4 sm:$0xff]  }
 0x221   :  { %840 = vmatprep.subr.bf16.mxu1 %v5039_v45  ;;  %v5130_v45 = vld [vmem:[%s6995_s4 + $0xec] ss:$16 sps:$4 sm:$0xff]  }
 0x222   :  { %1306 = vmatpush1.bf16.msra.mxu0 %v5119_v44 }
 0x224   :  { %841 = vmatpush1.bf16.msra.mxu1 %v5037_v46  ;;  %v5127_v46 = vld [vmem:[%s6995_s4 + $0xe4] ss:$16 sps:$4 sm:$0xff]  }
 0x225   :  { %842 = vmatprep.subr.bf16.mxu1 %v5042_v47  ;;  %v5128_v47 = vld [vmem:[%s6995_s4 + $0xe8] ss:$16 sps:$4 sm:$0xff]   ;;  %1307 = vmatprep.subr.bf16.mxu0 %v5127_v46 }
 0x228   :  { %843 = vmatpush1.bf16.msra.mxu1 %v5040_v48  ;;  %v5125_v48 = vld [vmem:[%s6995_s4 + $0xe0] ss:$16 sps:$4 sm:$0xff]  }
 0x229   :  { %844 = vmatprep.subr.bf16.mxu1 %v5045_v49  ;;  %v5136_v49 = vld [vmem:[%s6995_s4 + $0x10c] ss:$16 sps:$4 sm:$0xff]   ;;  %1308 = vmatpush1.bf16.msra.mxu0 %v5125_v48 }
 0x22a   :  { %v5179_v48 = vld [vmem:[#allocation7] ss:$16 sps:$4 sm:$0xff]  }
 0x22c   :  { %845 = vmatpush1.bf16.msra.mxu1 %v5043_v50  ;;  %v5133_v50 = vld [vmem:[%s6995_s4 + $0x104] ss:$16 sps:$4 sm:$0xff]  }
 0x22d   :  { %846 = vmatprep.subr.bf16.mxu1 %v5048_v51  ;;  %v5134_v51 = vld [vmem:[%s6995_s4 + $0x108] ss:$16 sps:$4 sm:$0xff]   ;;  %1309 = vmatprep.subr.bf16.mxu0 %v5133_v50  ;;  %v5187_v50 = vld [vmem:[#allocation7 + $0x24] ss:$16 sps:$4 sm:$0xff]  }
 0x230   :  { %847 = vmatpush1.bf16.msra.mxu1 %v5046_v52  ;;  %v5131_v52 = vld [vmem:[%s6995_s4 + $0x100] ss:$16 sps:$4 sm:$0xff]  }
 0x231   :  { %848 = vmatprep.subr.bf16.mxu1 %v5051_v53  ;;  %v5142_v53 = vld [vmem:[%s6995_s4 + $0x12c] ss:$16 sps:$4 sm:$0xff]   ;;  %1310 = vmatpush1.bf16.msra.mxu0 %v5131_v52 }
 0x232   :  { %v5185_v52 = vld [vmem:[#allocation7 + $0x20] ss:$16 sps:$4 sm:$0xff]  }
 0x234   :  { %849 = vmatpush1.bf16.msra.mxu1 %v5049_v54  ;;  %v5139_v54 = vld [vmem:[%s6995_s4 + $0x124] ss:$16 sps:$4 sm:$0xff]  }
 0x235   :  { %850 = vmatprep.subr.bf16.mxu1 %v5054_v55  ;;  %v5140_v55 = vld [vmem:[%s6995_s4 + $0x128] ss:$16 sps:$4 sm:$0xff]   ;;  %1311 = vmatprep.subr.bf16.mxu0 %v5139_v54  ;;  %v5193_v54 = vld [vmem:[#allocation7 + $0x44] ss:$16 sps:$4 sm:$0xff]  }
 0x238   :  { %851 = vmatpush1.bf16.msra.mxu1 %v5052_v56  ;;  %v5137_v56 = vld [vmem:[%s6995_s4 + $0x120] ss:$16 sps:$4 sm:$0xff]  }
 0x239   :  { %852 = vmatprep.subr.bf16.mxu1 %v5057_v57  ;;  %v5148_v57 = vld [vmem:[%s6995_s4 + $0x14c] ss:$16 sps:$4 sm:$0xff]   ;;  %1312 = vmatpush1.bf16.msra.mxu0 %v5137_v56  ;;  %v626_v56 = vpop.xlane.xlu0 %625 }
 0x23a   :  { %5627 = vrcp.f32 %v626_v56  ;;  %v5265_v56 = vld [vmem:[#allocation7 + $0x1c4] ss:$16 sps:$4 sm:$0xff]  }
 0x23c   :  { %853 = vmatpush1.bf16.msra.mxu1 %v5055_v58  ;;  %v5145_v58 = vld [vmem:[%s6995_s4 + $0x144] ss:$16 sps:$4 sm:$0xff]  }
 0x23d   :  { %854 = vmatprep.subr.bf16.mxu1 %v5060_v59  ;;  %v5146_v59 = vld [vmem:[%s6995_s4 + $0x148] ss:$16 sps:$4 sm:$0xff]   ;;  %1313 = vmatprep.subr.bf16.mxu0 %v5145_v58 }
 0x23e   :  { %v5194_v58 = vld [vmem:[#allocation7 + $0x48] ss:$16 sps:$4 sm:$0xff]  }
 0x240   :  { %855 = vmatpush1.bf16.msra.mxu1 %v5058_v60  ;;  %v5143_v60 = vld [vmem:[%s6995_s4 + $0x140] ss:$16 sps:$4 sm:$0xff]  }
 0x241   :  { %856 = vmatprep.subr.bf16.mxu1 %v5063_v61  ;;  %v5154_v61 = vld [vmem:[%s6995_s4 + $0x16c] ss:$16 sps:$4 sm:$0xff]   ;;  %1314 = vmatpush1.bf16.msra.mxu0 %v5143_v60 }
 0x242   :  { %v5202_v60 = vld [vmem:[#allocation7 + $0x6c] ss:$16 sps:$4 sm:$0xff]  }
 0x244   :  { %857 = vmatpush1.bf16.msra.mxu1 %v5061_v62  ;;  %v5151_v62 = vld [vmem:[%s6995_s4 + $0x164] ss:$16 sps:$4 sm:$0xff]  }
 0x245   :  { %858 = vmatprep.subr.bf16.mxu1 %v5066_v63  ;;  %v5152_v63 = vld [vmem:[%s6995_s4 + $0x168] ss:$16 sps:$4 sm:$0xff]   ;;  %1315 = vmatprep.subr.bf16.mxu0 %v5151_v62  ;;  %v5197_v62 = vld [vmem:[#allocation7 + $0x60] ss:$16 sps:$4 sm:$0xff]  }
 0x248   :  { %859 = vmatpush1.bf16.msra.mxu1 %v5064_v0  ;;  %v5149_v0 = vld [vmem:[%s6995_s4 + $0x160] ss:$16 sps:$4 sm:$0xff]  }
 0x249   :  { %860 = vmatprep.subr.bf16.mxu1 %v5069_v1  ;;  %v5160_v1 = vld [vmem:[%s6995_s4 + $0x18c] ss:$16 sps:$4 sm:$0xff]   ;;  %1316 = vmatpush1.bf16.msra.mxu0 %v5149_v0  ;;  %v5205_v0 = vld [vmem:[#allocation7 + $0x84] ss:$16 sps:$4 sm:$0xff]  }
 0x24c   :  { %861 = vmatpush1.bf16.msra.mxu1 %v5067_v2  ;;  %v5157_v2 = vld [vmem:[%s6995_s4 + $0x184] ss:$16 sps:$4 sm:$0xff]  }
 0x24d   :  { %862 = vmatprep.subr.bf16.mxu1 %v5072_v3  ;;  %v5158_v3 = vld [vmem:[%s6995_s4 + $0x188] ss:$16 sps:$4 sm:$0xff]   ;;  %1317 = vmatprep.subr.bf16.mxu0 %v5157_v2  ;;  %v5203_v2 = vld [vmem:[#allocation7 + $0x80] ss:$16 sps:$4 sm:$0xff]  }
 0x250   :  { %863 = vmatpush1.bf16.msra.mxu1 %v5070_v4  ;;  %v5155_v4 = vld [vmem:[%s6995_s4 + $0x180] ss:$16 sps:$4 sm:$0xff]  }
 0x251   :  { %864 = vmatprep.subr.bf16.mxu1 %v5075_v5  ;;  %v5166_v5 = vld [vmem:[%s6995_s4 + $0x1ac] ss:$16 sps:$4 sm:$0xff]   ;;  %1318 = vmatpush1.bf16.msra.mxu0 %v5155_v4  ;;  %v5211_v4 = vld [vmem:[#allocation7 + $0xa4] ss:$16 sps:$4 sm:$0xff]  }
 0x254   :  { %865 = vmatpush1.bf16.msra.mxu1 %v5073_v6  ;;  %v5163_v6 = vld [vmem:[%s6995_s4 + $0x1a4] ss:$16 sps:$4 sm:$0xff]  }
 0x255   :  { %866 = vmatprep.subr.bf16.mxu1 %v5078_v7  ;;  %v5164_v7 = vld [vmem:[%s6995_s4 + $0x1a8] ss:$16 sps:$4 sm:$0xff]   ;;  %1319 = vmatprep.subr.bf16.mxu0 %v5163_v6  ;;  %v5628_v6 = vpop.eup %5627 }
 0x258   :  { %867 = vmatpush1.bf16.msra.mxu1 %v5076_v8  ;;  %v5161_v8 = vld [vmem:[%s6995_s4 + $0x1a0] ss:$16 sps:$4 sm:$0xff]  }
 0x259   :  { %868 = vmatprep.subr.bf16.mxu1 %v5081_v9  ;;  %1320 = vmatpush1.bf16.msra.mxu0 %v5161_v8  ;;  %v5169_v9 = vld [vmem:[%s6995_s4 + $0x1cc] ss:$16 sps:$4 sm:$0xff]  }
 0x25c   :  { %869 = vmatpush1.bf16.msra.mxu1 %v5079_v10  ;;  %v5172_v10 = vld [vmem:[%s6995_s4 + $0x1c4] ss:$16 sps:$4 sm:$0xff]  }
 0x25d   :  { %1336 = vmatprep.subr.bf16.mxu1 %v5088_v19  ;;  %1321 = vmatprep.subr.bf16.mxu0 %v5172_v10  ;;  %v627_v19 = vsel %vm548_vm1, %v6463_v13, 0.0  ;;  %v668_v13 = vlaneseq  ;;  %v5212_v10 = vld [vmem:[#allocation7 + $0xa8] ss:$16 sps:$4 sm:$0xff]  }
 0x25e   :  { %1322 = vmatpush1.bf16.msra.mxu0 %v5170_v16  ;;  %628 = vadd.xlane.f32.xlu0 %v627_v19  ;;  %v5220_v16 = vld [vmem:[#allocation7 + $0xcc] ss:$16 sps:$4 sm:$0xff]  }
 0x25f   :  { %871 = vmatmul.mubr.bf16.vlgmr.msra.gmra.mrb[4].mxu1 %v6335_v26  ;;  %1323 = vmatprep.subr.bf16.mxu0 %v5178_v18  ;;  %v6668_v28 = vshrl.u32 %v668_v13, 7  ;;  %v5221_v13 = vld [vmem:[#allocation7 + $0xe0] ss:$16 sps:$4 sm:$0xff]  }
 0x260   :  { %1337 = vmatpush1.bf16.msra.mxu1 %v5086_v17  ;;  %v5175_v17 = vld [vmem:[%s6995_s4 + $0x1ec] ss:$16 sps:$4 sm:$0xff]  }
 0x261   :  { %1338 = vmatprep.subr.bf16.mxu1 %v5094_v21  ;;  %v5181_v21 = vld [vmem:[#allocation7 + $0x4] ss:$16 sps:$4 sm:$0xff]  }
 0x262   :  { %1324 = vmatpush1.bf16.msra.mxu0 %v5176_v20  ;;  %v5215_v20 = vld [vmem:[#allocation7 + $0xc0] ss:$16 sps:$4 sm:$0xff]  }
 0x263   :  { %2181 = vmatprep.subr.bf16.mxu0 %v5181_v21  ;;  %v5218_v21 = vld [vmem:[#allocation7 + $0xc8] ss:$16 sps:$4 sm:$0xff]  }
 0x264   :  { %1339 = vmatpush1.bf16.msra.mxu1 %v5092_v22  ;;  %v5184_v22 = vld [vmem:[#allocation7 + $0xc] ss:$16 sps:$4 sm:$0xff]  }
 0x265   :  { %1340 = vmatprep.subr.bf16.mxu1 %v5100_v24 }
 0x268   :  { %1341 = vmatpush1.bf16.msra.mxu1 %v5098_v27 }
 0x269   :  { %1342 = vmatprep.subr.bf16.mxu1 %v5106_v29  ;;  %v6671_v29 = vsub.s32 0, %v6668_v28 }
 0x26b   :  { %v671_v32 = vrot.slane %v666_v30, %v6671_v29 }
 0x26c   :  { %1343 = vmatpush1.bf16.msra.mxu1 %v5104_v31  ;;  %v6674_v31 = vsub.s32 1, %v6668_v28 }
 0x26d   :  { %1344 = vmatprep.subr.bf16.mxu1 %v5112_v33 }
 0x26e   :  { %v675_v33 = vrot.slane %v666_v30, %v6674_v31  ;;  %v5224_v30 = vld [vmem:[#allocation7 + $0xe8] ss:$16 sps:$4 sm:$0xff]  }
 0x270   :  { %1345 = vmatpush1.bf16.msra.mxu1 %v5110_v35 }
 0x271   :  { %1346 = vmatprep.subr.bf16.mxu1 %v5118_v37 }
 0x274   :  { %1347 = vmatpush1.bf16.msra.mxu1 %v5116_v39 }
 0x275   :  { %1348 = vmatprep.subr.bf16.mxu1 %v5124_v41 }
 0x278   :  { %1349 = vmatpush1.bf16.msra.mxu1 %v5122_v43 }
 0x279   :  { %1350 = vmatprep.subr.bf16.mxu1 %v5130_v45 }
 0x27c   :  { %1351 = vmatpush1.bf16.msra.mxu1 %v5128_v47 }
 0x27d   :  { %1352 = vmatprep.subr.bf16.mxu1 %v5136_v49  ;;  %v5182_v49 = vld [vmem:[#allocation7 + $0x8] ss:$16 sps:$4 sm:$0xff]  }
 0x280   :  { %1353 = vmatpush1.bf16.msra.mxu1 %v5134_v51  ;;  %v5190_v51 = vld [vmem:[#allocation7 + $0x2c] ss:$16 sps:$4 sm:$0xff]  }
 0x281   :  { %1354 = vmatprep.subr.bf16.mxu1 %v5142_v53  ;;  %v5188_v53 = vld [vmem:[#allocation7 + $0x28] ss:$16 sps:$4 sm:$0xff]  }
 0x284   :  { %1355 = vmatpush1.bf16.msra.mxu1 %v5140_v55  ;;  %v5196_v55 = vld [vmem:[#allocation7 + $0x4c] ss:$16 sps:$4 sm:$0xff]  }
 0x285   :  { %1356 = vmatprep.subr.bf16.mxu1 %v5148_v57  ;;  %v5191_v57 = vld [vmem:[#allocation7 + $0x40] ss:$16 sps:$4 sm:$0xff]  }
 0x288   :  { %1357 = vmatpush1.bf16.msra.mxu1 %v5146_v59  ;;  %v5199_v59 = vld [vmem:[#allocation7 + $0x64] ss:$16 sps:$4 sm:$0xff]  }
 0x289   :  { %1358 = vmatprep.subr.bf16.mxu1 %v5154_v61 }
 0x28c   :  { %1359 = vmatpush1.bf16.msra.mxu1 %v5152_v63  ;;  %v5200_v63 = vld [vmem:[#allocation7 + $0x68] ss:$16 sps:$4 sm:$0xff]  }
 0x28d   :  { %1360 = vmatprep.subr.bf16.mxu1 %v5160_v1  ;;  %v5208_v1 = vld [vmem:[#allocation7 + $0x8c] ss:$16 sps:$4 sm:$0xff]  }
 0x290   :  { %1361 = vmatpush1.bf16.msra.mxu1 %v5158_v3  ;;  %v5206_v3 = vld [vmem:[#allocation7 + $0x88] ss:$16 sps:$4 sm:$0xff]  }
 0x291   :  { %1362 = vmatprep.subr.bf16.mxu1 %v5166_v5  ;;  %v5214_v5 = vld [vmem:[#allocation7 + $0xac] ss:$16 sps:$4 sm:$0xff]  }
 0x294   :  { %1363 = vmatpush1.bf16.msra.mxu1 %v5164_v7  ;;  %v617_v7 = vpop.f32.mrb[4].mxu0 }
 0x295   :  { %1364 = vmatprep.subr.bf16.mxu1 %v5169_v9  ;;  %v4947_v8 = vpop.f32.mrb[5].mxu0  ;;  %v5209_v9 = vld [vmem:[#allocation7 + $0xa0] ss:$16 sps:$4 sm:$0xff]  }
 0x298   :  { %1365 = vmatpush1.bf16.msra.mxu1 %v5167_v11  ;;  %v620_v11 = vpop.f32.mrb[6].mxu0 }
 0x299   :  { %1366 = vmatprep.subr.bf16.mxu1 %v5175_v17  ;;  %v632_v17 = vmul.f32 %v5628_v6, %v617_v7  ;;  %v4948_v18 = vpop.f32.mrb[7].mxu0 }
 0x29c   :  { %1367 = vmatpush1.bf16.msra.mxu1 %v5173_v12 }
 0x29d   :  { %2267 = vmatprep.subr.bf16.mxu1 %v5184_v22  ;;  %v5223_v22 = vld [vmem:[#allocation7 + $0xe4] ss:$16 sps:$4 sm:$0xff]  }
 0x2eb   :  { %v629_v61 = vpop.xlane.xlu0 %628 }
 0x2ec   :  { %5629 = vrcp.f32 %v629_v61  ;;  %v5274_v61 = vld [vmem:[#allocation7 + $0x1ec] ss:$16 sps:$4 sm:$0xff]  }
 0x2f2   :  { %v6664_v23 = vpop.f32.mrb[0].mxu1 }
 0x2f3   :  { %v4941_v24 = vpop.f32.mrb[1].mxu1 }
 0x2f4   :  { %v6666_v25 = vpop.f32.mrb[2].mxu1  ;;  %v5226_v24 = vld [vmem:[#allocation7 + $0xec] ss:$16 sps:$4 sm:$0xff]  }
 0x2f5   :  { %v4942_v27 = vpop.f32.mrb[3].mxu1 }
 0x2f6   :  { %v5630_v12 = vpop.eup %5629 }
 0x2f7   :  { %v633_v19 = vmul.f32 %v5630_v12, %v620_v11 }
 0x2f9   :  { %v6678_v27 = vpack.c.bf16 %v633_v19, %v632_v17 }
 0x332   :  { %v872_v34 = vpop.f32.mrb[4].mxu1 }
 0x333   :  { %v873_v35 = vadd.f32 %v872_v34, %v671_v32  ;;  %v874_v36 = vpop.f32.mrb[5].mxu1  ;;  %v5227_v34 = vld [vmem:[#allocation7 + $0x100] ss:$16 sps:$4 sm:$0xff]  }
 0x334   :  { %v875_v37 = vadd.f32 %v874_v36, %v675_v33  ;;  %v876_v38 = vpop.f32.mrb[6].mxu1  ;;  %v5235_v36 = vld [vmem:[#allocation7 + $0x124] ss:$16 sps:$4 sm:$0xff]  }
 0x335   :  { %v877_v39 = vadd.f32 %v876_v38, %v671_v32  ;;  %v878_v40 = vpop.f32.mrb[7].mxu1  ;;  %v881_v42 = vmax.f32 %v873_v35, 0.0  ;;  %v5229_v32 = vld [vmem:[#allocation7 + $0x104] ss:$16 sps:$4 sm:$0xff]   ;;  %v5230_v35 = vld [vmem:[#allocation7 + $0x108] ss:$16 sps:$4 sm:$0xff]  }
 0x336   :  { %v879_v41 = vadd.f32 %v878_v40, %v675_v33  ;;  %v882_v44 = vmax.f32 %v875_v37, 0.0  ;;  %v5232_v33 = vld [vmem:[#allocation7 + $0x10c] ss:$16 sps:$4 sm:$0xff]   ;;  %v5233_v38 = vld [vmem:[#allocation7 + $0x120] ss:$16 sps:$4 sm:$0xff]  }
 0x337   :  { %v883_v43 = vmax.f32 %v877_v39, 0.0  ;;  %v5238_v37 = vld [vmem:[#allocation7 + $0x12c] ss:$16 sps:$4 sm:$0xff]   ;;  %v5236_v39 = vld [vmem:[#allocation7 + $0x128] ss:$16 sps:$4 sm:$0xff]  }
 0x338   :  { %v884_v45 = vmax.f32 %v879_v41, 0.0  ;;  %v5241_v40 = vld [vmem:[#allocation7 + $0x144] ss:$16 sps:$4 sm:$0xff]   ;;  %v5244_v41 = vld [vmem:[#allocation7 + $0x14c] ss:$16 sps:$4 sm:$0xff]  }
 0x339   :  { %v885_v46 = vpack.c.bf16 %v883_v43, %v881_v42  ;;  %v5239_v42 = vld [vmem:[#allocation7 + $0x140] ss:$16 sps:$4 sm:$0xff]   ;;  %v5242_v43 = vld [vmem:[#allocation7 + $0x148] ss:$16 sps:$4 sm:$0xff]  }
 0x33a   :  { %v886_v47 = vpack.c.bf16 %v884_v45, %v882_v44  ;;  %v5247_v44 = vld [vmem:[#allocation7 + $0x164] ss:$16 sps:$4 sm:$0xff]   ;;  %v5250_v45 = vld [vmem:[#allocation7 + $0x16c] ss:$16 sps:$4 sm:$0xff]  }
 0x33c   :  { %1325 = vmatprep.mubr.bf16.mxu0 %v886_v47  ;;  %1368 = vmatprep.mubr.bf16.mxu1 %v886_v47  ;;  %v5248_v47 = vld [vmem:[#allocation7 + $0x168] ss:$16 sps:$4 sm:$0xff]  }
 0x33d   :  { %1326 = vmatmul.mubr.bf16.vlgmr.msra.gmra.mrb[8].mxu0 %v885_v46  ;;  %1369 = vmatmul.mubr.bf16.vlgmr.msra.gmra.mrb[8].mxu1 %v885_v46  ;;  %v5245_v46 = vld [vmem:[#allocation7 + $0x160] ss:$16 sps:$4 sm:$0xff]  }
 0x33e   :  { %2182 = vmatpush1.bf16.msra.mxu0 %v5179_v48  ;;  %2268 = vmatpush1.bf16.msra.mxu1 %v5182_v49  ;;  %v5253_v48 = vld [vmem:[#allocation7 + $0x184] ss:$16 sps:$4 sm:$0xff]   ;;  %v5256_v49 = vld [vmem:[#allocation7 + $0x18c] ss:$16 sps:$4 sm:$0xff]  }
 0x33f   :  { %2183 = vmatprep.subr.bf16.mxu0 %v5187_v50  ;;  %2269 = vmatprep.subr.bf16.mxu1 %v5190_v51  ;;  %v5251_v50 = vld [vmem:[#allocation7 + $0x180] ss:$16 sps:$4 sm:$0xff]   ;;  %v5254_v51 = vld [vmem:[#allocation7 + $0x188] ss:$16 sps:$4 sm:$0xff]  }
 0x342   :  { %2184 = vmatpush1.bf16.msra.mxu0 %v5185_v52  ;;  %2270 = vmatpush1.bf16.msra.mxu1 %v5188_v53  ;;  %v5259_v52 = vld [vmem:[#allocation7 + $0x1a4] ss:$16 sps:$4 sm:$0xff]   ;;  %v5262_v53 = vld [vmem:[#allocation7 + $0x1ac] ss:$16 sps:$4 sm:$0xff]  }
 0x343   :  { %2185 = vmatprep.subr.bf16.mxu0 %v5193_v54  ;;  %2271 = vmatprep.subr.bf16.mxu1 %v5196_v55  ;;  %v5257_v54 = vld [vmem:[#allocation7 + $0x1a0] ss:$16 sps:$4 sm:$0xff]   ;;  %v5260_v55 = vld [vmem:[#allocation7 + $0x1a8] ss:$16 sps:$4 sm:$0xff]  }
 0x346   :  { %2186 = vmatpush1.bf16.msra.mxu0 %v5191_v57  ;;  %2272 = vmatpush1.bf16.msra.mxu1 %v5194_v58  ;;  %v5268_v57 = vld [vmem:[#allocation7 + $0x1cc] ss:$16 sps:$4 sm:$0xff]   ;;  %v5263_v58 = vld [vmem:[#allocation7 + $0x1c0] ss:$16 sps:$4 sm:$0xff]  }
 0x347   :  { %2187 = vmatprep.subr.bf16.mxu0 %v5199_v59  ;;  %2273 = vmatprep.subr.bf16.mxu1 %v5202_v60  ;;  %v5266_v59 = vld [vmem:[#allocation7 + $0x1c8] ss:$16 sps:$4 sm:$0xff]   ;;  %v5271_v60 = vld [vmem:[#allocation7 + $0x1e4] ss:$16 sps:$4 sm:$0xff]  }
 0x34a   :  { %2188 = vmatpush1.bf16.msra.mxu0 %v5197_v62  ;;  %2274 = vmatpush1.bf16.msra.mxu1 %v5200_v63  ;;  %v5269_v62 = vld [vmem:[#allocation7 + $0x1e0] ss:$16 sps:$4 sm:$0xff]   ;;  %v5272_v63 = vld [vmem:[#allocation7 + $0x1e8] ss:$16 sps:$4 sm:$0xff]  }
 0x34b   :  { %2189 = vmatprep.subr.bf16.mxu0 %v5205_v0  ;;  %2275 = vmatprep.subr.bf16.mxu1 %v5208_v1  ;;  %v5277_v0 = vld [vmem:[#allocation7 + $0x204] ss:$16 sps:$4 sm:$0xff]   ;;  %v5280_v1 = vld [vmem:[#allocation7 + $0x20c] ss:$16 sps:$4 sm:$0xff]  }
 0x34e   :  { %2190 = vmatpush1.bf16.msra.mxu0 %v5203_v2  ;;  %2276 = vmatpush1.bf16.msra.mxu1 %v5206_v3  ;;  %v6681_v2 = vsub.s32 2, %v6668_v28  ;;  %v951_v3 = vld [vmem:[#allocation6] sm:$0xf] }
 0x34f   :  { %2191 = vmatprep.subr.bf16.mxu0 %v5211_v4  ;;  %2277 = vmatprep.subr.bf16.mxu1 %v5214_v5  ;;  %v6684_v4 = vsub.s32 3, %v6668_v28  ;;  %v956_v5 = vrot.slane %v951_v3, %v6671_v29  ;;  %v960_v7 = vrot.slane %v951_v3, %v6674_v31 }
 0x350   :  { %v964_v6 = vrot.slane %v951_v3, %v6681_v2 }
 0x351   :  { %v968_v8 = vrot.slane %v951_v3, %v6684_v4  ;;  %v5313_v3 = vld [vmem:[#allocation7 + $0x2c4] ss:$16 sps:$4 sm:$0xff]  }
 0x352   :  { %2192 = vmatpush1.bf16.msra.mxu0 %v5209_v9  ;;  %2278 = vmatpush1.bf16.msra.mxu1 %v5212_v10 }
 0x353   :  { %2193 = vmatprep.subr.bf16.mxu0 %v5217_v14  ;;  %2279 = vmatprep.subr.bf16.mxu1 %v5220_v16 }
 0x356   :  { %2194 = vmatpush1.bf16.msra.mxu0 %v5215_v20  ;;  %2280 = vmatpush1.bf16.msra.mxu1 %v5218_v21 }
 0x357   :  { %2195 = vmatprep.subr.bf16.mxu0 %v5223_v22  ;;  %2281 = vmatprep.subr.bf16.mxu1 %v5226_v24 }
 0x35a   :  { %2196 = vmatpush1.bf16.msra.mxu0 %v5221_v13  ;;  %2282 = vmatpush1.bf16.msra.mxu1 %v5224_v30 }
 0x35b   :  { %2197 = vmatprep.subr.bf16.mxu0 %v5229_v32  ;;  %2283 = vmatprep.subr.bf16.mxu1 %v5232_v33 }
 0x35e   :  { %2198 = vmatpush1.bf16.msra.mxu0 %v5227_v34  ;;  %2284 = vmatpush1.bf16.msra.mxu1 %v5230_v35 }
 0x35f   :  { %2199 = vmatprep.subr.bf16.mxu0 %v5235_v36  ;;  %2285 = vmatprep.subr.bf16.mxu1 %v5238_v37 }
 0x362   :  { %2200 = vmatpush1.bf16.msra.mxu0 %v5233_v38  ;;  %2286 = vmatpush1.bf16.msra.mxu1 %v5236_v39 }
 0x363   :  { %2201 = vmatprep.subr.bf16.mxu0 %v5241_v40  ;;  %2287 = vmatprep.subr.bf16.mxu1 %v5244_v41 }
 0x366   :  { %2202 = vmatpush1.bf16.msra.mxu0 %v5239_v42  ;;  %2288 = vmatpush1.bf16.msra.mxu1 %v5242_v43 }
 0x367   :  { %2203 = vmatprep.subr.bf16.mxu0 %v5247_v44  ;;  %2289 = vmatprep.subr.bf16.mxu1 %v5250_v45  ;;  %v5275_v44 = vld [vmem:[#allocation7 + $0x200] ss:$16 sps:$4 sm:$0xff]   ;;  %v5278_v45 = vld [vmem:[#allocation7 + $0x208] ss:$16 sps:$4 sm:$0xff]  }
 0x36a   :  { %2204 = vmatpush1.bf16.msra.mxu0 %v5245_v46  ;;  %2290 = vmatpush1.bf16.msra.mxu1 %v5248_v47  ;;  %v5283_v46 = vld [vmem:[#allocation7 + $0x224] ss:$16 sps:$4 sm:$0xff]   ;;  %v5286_v47 = vld [vmem:[#allocation7 + $0x22c] ss:$16 sps:$4 sm:$0xff]  }
 0x36b   :  { %2205 = vmatprep.subr.bf16.mxu0 %v5253_v48  ;;  %2291 = vmatprep.subr.bf16.mxu1 %v5256_v49  ;;  %v5281_v48 = vld [vmem:[#allocation7 + $0x220] ss:$16 sps:$4 sm:$0xff]   ;;  %v5284_v49 = vld [vmem:[#allocation7 + $0x228] ss:$16 sps:$4 sm:$0xff]  }
 0x36e   :  { %2206 = vmatpush1.bf16.msra.mxu0 %v5251_v50  ;;  %2292 = vmatpush1.bf16.msra.mxu1 %v5254_v51  ;;  %v5289_v50 = vld [vmem:[#allocation7 + $0x244] ss:$16 sps:$4 sm:$0xff]   ;;  %v5292_v51 = vld [vmem:[#allocation7 + $0x24c] ss:$16 sps:$4 sm:$0xff]  }
 0x36f   :  { %2207 = vmatprep.subr.bf16.mxu0 %v5259_v52  ;;  %2293 = vmatprep.subr.bf16.mxu1 %v5262_v53  ;;  %v5287_v52 = vld [vmem:[#allocation7 + $0x240] ss:$16 sps:$4 sm:$0xff]   ;;  %v5290_v53 = vld [vmem:[#allocation7 + $0x248] ss:$16 sps:$4 sm:$0xff]  }
 0x372   :  { %2208 = vmatpush1.bf16.msra.mxu0 %v5257_v54  ;;  %2294 = vmatpush1.bf16.msra.mxu1 %v5260_v55  ;;  %v5295_v54 = vld [vmem:[#allocation7 + $0x264] ss:$16 sps:$4 sm:$0xff]   ;;  %v5298_v55 = vld [vmem:[#allocation7 + $0x26c] ss:$16 sps:$4 sm:$0xff]  }
 0x373   :  { %2209 = vmatprep.subr.bf16.mxu0 %v5265_v56  ;;  %2295 = vmatprep.subr.bf16.mxu1 %v5268_v57  ;;  %v5293_v56 = vld [vmem:[#allocation7 + $0x260] ss:$16 sps:$4 sm:$0xff]   ;;  %v5296_v57 = vld [vmem:[#allocation7 + $0x268] ss:$16 sps:$4 sm:$0xff]  }
 0x376   :  { %2210 = vmatpush1.bf16.msra.mxu0 %v5263_v58  ;;  %2296 = vmatpush1.bf16.msra.mxu1 %v5266_v59  ;;  %v5301_v58 = vld [vmem:[#allocation7 + $0x284] ss:$16 sps:$4 sm:$0xff]   ;;  %v5304_v59 = vld [vmem:[#allocation7 + $0x28c] ss:$16 sps:$4 sm:$0xff]  }
 0x377   :  { %2211 = vmatprep.subr.bf16.mxu0 %v5271_v60  ;;  %2297 = vmatprep.subr.bf16.mxu1 %v5274_v61  ;;  %v5299_v60 = vld [vmem:[#allocation7 + $0x280] ss:$16 sps:$4 sm:$0xff]   ;;  %v5302_v61 = vld [vmem:[#allocation7 + $0x288] ss:$16 sps:$4 sm:$0xff]  }
 0x37a   :  { %2212 = vmatpush1.bf16.msra.mxu0 %v5269_v62  ;;  %2298 = vmatpush1.bf16.msra.mxu1 %v5272_v63  ;;  %v5307_v62 = vld [vmem:[#allocation7 + $0x2a4] ss:$16 sps:$4 sm:$0xff]   ;;  %v5310_v63 = vld [vmem:[#allocation7 + $0x2ac] ss:$16 sps:$4 sm:$0xff]  }
 0x37b   :  { %2224 = vmatprep.subr.bf16.mxu0 %v5277_v0  ;;  %2310 = vmatprep.subr.bf16.mxu1 %v5280_v1  ;;  %v5305_v0 = vld [vmem:[#allocation7 + $0x2a0] ss:$16 sps:$4 sm:$0xff]   ;;  %v5308_v1 = vld [vmem:[#allocation7 + $0x2a8] ss:$16 sps:$4 sm:$0xff]  }
 0x410   :  { %v1327_v9 = vpop.f32.mrb[8].mxu0  ;;  %v1370_v10 = vpop.f32.mrb[8].mxu1 }
 0x411   :  { %v1328_v11 = vadd.f32 %v1327_v9, %v956_v5  ;;  %v1371_v14 = vadd.f32 %v1370_v10, %v964_v6  ;;  %v1329_v16 = vpop.f32.mrb[9].mxu0  ;;  %v1372_v17 = vpop.f32.mrb[9].mxu1  ;;  %v5322_v9 = vld [vmem:[#allocation7 + $0x2ec] ss:$16 sps:$4 sm:$0xff]   ;;  %v5317_v10 = vld [vmem:[#allocation7 + $0x2e0] ss:$16 sps:$4 sm:$0xff]  }
 0x412   :  { %v1330_v18 = vadd.f32 %v1329_v16, %v960_v7  ;;  %v1373_v12 = vadd.f32 %v1372_v17, %v968_v8  ;;  %v1331_v19 = vpop.f32.mrb[10].mxu0  ;;  %v1374_v20 = vpop.f32.mrb[10].mxu1  ;;  %v5328_v16 = vld [vmem:[#allocation7 + $0x30c] ss:$16 sps:$4 sm:$0xff]   ;;  %v5323_v17 = vld [vmem:[#allocation7 + $0x300] ss:$16 sps:$4 sm:$0xff]  }
 0x413   :  { %v1332_v28 = vadd.f32 %v1331_v19, %v956_v5  ;;  %v1375_v21 = vadd.f32 %v1374_v20, %v964_v6  ;;  %v1333_v22 = vpop.f32.mrb[11].mxu0  ;;  %v1376_v24 = vpop.f32.mrb[11].mxu1  ;;  %v1379_v32 = vmax.f32 %v1328_v11, 0.0  ;;  %v1381_v33 = vmax.f32 %v1371_v14, 0.0  ;;  %v5316_v5 = vld [vmem:[#allocation7 + $0x2cc] ss:$16 sps:$4 sm:$0xff]  }
 0x414   :  { %v1334_v13 = vadd.f32 %v1333_v22, %v960_v7  ;;  %v1377_v30 = vadd.f32 %v1376_v24, %v968_v8  ;;  %v1380_v36 = vmax.f32 %v1330_v18, 0.0  ;;  %v1382_v37 = vmax.f32 %v1373_v12, 0.0  ;;  %v5311_v6 = vld [vmem:[#allocation7 + $0x2c0] ss:$16 sps:$4 sm:$0xff]   ;;  %v5314_v7 = vld [vmem:[#allocation7 + $0x2c8] ss:$16 sps:$4 sm:$0xff]  }
 0x415   :  { %v1383_v34 = vmax.f32 %v1332_v28, 0.0  ;;  %v1385_v35 = vmax.f32 %v1375_v21, 0.0  ;;  %v5319_v8 = vld [vmem:[#allocation7 + $0x2e4] ss:$16 sps:$4 sm:$0xff]   ;;  %v5320_v11 = vld [vmem:[#allocation7 + $0x2e8] ss:$16 sps:$4 sm:$0xff]  }
 0x416   :  { %v1384_v38 = vmax.f32 %v1334_v13, 0.0  ;;  %v1386_v39 = vmax.f32 %v1377_v30, 0.0  ;;  %v5325_v14 = vld [vmem:[#allocation7 + $0x304] ss:$16 sps:$4 sm:$0xff]   ;;  %v5326_v18 = vld [vmem:[#allocation7 + $0x308] ss:$16 sps:$4 sm:$0xff]  }
 0x417   :  { %v1387_v40 = vpack.c.bf16 %v1383_v34, %v1379_v32  ;;  %v6690_v41 = vpack.c.bf16 %v1385_v35, %v1381_v33  ;;  %v5331_v12 = vld [vmem:[#allocation7 + $0x324] ss:$16 sps:$4 sm:$0xff]   ;;  %v5334_v19 = vld [vmem:[#allocation7 + $0x32c] ss:$16 sps:$4 sm:$0xff]   ;;  %v5329_v20 = vld [vmem:[#allocation7 + $0x320] ss:$16 sps:$4 sm:$0xff]  }
 0x418   :  { %v1388_v42 = vpack.c.bf16 %v1384_v38, %v1380_v36  ;;  %v1390_v43 = vpack.c.bf16 %v1386_v39, %v1382_v37  ;;  %v5332_v28 = vld [vmem:[#allocation7 + $0x328] ss:$16 sps:$4 sm:$0xff]   ;;  %v5337_v21 = vld [vmem:[#allocation7 + $0x344] ss:$16 sps:$4 sm:$0xff]   ;;  %v5340_v22 = vld [vmem:[#allocation7 + $0x34c] ss:$16 sps:$4 sm:$0xff]  }
 0x419   :  { %v5335_v24 = vld [vmem:[#allocation7 + $0x340] ss:$16 sps:$4 sm:$0xff]   ;;  %v5338_v13 = vld [vmem:[#allocation7 + $0x348] ss:$16 sps:$4 sm:$0xff]   ;;  %v5343_v30 = vld [vmem:[#allocation7 + $0x364] ss:$16 sps:$4 sm:$0xff]  }
 0x41a   :  { %2213 = vmatprep.mubr.bf16.mxu0 %v1388_v42  ;;  %2299 = vmatprep.mubr.bf16.mxu1 %v1388_v42  ;;  %v5346_v32 = vld [vmem:[#allocation7 + $0x36c] ss:$16 sps:$4 sm:$0xff]   ;;  %v5341_v33 = vld [vmem:[#allocation7 + $0x360] ss:$16 sps:$4 sm:$0xff]   ;;  %v5344_v34 = vld [vmem:[#allocation7 + $0x368] ss:$16 sps:$4 sm:$0xff]  }
 0x41b   :  { %2214 = vmatmul.mubr.bf16.vlgmr.msra.gmra.mrb[12].mxu0 %v1387_v40  ;;  %2300 = vmatmul.mubr.bf16.vlgmr.msra.gmra.mrb[12].mxu1 %v1387_v40  ;;  %v5349_v35 = vld [vmem:[#allocation7 + $0x384] ss:$16 sps:$4 sm:$0xff]   ;;  %v5352_v36 = vld [vmem:[#allocation7 + $0x38c] ss:$16 sps:$4 sm:$0xff]   ;;  %v5347_v37 = vld [vmem:[#allocation7 + $0x380] ss:$16 sps:$4 sm:$0xff]  }
 0x41c   :  { %2225 = vmatpush1.bf16.msra.mxu0 %v5275_v44  ;;  %2311 = vmatpush1.bf16.msra.mxu1 %v5278_v45  ;;  %v5350_v38 = vld [vmem:[#allocation7 + $0x388] ss:$16 sps:$4 sm:$0xff]   ;;  %v5355_v39 = vld [vmem:[#allocation7 + $0x3a4] ss:$16 sps:$4 sm:$0xff]   ;;  %v5358_v40 = vld [vmem:[#allocation7 + $0x3ac] ss:$16 sps:$4 sm:$0xff]  }
 0x41d   :  { %2256 = vmatprep.mubr.bf16.mxu0 %v1390_v43  ;;  %2342 = vmatprep.mubr.bf16.mxu1 %v1390_v43  ;;  %v5353_v42 = vld [vmem:[#allocation7 + $0x3a0] ss:$16 sps:$4 sm:$0xff]   ;;  %v5356_v43 = vld [vmem:[#allocation7 + $0x3a8] ss:$16 sps:$4 sm:$0xff]   ;;  %v5361_v44 = vld [vmem:[#allocation7 + $0x3c4] ss:$16 sps:$4 sm:$0xff]  }
 0x41e   :  { %2226 = vmatprep.subr.bf16.mxu0 %v5283_v46  ;;  %2312 = vmatprep.subr.bf16.mxu1 %v5286_v47  ;;  %v5364_v45 = vld [vmem:[#allocation7 + $0x3cc] ss:$16 sps:$4 sm:$0xff]   ;;  %v5359_v46 = vld [vmem:[#allocation7 + $0x3c0] ss:$16 sps:$4 sm:$0xff]   ;;  %v5362_v47 = vld [vmem:[#allocation7 + $0x3c8] ss:$16 sps:$4 sm:$0xff]  }
 0x420   :  { %2227 = vmatpush1.bf16.msra.mxu0 %v5281_v48  ;;  %2313 = vmatpush1.bf16.msra.mxu1 %v5284_v49  ;;  %v5367_v48 = vld [vmem:[#allocation7 + $0x3e4] ss:$16 sps:$4 sm:$0xff]   ;;  %v5370_v49 = vld [vmem:[#allocation7 + $0x3ec] ss:$16 sps:$4 sm:$0xff]  }
 0x421   :  { %2228 = vmatprep.subr.bf16.mxu0 %v5289_v50  ;;  %2314 = vmatprep.subr.bf16.mxu1 %v5292_v51  ;;  %v5365_v50 = vld [vmem:[#allocation7 + $0x3e0] ss:$16 sps:$4 sm:$0xff]   ;;  %v5368_v51 = vld [vmem:[#allocation7 + $0x3e8] ss:$16 sps:$4 sm:$0xff]  }
 0x424   :  { %2229 = vmatpush1.bf16.msra.mxu0 %v5287_v52  ;;  %2315 = vmatpush1.bf16.msra.mxu1 %v5290_v53  ;;  %v5373_v52 = vld [vmem:[#allocation10 + $0x4] ss:$8 sps:$4 sm:$0xff]   ;;  %v5371_v53 = vld [vmem:[#allocation10] ss:$8 sps:$4 sm:$0xff]  }
 0x425   :  { %2230 = vmatprep.subr.bf16.mxu0 %v5295_v54  ;;  %2316 = vmatprep.subr.bf16.mxu1 %v5298_v55  ;;  %v5376_v54 = vld [vmem:[#allocation10 + $0x14] ss:$8 sps:$4 sm:$0xff]   ;;  %v5374_v55 = vld [vmem:[#allocation10 + $0x10] ss:$8 sps:$4 sm:$0xff]  }
 0x428   :  { %2231 = vmatpush1.bf16.msra.mxu0 %v5293_v56  ;;  %2317 = vmatpush1.bf16.msra.mxu1 %v5296_v57  ;;  %v5379_v56 = vld [vmem:[#allocation10 + $0x24] ss:$8 sps:$4 sm:$0xff]   ;;  %v5377_v57 = vld [vmem:[#allocation10 + $0x20] ss:$8 sps:$4 sm:$0xff]  }
 0x429   :  { %2232 = vmatprep.subr.bf16.mxu0 %v5301_v58  ;;  %2318 = vmatprep.subr.bf16.mxu1 %v5304_v59  ;;  %v5382_v58 = vld [vmem:[#allocation10 + $0x34] ss:$8 sps:$4 sm:$0xff]   ;;  %v5380_v59 = vld [vmem:[#allocation10 + $0x30] ss:$8 sps:$4 sm:$0xff]  }
 0x42c   :  { %2233 = vmatpush1.bf16.msra.mxu0 %v5299_v60  ;;  %2319 = vmatpush1.bf16.msra.mxu1 %v5302_v61  ;;  %v5385_v60 = vld [vmem:[#allocation10 + $0x44] ss:$8 sps:$4 sm:$0xff]   ;;  %v5383_v61 = vld [vmem:[#allocation10 + $0x40] ss:$8 sps:$4 sm:$0xff]  }
 0x42d   :  { %2234 = vmatprep.subr.bf16.mxu0 %v5307_v62  ;;  %2320 = vmatprep.subr.bf16.mxu1 %v5310_v63  ;;  %v5388_v62 = vld [vmem:[#allocation10 + $0x54] ss:$8 sps:$4 sm:$0xff]   ;;  %v5386_v63 = vld [vmem:[#allocation10 + $0x50] ss:$8 sps:$4 sm:$0xff]  }
 0x430   :  { %2235 = vmatpush1.bf16.msra.mxu0 %v5305_v0  ;;  %2321 = vmatpush1.bf16.msra.mxu1 %v5308_v1  ;;  %v5389_v0 = vld [vmem:[#allocation10 + $0x60] ss:$8 sps:$4 sm:$0xff]   ;;  %v5394_v1 = vld [vmem:[#allocation10 + $0x74] ss:$8 sps:$4 sm:$0xff]  }
 0x431   :  { %2236 = vmatprep.subr.bf16.mxu0 %v5313_v3  ;;  %2322 = vmatprep.subr.bf16.mxu1 %v5316_v5  ;;  %v5392_v3 = vld [vmem:[#allocation10 + $0x70] ss:$8 sps:$4 sm:$0xff]   ;;  %v5397_v5 = vld [vmem:[#allocation10 + $0x84] ss:$8 sps:$4 sm:$0xff]  }
 0x434   :  { %2237 = vmatpush1.bf16.msra.mxu0 %v5311_v6  ;;  %2323 = vmatpush1.bf16.msra.mxu1 %v5314_v7  ;;  %v5395_v6 = vld [vmem:[#allocation10 + $0x80] ss:$8 sps:$4 sm:$0xff]   ;;  %v5400_v7 = vld [vmem:[#allocation10 + $0x94] ss:$8 sps:$4 sm:$0xff]  }
 0x435   :  { %2238 = vmatprep.subr.bf16.mxu0 %v5319_v8  ;;  %2324 = vmatprep.subr.bf16.mxu1 %v5322_v9  ;;  %v5398_v8 = vld [vmem:[#allocation10 + $0x90] ss:$8 sps:$4 sm:$0xff]   ;;  %v5403_v9 = vld [vmem:[#allocation10 + $0xa4] ss:$8 sps:$4 sm:$0xff]  }
 0x438   :  { %2239 = vmatpush1.bf16.msra.mxu0 %v5317_v10  ;;  %2325 = vmatpush1.bf16.msra.mxu1 %v5320_v11  ;;  %v5401_v10 = vld [vmem:[#allocation10 + $0xa0] ss:$8 sps:$4 sm:$0xff]   ;;  %v5406_v11 = vld [vmem:[#allocation10 + $0xb4] ss:$8 sps:$4 sm:$0xff]  }
 0x439   :  { %2240 = vmatprep.subr.bf16.mxu0 %v5325_v14  ;;  %2326 = vmatprep.subr.bf16.mxu1 %v5328_v16  ;;  %v5404_v14 = vld [vmem:[#allocation10 + $0xb0] ss:$8 sps:$4 sm:$0xff]   ;;  %v5409_v16 = vld [vmem:[#allocation10 + $0xc4] ss:$8 sps:$4 sm:$0xff]  }
 0x43c   :  { %2241 = vmatpush1.bf16.msra.mxu0 %v5323_v17  ;;  %2327 = vmatpush1.bf16.msra.mxu1 %v5326_v18  ;;  %v5407_v17 = vld [vmem:[#allocation10 + $0xc0] ss:$8 sps:$4 sm:$0xff]   ;;  %v5412_v18 = vld [vmem:[#allocation10 + $0xd4] ss:$8 sps:$4 sm:$0xff]  }
 0x43d   :  { %2242 = vmatprep.subr.bf16.mxu0 %v5331_v12  ;;  %2328 = vmatprep.subr.bf16.mxu1 %v5334_v19  ;;  %v5410_v12 = vld [vmem:[#allocation10 + $0xd0] ss:$8 sps:$4 sm:$0xff]   ;;  %v5415_v19 = vld [vmem:[#allocation10 + $0xe4] ss:$8 sps:$4 sm:$0xff]  }
 0x440   :  { %2243 = vmatpush1.bf16.msra.mxu0 %v5329_v20  ;;  %2329 = vmatpush1.bf16.msra.mxu1 %v5332_v28  ;;  %v5413_v20 = vld [vmem:[#allocation10 + $0xe0] ss:$8 sps:$4 sm:$0xff]   ;;  %v5418_v28 = vld [vmem:[#allocation10 + $0xf4] ss:$8 sps:$4 sm:$0xff]  }
 0x441   :  { %2244 = vmatprep.subr.bf16.mxu0 %v5337_v21  ;;  %2330 = vmatprep.subr.bf16.mxu1 %v5340_v22  ;;  %v5416_v21 = vld [vmem:[#allocation10 + $0xf0] ss:$8 sps:$4 sm:$0xff]   ;;  %v5421_v22 = vld [vmem:[#allocation10 + $0x104] ss:$8 sps:$4 sm:$0xff]  }
 0x444   :  { %2245 = vmatpush1.bf16.msra.mxu0 %v5335_v24  ;;  %2331 = vmatpush1.bf16.msra.mxu1 %v5338_v13  ;;  %v5467_v24 = vld [vmem:[%s6951_s11 + $0x40] sm:$0xff]  }
 0x445   :  { %2246 = vmatprep.subr.bf16.mxu0 %v5343_v30  ;;  %2332 = vmatprep.subr.bf16.mxu1 %v5346_v32  ;;  %v5468_v13 = vld [vmem:[%s6951_s11] sm:$0xff]   ;;  %v5469_v30 = vld [vmem:[%s6951_s11 + $0x48] sm:$0xff]  }
 0x446   :  { %v5470_v32 = vld [vmem:[%s6951_s11 + $0x8] sm:$0xff]  }
 0x448   :  { %2247 = vmatpush1.bf16.msra.mxu0 %v5341_v33  ;;  %2333 = vmatpush1.bf16.msra.mxu1 %v5344_v34  ;;  %v5471_v33 = vld [vmem:[%s6951_s11 + $0x50] sm:$0xff]  }
 0x449   :  { %2248 = vmatprep.subr.bf16.mxu0 %v5349_v35  ;;  %2334 = vmatprep.subr.bf16.mxu1 %v5352_v36  ;;  %v5472_v34 = vld [vmem:[%s6951_s11 + $0x10] sm:$0xff]   ;;  %v5473_v35 = vld [vmem:[%s6951_s11 + $0x58] sm:$0xff]  }
 0x44a   :  { %v5474_v36 = vld [vmem:[%s6951_s11 + $0x18] sm:$0xff]  }
 0x44c   :  { %2249 = vmatpush1.bf16.msra.mxu0 %v5347_v37  ;;  %2335 = vmatpush1.bf16.msra.mxu1 %v5350_v38  ;;  %v5475_v37 = vld [vmem:[%s6951_s11 + $0x60] sm:$0xff]  }
 0x44d   :  { %2250 = vmatprep.subr.bf16.mxu0 %v5355_v39  ;;  %2336 = vmatprep.subr.bf16.mxu1 %v5358_v40  ;;  %v5476_v38 = vld [vmem:[%s6951_s11 + $0x20] sm:$0xff]   ;;  %v5477_v39 = vld [vmem:[%s6951_s11 + $0x68] sm:$0xff]  }
 0x44e   :  { %v5478_v40 = vld [vmem:[%s6951_s11 + $0x28] sm:$0xff]  }
 0x450   :  { %2251 = vmatpush1.bf16.msra.mxu0 %v5353_v42  ;;  %2337 = vmatpush1.bf16.msra.mxu1 %v5356_v43  ;;  %v1519_v42 = vld [vmem:[#allocation9] sm:$0xf] }
 0x451   :  { %2252 = vmatprep.subr.bf16.mxu0 %v5361_v44  ;;  %2338 = vmatprep.subr.bf16.mxu1 %v5364_v45  ;;  %v1524_v43 = vrot.slane %v1519_v42, %v6671_v29  ;;  %v1532_v44 = vrot.slane %v1519_v42, %v6681_v2  ;;  %v1528_v45 = vrot.slane %v1519_v42, %v6674_v31 }
 0x454   :  { %2253 = vmatpush1.bf16.msra.mxu0 %v5359_v46  ;;  %2339 = vmatpush1.bf16.msra.mxu1 %v5362_v47  ;;  %v1536_v46 = vrot.slane %v1519_v42, %v6684_v4  ;;  %v5452_v42 = vld [vmem:[#allocation10 + $0x1b0] ss:$8 sps:$4 sm:$0xff]  }
 0x455   :  { %2254 = vmatprep.subr.bf16.mxu0 %v5367_v48  ;;  %2340 = vmatprep.subr.bf16.mxu1 %v5370_v49 }
 0x458   :  { %2255 = vmatpush1.bf16.msra.mxu0 %v5365_v50  ;;  %2341 = vmatpush1.bf16.msra.mxu1 %v5368_v51 }
 0x459   :  { %2761 = vmatprep.subr.bf16.mxu0 %v5373_v52  ;;  %4839 = vmatprep.subr.bf16.mxu1 %v5467_v24  ;;  %v5434_v24 = vld [vmem:[#allocation10 + $0x150] ss:$8 sps:$4 sm:$0xff]  }
 0x45b   :  { %2257 = vmatmul.mubr.bf16.vlgmr.msra.gmra.mrb[12].mxu0 %v6690_v41  ;;  %2343 = vmatmul.mubr.bf16.vlgmr.msra.gmra.mrb[12].mxu1 %v6690_v41  ;;  %v5391_v41 = vld [vmem:[#allocation10 + $0x64] ss:$8 sps:$4 sm:$0xff]  }
 0x45c   :  { %2762 = vmatpush1.bf16.msra.mxu0 %v5371_v53  ;;  %4840 = vmatpush3.bf16.msra.mxu1 %v5468_v13  ;;  %v5439_v13 = vld [vmem:[#allocation10 + $0x164] ss:$8 sps:$4 sm:$0xff]  }
 0x45d   :  { %2763 = vmatprep.subr.bf16.mxu0 %v5376_v54  ;;  %4841 = vmatprep.subr.bf16.mxu1 %v5469_v30  ;;  %v5437_v30 = vld [vmem:[#allocation10 + $0x160] ss:$8 sps:$4 sm:$0xff]  }
 0x460   :  { %2764 = vmatpush1.bf16.msra.mxu0 %v5374_v55  ;;  %4842 = vmatpush3.bf16.msra.mxu1 %v5470_v32  ;;  %v5442_v32 = vld [vmem:[#allocation10 + $0x174] ss:$8 sps:$4 sm:$0xff]  }
 0x461   :  { %2765 = vmatprep.subr.bf16.mxu0 %v5379_v56  ;;  %4843 = vmatprep.subr.bf16.mxu1 %v5471_v33  ;;  %v5440_v33 = vld [vmem:[#allocation10 + $0x170] ss:$8 sps:$4 sm:$0xff]  }
 0x464   :  { %2766 = vmatpush1.bf16.msra.mxu0 %v5377_v57  ;;  %4844 = vmatpush3.bf16.msra.mxu1 %v5472_v34  ;;  %v5445_v34 = vld [vmem:[#allocation10 + $0x184] ss:$8 sps:$4 sm:$0xff]  }
 0x465   :  { %2767 = vmatprep.subr.bf16.mxu0 %v5382_v58  ;;  %4845 = vmatprep.subr.bf16.mxu1 %v5473_v35  ;;  %v5443_v35 = vld [vmem:[#allocation10 + $0x180] ss:$8 sps:$4 sm:$0xff]  }
 0x468   :  { %2768 = vmatpush1.bf16.msra.mxu0 %v5380_v59  ;;  %4846 = vmatpush3.bf16.msra.mxu1 %v5474_v36  ;;  %v5448_v36 = vld [vmem:[#allocation10 + $0x194] ss:$8 sps:$4 sm:$0xff]  }
 0x469   :  { %2769 = vmatprep.subr.bf16.mxu0 %v5385_v60  ;;  %4847 = vmatprep.subr.bf16.mxu1 %v5475_v37  ;;  %v5446_v37 = vld [vmem:[#allocation10 + $0x190] ss:$8 sps:$4 sm:$0xff]  }
 0x46c   :  { %2770 = vmatpush1.bf16.msra.mxu0 %v5383_v61  ;;  %4848 = vmatpush3.bf16.msra.mxu1 %v5476_v38  ;;  %v5451_v38 = vld [vmem:[#allocation10 + $0x1a4] ss:$8 sps:$4 sm:$0xff]  }
 0x46d   :  { %2771 = vmatprep.subr.bf16.mxu0 %v5388_v62  ;;  %4849 = vmatprep.subr.bf16.mxu1 %v5477_v39  ;;  %v5449_v39 = vld [vmem:[#allocation10 + $0x1a0] ss:$8 sps:$4 sm:$0xff]  }
 0x470   :  { %2772 = vmatpush1.bf16.msra.mxu0 %v5386_v63  ;;  %4850 = vmatpush3.bf16.msra.mxu1 %v5478_v40  ;;  %v5454_v40 = vld [vmem:[#allocation10 + $0x1b4] ss:$8 sps:$4 sm:$0xff]  }
 0x471   :  { %2773 = vmatprep.subr.bf16.mxu0 %v5391_v41 }
 0x474   :  { %2774 = vmatpush1.bf16.msra.mxu0 %v5389_v0 }
 0x475   :  { %2775 = vmatprep.subr.bf16.mxu0 %v5394_v1 }
 0x478   :  { %2776 = vmatpush1.bf16.msra.mxu0 %v5392_v3 }
 0x479   :  { %2777 = vmatprep.subr.bf16.mxu0 %v5397_v5 }
 0x47c   :  { %2778 = vmatpush1.bf16.msra.mxu0 %v5395_v6 }
 0x47d   :  { %2779 = vmatprep.subr.bf16.mxu0 %v5400_v7 }
 0x480   :  { %2780 = vmatpush1.bf16.msra.mxu0 %v5398_v8 }
 0x481   :  { %2781 = vmatprep.subr.bf16.mxu0 %v5403_v9 }
 0x484   :  { %2782 = vmatpush1.bf16.msra.mxu0 %v5401_v10 }
 0x485   :  { %2783 = vmatprep.subr.bf16.mxu0 %v5406_v11 }
 0x488   :  { %2784 = vmatpush1.bf16.msra.mxu0 %v5404_v14  ;;  %v5419_v14 = vld [vmem:[#allocation10 + $0x100] ss:$8 sps:$4 sm:$0xff]  }
 0x489   :  { %2785 = vmatprep.subr.bf16.mxu0 %v5409_v16  ;;  %v5424_v16 = vld [vmem:[#allocation10 + $0x114] ss:$8 sps:$4 sm:$0xff]  }
 0x48c   :  { %2786 = vmatpush1.bf16.msra.mxu0 %v5407_v17  ;;  %v5422_v17 = vld [vmem:[#allocation10 + $0x110] ss:$8 sps:$4 sm:$0xff]  }
 0x48d   :  { %2787 = vmatprep.subr.bf16.mxu0 %v5412_v18  ;;  %v5427_v18 = vld [vmem:[#allocation10 + $0x124] ss:$8 sps:$4 sm:$0xff]  }
 0x490   :  { %2788 = vmatpush1.bf16.msra.mxu0 %v5410_v12  ;;  %v5425_v12 = vld [vmem:[#allocation10 + $0x120] ss:$8 sps:$4 sm:$0xff]  }
 0x491   :  { %2789 = vmatprep.subr.bf16.mxu0 %v5415_v19  ;;  %v5430_v19 = vld [vmem:[#allocation10 + $0x134] ss:$8 sps:$4 sm:$0xff]  }
 0x494   :  { %2790 = vmatpush1.bf16.msra.mxu0 %v5413_v20  ;;  %v5428_v20 = vld [vmem:[#allocation10 + $0x130] ss:$8 sps:$4 sm:$0xff]  }
 0x495   :  { %2791 = vmatprep.subr.bf16.mxu0 %v5418_v28  ;;  %v5433_v28 = vld [vmem:[#allocation10 + $0x144] ss:$8 sps:$4 sm:$0xff]  }
 0x498   :  { %2792 = vmatpush1.bf16.msra.mxu0 %v5416_v21  ;;  %v5431_v21 = vld [vmem:[#allocation10 + $0x140] ss:$8 sps:$4 sm:$0xff]  }
 0x499   :  { %2804 = vmatprep.subr.bf16.mxu0 %v5421_v22  ;;  %v5436_v22 = vld [vmem:[#allocation10 + $0x154] ss:$8 sps:$4 sm:$0xff]  }
 0x52e   :  { %v2258_v47 = vpop.f32.mrb[12].mxu0  ;;  %v2344_v48 = vpop.f32.mrb[12].mxu1 }
 0x52f   :  { %v4961_v49 = vadd.f32 %v2258_v47, %v1524_v43  ;;  %v4965_v50 = vadd.f32 %v2344_v48, %v1532_v44  ;;  %v2260_v51 = vpop.f32.mrb[13].mxu0  ;;  %v2346_v52 = vpop.f32.mrb[13].mxu1  ;;  %v5463_v47 = vld [vmem:[#allocation10 + $0x1e4] ss:$8 sps:$4 sm:$0xff]   ;;  %v5461_v48 = vld [vmem:[#allocation10 + $0x1e0] ss:$8 sps:$4 sm:$0xff]  }
 0x530   :  { %v4962_v53 = vadd.f32 %v2260_v51, %v1528_v45  ;;  %v4966_v54 = vadd.f32 %v2346_v52, %v1536_v46  ;;  %v2262_v55 = vpop.f32.mrb[14].mxu0  ;;  %v2348_v56 = vpop.f32.mrb[14].mxu1  ;;  %v5479_v51 = vld [vmem:[%s6951_s11 + $0x70] sm:$0xff]  }
 0x531   :  { %v4963_v57 = vadd.f32 %v2262_v55, %v1524_v43  ;;  %v4967_v58 = vadd.f32 %v2348_v56, %v1532_v44  ;;  %v2264_v59 = vpop.f32.mrb[15].mxu0  ;;  %v2350_v60 = vpop.f32.mrb[15].mxu1  ;;  %v2353_v63 = vmax.f32 %v4961_v49, 0.0  ;;  %v2355_v41 = vmax.f32 %v4965_v50, 0.0  ;;  %v5457_v43 = vld [vmem:[#allocation10 + $0x1c4] ss:$8 sps:$4 sm:$0xff]   ;;  %4851 = vmatprep.subr.bf16.mxu1 %v5479_v51 }
 0x532   :  { %v4964_v61 = vadd.f32 %v2264_v59, %v1528_v45  ;;  %v4968_v62 = vadd.f32 %v2350_v60, %v1536_v46  ;;  %v2354_v3 = vmax.f32 %v4962_v53, 0.0  ;;  %v2356_v5 = vmax.f32 %v4966_v54, 0.0  ;;  %v5455_v44 = vld [vmem:[#allocation10 + $0x1c0] ss:$8 sps:$4 sm:$0xff]   ;;  %v5460_v45 = vld [vmem:[#allocation10 + $0x1d4] ss:$8 sps:$4 sm:$0xff]  }
 0x533   :  { %v2357_v0 = vmax.f32 %v4963_v57, 0.0  ;;  %v2359_v1 = vmax.f32 %v4967_v58, 0.0  ;;  %v5458_v46 = vld [vmem:[#allocation10 + $0x1d0] ss:$8 sps:$4 sm:$0xff]   ;;  %v5466_v49 = vld [vmem:[#allocation10 + $0x1f4] ss:$8 sps:$4 sm:$0xff]  }
 0x534   :  { %v2358_v6 = vmax.f32 %v4964_v61, 0.0  ;;  %v2360_v7 = vmax.f32 %v4968_v62, 0.0  ;;  %v5464_v50 = vld [vmem:[#allocation10 + $0x1f0] ss:$8 sps:$4 sm:$0xff]   ;;  %v5480_v52 = vld [vmem:[%s6951_s11 + $0x30] sm:$0xff]   ;;  %v5481_v53 = vld [vmem:[%s6951_s11 + $0x78] sm:$0xff]  }
 0x535   :  { %v2361_v8 = vpack.c.bf16 %v2357_v0, %v2353_v63  ;;  %v6734_v9 = vpack.c.bf16 %v2359_v1, %v2355_v41  ;;  %4852 = vmatpush3.bf16.msra.mxu1 %v5480_v52  ;;  %v5482_v54 = vld [vmem:[%s6951_s11 + $0x38] sm:$0xff]   ;;  %v5500_v57 = vld [vmem:[#allocation13 + $0xc] ss:$16 sps:$4 sm:$0xff]   ;;  %v5486_v52 = vld [vmem:[#allocation13 + $0x20] ss:$16 sps:$4 sm:$0xff]  }
 0x536   :  { %v2362_v10 = vpack.c.bf16 %v2358_v6, %v2354_v3  ;;  %v2364_v11 = vpack.c.bf16 %v2360_v7, %v2356_v5  ;;  %4853 = vmatprep.subr.bf16.mxu1 %v5481_v53  ;;  %v5485_v55 = vld [vmem:[#allocation13 + $0x4] ss:$16 sps:$4 sm:$0xff]   ;;  %v5498_v56 = vld [vmem:[#allocation13 + $0x8] ss:$16 sps:$4 sm:$0xff]   ;;  %v5506_v59 = vld [vmem:[#allocation13 + $0x2c] ss:$16 sps:$4 sm:$0xff]  }
 0x537   :  { %v5504_v58 = vld [vmem:[#allocation13 + $0x28] ss:$16 sps:$4 sm:$0xff]   ;;  %v5512_v61 = vld [vmem:[#allocation13 + $0x4c] ss:$16 sps:$4 sm:$0xff]   ;;  %v5488_v51 = vld [vmem:[#allocation13 + $0x24] ss:$16 sps:$4 sm:$0xff]  }
 0x538   :  { %2793 = vmatprep.mubr.bf16.mxu0 %v2362_v10  ;;  %v5510_v60 = vld [vmem:[#allocation13 + $0x48] ss:$16 sps:$4 sm:$0xff]   ;;  %v5518_v63 = vld [vmem:[#allocation13 + $0x6c] ss:$16 sps:$4 sm:$0xff]   ;;  %v5491_v53 = vld [vmem:[#allocation13 + $0x44] ss:$16 sps:$4 sm:$0xff]  }
 0x539   :  { %2794 = vmatmul.mubr.bf16.vlgmr.msra.gmra.mrb[16].mxu0 %v2361_v8  ;;  %4854 = vmatpush3.bf16.msra.mxu1 %v5482_v54  ;;  %v5516_v62 = vld [vmem:[#allocation13 + $0x68] ss:$16 sps:$4 sm:$0xff]   ;;  %v5524_v0 = vld [vmem:[#allocation13 + $0x8c] ss:$16 sps:$4 sm:$0xff]   ;;  %v5489_v54 = vld [vmem:[#allocation13 + $0x40] ss:$16 sps:$4 sm:$0xff]  }
 0x53a   :  { %2805 = vmatpush1.bf16.msra.mxu0 %v5419_v14  ;;  %2836 = vmatprep.mubr.bf16.mxu0 %v2364_v11  ;;  %v5522_v41 = vld [vmem:[#allocation13 + $0x88] ss:$16 sps:$4 sm:$0xff]   ;;  %v5530_v3 = vld [vmem:[#allocation13 + $0xac] ss:$16 sps:$4 sm:$0xff]  }
 0x53b   :  { %2806 = vmatprep.subr.bf16.mxu0 %v5424_v16  ;;  %3413 = vmatprep.subr.bf16.mxu1 %v5485_v55  ;;  %v5528_v1 = vld [vmem:[#allocation13 + $0xa8] ss:$16 sps:$4 sm:$0xff]   ;;  %v5536_v6 = vld [vmem:[#allocation13 + $0xcc] ss:$16 sps:$4 sm:$0xff]   ;;  %v5494_v55 = vld [vmem:[#allocation13 + $0x64] ss:$16 sps:$4 sm:$0xff]  }
 0x53c   :  { %v5534_v5 = vld [vmem:[#allocation13 + $0xc8] ss:$16 sps:$4 sm:$0xff]   ;;  %v5542_v8 = vld [vmem:[#allocation13 + $0xec] ss:$16 sps:$4 sm:$0xff]  }
 0x53d   :  { %v5540_v7 = vld [vmem:[#allocation13 + $0xe8] ss:$16 sps:$4 sm:$0xff]   ;;  %v5548_v10 = vld [vmem:[#allocation13 + $0x10c] ss:$16 sps:$4 sm:$0xff]  }
 0x53e   :  { %2807 = vmatpush1.bf16.msra.mxu0 %v5422_v17  ;;  %v5552_v11 = vld [vmem:[#allocation13 + $0x128] ss:$16 sps:$4 sm:$0xff]   ;;  %v5554_v14 = vld [vmem:[#allocation13 + $0x12c] ss:$16 sps:$4 sm:$0xff]  }
 0x53f   :  { %2808 = vmatprep.subr.bf16.mxu0 %v5427_v18  ;;  %v5558_v16 = vld [vmem:[#allocation13 + $0x148] ss:$16 sps:$4 sm:$0xff]   ;;  %v5560_v17 = vld [vmem:[#allocation13 + $0x14c] ss:$16 sps:$4 sm:$0xff]  }
 0x540   :  { %v5564_v18 = vld [vmem:[#allocation13 + $0x168] ss:$16 sps:$4 sm:$0xff]  }
 0x542   :  { %2809 = vmatpush1.bf16.msra.mxu0 %v5425_v12  ;;  %v5566_v12 = vld [vmem:[#allocation13 + $0x16c] ss:$16 sps:$4 sm:$0xff]  }
 0x543   :  { %2810 = vmatprep.subr.bf16.mxu0 %v5430_v19  ;;  %v5569_v19 = vld [vmem:[#allocation13 + $0x18c] ss:$16 sps:$4 sm:$0xff]  }
 0x546   :  { %2811 = vmatpush1.bf16.msra.mxu0 %v5428_v20  ;;  %v5567_v20 = vld [vmem:[#allocation13 + $0x188] ss:$16 sps:$4 sm:$0xff]  }
 0x547   :  { %2812 = vmatprep.subr.bf16.mxu0 %v5433_v28  ;;  %v5573_v28 = vld [vmem:[#allocation13 + $0x1a8] ss:$16 sps:$4 sm:$0xff]  }
 0x54a   :  { %2813 = vmatpush1.bf16.msra.mxu0 %v5431_v21  ;;  %v5575_v21 = vld [vmem:[#allocation13 + $0x1ac] ss:$16 sps:$4 sm:$0xff]  }
 0x54b   :  { %2814 = vmatprep.subr.bf16.mxu0 %v5436_v22  ;;  %v5579_v22 = vld [vmem:[#allocation13 + $0x1c8] ss:$16 sps:$4 sm:$0xff]  }
 0x54e   :  { %2815 = vmatpush1.bf16.msra.mxu0 %v5434_v24  ;;  %v5581_v24 = vld [vmem:[#allocation13 + $0x1cc] ss:$16 sps:$4 sm:$0xff]  }
 0x54f   :  { %2816 = vmatprep.subr.bf16.mxu0 %v5439_v13  ;;  %v5585_v13 = vld [vmem:[#allocation13 + $0x1e8] ss:$16 sps:$4 sm:$0xff]  }
 0x552   :  { %2817 = vmatpush1.bf16.msra.mxu0 %v5437_v30  ;;  %v5587_v30 = vld [vmem:[#allocation13 + $0x1ec] ss:$16 sps:$4 sm:$0xff]  }
 0x553   :  { %2818 = vmatprep.subr.bf16.mxu0 %v5442_v32  ;;  %v2429_v32 = vld [vmem:[#allocation12] sm:$0x3] }
 0x556   :  { %2819 = vmatpush1.bf16.msra.mxu0 %v5440_v33  ;;  %v2434_v33 = vrot.slane %v2429_v32, %v6671_v29 }
 0x557   :  { %2820 = vmatprep.subr.bf16.mxu0 %v5445_v34  ;;  %v2438_v34 = vrot.slane %v2429_v32, %v6674_v31  ;;  %v5588_v32 = vld [vmem:[#allocation15 + $0x28] ss:$16 sps:$4 sm:$0xff]  }
 0x55a   :  { %2821 = vmatpush1.bf16.msra.mxu0 %v5443_v35 }
 0x55b   :  { %2822 = vmatprep.subr.bf16.mxu0 %v5448_v36 }
 0x55e   :  { %2823 = vmatpush1.bf16.msra.mxu0 %v5446_v37 }
 0x55f   :  { %2824 = vmatprep.subr.bf16.mxu0 %v5451_v38 }
 0x562   :  { %2825 = vmatpush1.bf16.msra.mxu0 %v5449_v39 }
 0x563   :  { %2826 = vmatprep.subr.bf16.mxu0 %v5454_v40 }
 0x566   :  { %2827 = vmatpush1.bf16.msra.mxu0 %v5452_v42 }
 0x567   :  { %2828 = vmatprep.subr.bf16.mxu0 %v5457_v43 }
 0x56a   :  { %2829 = vmatpush1.bf16.msra.mxu0 %v5455_v44 }
 0x56b   :  { %2830 = vmatprep.subr.bf16.mxu0 %v5460_v45 }
 0x56e   :  { %2831 = vmatpush1.bf16.msra.mxu0 %v5458_v46 }
 0x56f   :  { %2832 = vmatprep.subr.bf16.mxu0 %v5463_v47 }
 0x572   :  { %2833 = vmatpush1.bf16.msra.mxu0 %v5461_v48 }
 0x573   :  { %2834 = vmatprep.subr.bf16.mxu0 %v5466_v49 }
 0x576   :  { %2835 = vmatpush1.bf16.msra.mxu0 %v5464_v50  ;;  %v5483_v50 = vld [vmem:[#allocation13] ss:$16 sps:$4 sm:$0xff]  }
 0x577   :  { %3456 = vmatprep.subr.bf16.mxu0 %v5500_v57  ;;  %v5497_v57 = vld [vmem:[#allocation13 + $0x84] ss:$16 sps:$4 sm:$0xff]  }
 0x579   :  { %2837 = vmatmul.mubr.bf16.vlgmr.msra.gmra.mrb[16].mxu0 %v6734_v9  ;;  %v5546_v9 = vld [vmem:[#allocation13 + $0x108] ss:$16 sps:$4 sm:$0xff]  }
 0x57a   :  { %3488 = vmatprep.mubr.bf16.mxu0 %v6311_v15  ;;  %3457 = vmatpush1.bf16.msra.mxu0 %v5498_v56  ;;  %v5492_v56 = vld [vmem:[#allocation13 + $0x60] ss:$16 sps:$4 sm:$0xff]  }
 0x57b   :  { %3458 = vmatprep.subr.bf16.mxu0 %v5506_v59  ;;  %v5503_v59 = vld [vmem:[#allocation13 + $0xa4] ss:$16 sps:$4 sm:$0xff]  }
 0x57e   :  { %3459 = vmatpush1.bf16.msra.mxu0 %v5504_v58  ;;  %v5495_v58 = vld [vmem:[#allocation13 + $0x80] ss:$16 sps:$4 sm:$0xff]  }
 0x57f   :  { %3460 = vmatprep.subr.bf16.mxu0 %v5512_v61  ;;  %v5509_v61 = vld [vmem:[#allocation13 + $0xc4] ss:$16 sps:$4 sm:$0xff]  }
 0x582   :  { %3461 = vmatpush1.bf16.msra.mxu0 %v5510_v60  ;;  %v5501_v60 = vld [vmem:[#allocation13 + $0xa0] ss:$16 sps:$4 sm:$0xff]  }
 0x583   :  { %3462 = vmatprep.subr.bf16.mxu0 %v5518_v63  ;;  %v5513_v63 = vld [vmem:[#allocation13 + $0xe0] ss:$16 sps:$4 sm:$0xff]  }
 0x586   :  { %3463 = vmatpush1.bf16.msra.mxu0 %v5516_v62  ;;  %v5515_v62 = vld [vmem:[#allocation13 + $0xe4] ss:$16 sps:$4 sm:$0xff]  }
 0x587   :  { %3464 = vmatprep.subr.bf16.mxu0 %v5524_v0  ;;  %v5519_v0 = vld [vmem:[#allocation13 + $0x100] ss:$16 sps:$4 sm:$0xff]  }
 0x58a   :  { %3465 = vmatpush1.bf16.msra.mxu0 %v5522_v41  ;;  %v5521_v41 = vld [vmem:[#allocation13 + $0x104] ss:$16 sps:$4 sm:$0xff]  }
 0x58b   :  { %3466 = vmatprep.subr.bf16.mxu0 %v5530_v3  ;;  %v5525_v3 = vld [vmem:[#allocation13 + $0x120] ss:$16 sps:$4 sm:$0xff]  }
 0x58e   :  { %3467 = vmatpush1.bf16.msra.mxu0 %v5528_v1  ;;  %v5527_v1 = vld [vmem:[#allocation13 + $0x124] ss:$16 sps:$4 sm:$0xff]  }
 0x58f   :  { %3468 = vmatprep.subr.bf16.mxu0 %v5536_v6  ;;  %v5531_v6 = vld [vmem:[#allocation13 + $0x140] ss:$16 sps:$4 sm:$0xff]  }
 0x592   :  { %3469 = vmatpush1.bf16.msra.mxu0 %v5534_v5  ;;  %v5533_v5 = vld [vmem:[#allocation13 + $0x144] ss:$16 sps:$4 sm:$0xff]  }
 0x593   :  { %3470 = vmatprep.subr.bf16.mxu0 %v5542_v8  ;;  %v5537_v8 = vld [vmem:[#allocation13 + $0x160] ss:$16 sps:$4 sm:$0xff]  }
 0x596   :  { %3471 = vmatpush1.bf16.msra.mxu0 %v5540_v7  ;;  %v5539_v7 = vld [vmem:[#allocation13 + $0x164] ss:$16 sps:$4 sm:$0xff]  }
 0x597   :  { %3472 = vmatprep.subr.bf16.mxu0 %v5548_v10  ;;  %v5543_v10 = vld [vmem:[#allocation13 + $0x180] ss:$16 sps:$4 sm:$0xff]  }
 0x59a   :  { %3473 = vmatpush1.bf16.msra.mxu0 %v5546_v9  ;;  %v5545_v9 = vld [vmem:[#allocation13 + $0x184] ss:$16 sps:$4 sm:$0xff]  }
 0x59b   :  { %3474 = vmatprep.subr.bf16.mxu0 %v5554_v14  ;;  %v5549_v14 = vld [vmem:[#allocation13 + $0x1a0] ss:$16 sps:$4 sm:$0xff]  }
 0x59e   :  { %3475 = vmatpush1.bf16.msra.mxu0 %v5552_v11  ;;  %v5551_v11 = vld [vmem:[#allocation13 + $0x1a4] ss:$16 sps:$4 sm:$0xff]  }
 0x59f   :  { %3476 = vmatprep.subr.bf16.mxu0 %v5560_v17  ;;  %v5555_v17 = vld [vmem:[#allocation13 + $0x1c0] ss:$16 sps:$4 sm:$0xff]  }
 0x5a2   :  { %3477 = vmatpush1.bf16.msra.mxu0 %v5558_v16  ;;  %v5557_v16 = vld [vmem:[#allocation13 + $0x1c4] ss:$16 sps:$4 sm:$0xff]  }
 0x5a3   :  { %3478 = vmatprep.subr.bf16.mxu0 %v5566_v12  ;;  %v5561_v12 = vld [vmem:[#allocation13 + $0x1e0] ss:$16 sps:$4 sm:$0xff]  }
 0x5a6   :  { %3479 = vmatpush1.bf16.msra.mxu0 %v5564_v18  ;;  %v5563_v18 = vld [vmem:[#allocation13 + $0x1e4] ss:$16 sps:$4 sm:$0xff]  }
 0x5a7   :  { %3480 = vmatprep.subr.bf16.mxu0 %v5569_v19  ;;  %v5572_v19 = vld [vmem:[#allocation15 + $0x4] ss:$16 sps:$4 sm:$0xff]  }
 0x5aa   :  { %3481 = vmatpush1.bf16.msra.mxu0 %v5567_v20  ;;  %v5570_v20 = vld [vmem:[#allocation15] ss:$16 sps:$4 sm:$0xff]  }
 0x5ab   :  { %3482 = vmatprep.subr.bf16.mxu0 %v5575_v21  ;;  %v5576_v21 = vld [vmem:[#allocation15 + $0x20] ss:$16 sps:$4 sm:$0xff]  }
 0x5ae   :  { %3483 = vmatpush1.bf16.msra.mxu0 %v5573_v28  ;;  %v5578_v28 = vld [vmem:[#allocation15 + $0x24] ss:$16 sps:$4 sm:$0xff]  }
 0x5af   :  { %3484 = vmatprep.subr.bf16.mxu0 %v5581_v24  ;;  %v5584_v24 = vld [vmem:[#allocation15 + $0xc] ss:$16 sps:$4 sm:$0xff]  }
 0x5b2   :  { %3485 = vmatpush1.bf16.msra.mxu0 %v5579_v22  ;;  %v5993_v22 = vmov 0  }
 0x5b3   :  { %3486 = vmatprep.subr.bf16.mxu0 %v5587_v30  ;;  %v5590_v30 = vld [vmem:[#allocation15 + $0x2c] ss:$16 sps:$4 sm:$0xff]  }
 0x5b6   :  { %3487 = vmatpush1.bf16.msra.mxu0 %v5585_v13  ;;  %v6756_v13 = vld [vmem:[#allocation15 + $0x8] ss:$16 sps:$4 sm:$0xff]  }
 0x5b9   :  { %3489 = vmatmul.mubr.bf16.vlgmr.msra.gmra.mrb[20].mxu0 %v6335_v26 }
 0x64c   :  { %v2838_v35 = vpop.f32.mrb[16].mxu0 }
 0x64d   :  { %v4969_v36 = vadd.f32 %v2838_v35, %v2434_v33  ;;  %v2840_v37 = vpop.f32.mrb[17].mxu0  ;;  %v5604_v35 = vld [vmem:[%s6956_s16 + $0xd0] sm:$0xff]  }
 0x64e   :  { %v4970_v38 = vadd.f32 %v2840_v37, %v2438_v34  ;;  %v2842_v39 = vpop.f32.mrb[18].mxu0  ;;  %v5608_v37 = vld [vmem:[%s6956_s16 + $0xd8] sm:$0xff]  }
 0x64f   :  { %v4971_v40 = vadd.f32 %v2842_v39, %v2434_v33  ;;  %v2844_v42 = vpop.f32.mrb[19].mxu0  ;;  %v2847_v44 = vmax.f32 %v4969_v36, 0.0  ;;  %v5598_v33 = vld [vmem:[%s6956_s16 + $0x80] sm:$0xff]   ;;  %v5606_v36 = vld [vmem:[%s6956_s16 + $0x90] sm:$0xff]  }
 0x650   :  { %v4972_v43 = vadd.f32 %v2844_v42, %v2438_v34  ;;  %v2848_v46 = vmax.f32 %v4970_v38, 0.0  ;;  %v5600_v34 = vld [vmem:[%s6956_s16 + $0xc8] sm:$0xff]   ;;  %v5610_v38 = vld [vmem:[%s6956_s16 + $0x98] sm:$0xff]   ;;  %v5612_v39 = vld [vmem:[%s6956_s16 + $0xe0] sm:$0xff]  }
 0x651   :  { %v2849_v45 = vmax.f32 %v4971_v40, 0.0  ;;  %v5614_v40 = vld [vmem:[%s6956_s16 + $0xa0] sm:$0xff]   ;;  %v5616_v42 = vld [vmem:[%s6956_s16 + $0xe8] sm:$0xff]  }
 0x652   :  { %v2850_v47 = vmax.f32 %v4972_v43, 0.0 }
 0x653   :  { %v2851_v48 = vpack.c.bf16 %v2849_v45, %v2847_v44  ;;  %v5618_v44 = vld [vmem:[%s6956_s16 + $0xa8] sm:$0xff]  }
 0x654   :  { %v2852_v49 = vpack.c.bf16 %v2850_v47, %v2848_v46 }
 0x656   :  { %3020 = vmatprep.mubr.bf16.mxu1 %v2852_v49  ;;  %v5620_v49 = vld [vmem:[%s6956_s16 + $0xb0] sm:$0xff]  }
 0x657   :  { %3021 = vmatmul.mubr.bf16.vlgmr.msra.gmra.mrb[16].mxu1 %v2851_v48  ;;  %v5619_v48 = vld [vmem:[%s6956_s16 + $0xf0] sm:$0xff]  }
 0x658   :  { %3414 = vmatpush1.bf16.msra.mxu1 %v5483_v50  ;;  %3445 = vmatprep.mubr.bf16.mxu1 %v6311_v15  ;;  %v5507_v15 = vld [vmem:[#allocation13 + $0xc0] ss:$16 sps:$4 sm:$0xff]   ;;  %v5621_v50 = vld [vmem:[%s6956_s16 + $0xf8] sm:$0xff]  }
 0x659   :  { %3415 = vmatprep.subr.bf16.mxu1 %v5488_v51  ;;  %v5622_v51 = vld [vmem:[%s6956_s16 + $0xb8] sm:$0xff]  }
 0x65c   :  { %3416 = vmatpush1.bf16.msra.mxu1 %v5486_v52 }
 0x65d   :  { %3417 = vmatprep.subr.bf16.mxu1 %v5491_v53 }
 0x660   :  { %3418 = vmatpush1.bf16.msra.mxu1 %v5489_v54 }
 0x661   :  { %3419 = vmatprep.subr.bf16.mxu1 %v5494_v55 }
 0x664   :  { %3420 = vmatpush1.bf16.msra.mxu1 %v5492_v56  ;;  %v4674_v56 = vld [vmem:[%s6952_s12] ss:$0 sm:$0xff] }
 0x665   :  { %3421 = vmatprep.subr.bf16.mxu1 %v5497_v57 }
 0x668   :  { %3422 = vmatpush1.bf16.msra.mxu1 %v5495_v58 }
 0x669   :  { %3423 = vmatprep.subr.bf16.mxu1 %v5503_v59 }
 0x66c   :  { %3424 = vmatpush1.bf16.msra.mxu1 %v5501_v60 }
 0x66d   :  { %3425 = vmatprep.subr.bf16.mxu1 %v5509_v61 }
 0x670   :  { %3426 = vmatpush1.bf16.msra.mxu1 %v5507_v15  ;;  %v5591_v15 = vld [vmem:[%s6956_s16 + $0x40] sm:$0xff]  }
 0x671   :  { %3427 = vmatprep.subr.bf16.mxu1 %v5515_v62  ;;  %v5592_v62 = vld [vmem:[%s6956_s16] sm:$0xff]  }
 0x674   :  { %3428 = vmatpush1.bf16.msra.mxu1 %v5513_v63  ;;  %v5593_v63 = vld [vmem:[%s6956_s16 + $0x48] sm:$0xff]  }
 0x675   :  { %3429 = vmatprep.subr.bf16.mxu1 %v5521_v41  ;;  %v5594_v41 = vld [vmem:[%s6956_s16 + $0x8] sm:$0xff]  }
 0x678   :  { %3430 = vmatpush1.bf16.msra.mxu1 %v5519_v0  ;;  %v5595_v0 = vld [vmem:[%s6956_s16 + $0x50] sm:$0xff]  }
 0x679   :  { %3431 = vmatprep.subr.bf16.mxu1 %v5527_v1  ;;  %v5597_v1 = vld [vmem:[%s6956_s16 + $0x10] sm:$0xff]  }
 0x67c   :  { %3432 = vmatpush1.bf16.msra.mxu1 %v5525_v3  ;;  %v5599_v3 = vld [vmem:[%s6956_s16 + $0x58] sm:$0xff]  }
 0x67d   :  { %3433 = vmatprep.subr.bf16.mxu1 %v5533_v5  ;;  %v5601_v5 = vld [vmem:[%s6956_s16 + $0x18] sm:$0xff]  }
 0x680   :  { %3434 = vmatpush1.bf16.msra.mxu1 %v5531_v6  ;;  %v5603_v6 = vld [vmem:[%s6956_s16 + $0x60] sm:$0xff]  }
 0x681   :  { %3435 = vmatprep.subr.bf16.mxu1 %v5539_v7  ;;  %v5605_v7 = vld [vmem:[%s6956_s16 + $0x20] sm:$0xff]  }
 0x684   :  { %3436 = vmatpush1.bf16.msra.mxu1 %v5537_v8  ;;  %v5607_v8 = vld [vmem:[%s6956_s16 + $0x68] sm:$0xff]  }
 0x685   :  { %3437 = vmatprep.subr.bf16.mxu1 %v5545_v9  ;;  %v5609_v9 = vld [vmem:[%s6956_s16 + $0x28] sm:$0xff]  }
 0x688   :  { %3438 = vmatpush1.bf16.msra.mxu1 %v5543_v10  ;;  %v5611_v10 = vld [vmem:[%s6956_s16 + $0x70] sm:$0xff]  }
 0x689   :  { %3439 = vmatprep.subr.bf16.mxu1 %v5551_v11  ;;  %v5613_v11 = vld [vmem:[%s6956_s16 + $0x30] sm:$0xff]  }
 0x68c   :  { %3440 = vmatpush1.bf16.msra.mxu1 %v5549_v14  ;;  %v6798_v43 = vpop.f32.mrb[20].mxu0  ;;  %v5615_v14 = vld [vmem:[%s6956_s16 + $0x78] sm:$0xff]  }
 0x68d   :  { %3441 = vmatprep.subr.bf16.mxu1 %v5557_v16  ;;  %v6803_v45 = vpop.f32.mrb[21].mxu0  ;;  %v5617_v16 = vld [vmem:[%s6956_s16 + $0x38] sm:$0xff]  }
 0x68e   :  { %v6805_v46 = vpop.f32.mrb[22].mxu0 }
 0x68f   :  { %v6807_v47 = vpop.f32.mrb[23].mxu0 }
 0x690   :  { %3442 = vmatpush1.bf16.msra.mxu1 %v5555_v17 }
 0x691   :  { %3443 = vmatprep.subr.bf16.mxu1 %v5563_v18 }
 0x694   :  { %3444 = vmatpush1.bf16.msra.mxu1 %v5561_v12 }
 0x695   :  { %3552 = vmatprep.subr.bf16.mxu1 %v5572_v19 }
 0x697   :  { %3446 = vmatmul.mubr.bf16.vlgmr.msra.gmra.mrb[20].mxu1 %v6335_v26  ;;  %v5596_v26 = vld [vmem:[%s6956_s16 + $0xc0] sm:$0xff]  }
 0x698   :  { %3553 = vmatpush1.bf16.msra.mxu1 %v5570_v20  ;;  %3584 = vmatprep.mubr.bf16.mxu1 %v5993_v22 }
 0x699   :  { %3554 = vmatprep.subr.bf16.mxu1 %v5578_v28  ;;  %4889 = vmatprep.subr.bf16.mxu0 %v5596_v26 }
 0x69a   :  { %4890 = vmatpush3.bf16.msra.mxu0 %v5598_v33 }
 0x69b   :  { %4891 = vmatprep.subr.bf16.mxu0 %v5600_v34 }
 0x69c   :  { %3555 = vmatpush1.bf16.msra.mxu1 %v5576_v21 }
 0x69d   :  { %3595 = vmatprep.subr.bf16.mxu1 %v5584_v24 }
 0x69f   :  { %4763 = vmatmul.mubr.msk.bf16.vlgmr.msra.gmra.mrb[24].mxu1 %vm3548_vm2, %v6678_v27 }
 0x6a0   :  { %3596 = vmatpush1.bf16.msra.mxu1 %v6756_v13  ;;  %3627 = vmatprep.mubr.bf16.mxu1 %v5993_v22 }
 0x6a1   :  { %3597 = vmatprep.subr.bf16.mxu1 %v5590_v30 }
 0x6a4   :  { %3598 = vmatpush1.bf16.msra.mxu1 %v5588_v32 }
 0x6a5   :  { %3688 = vmatprep.subr.bf16.mxu1 %v5572_v19 }
 0x6a7   :  { %4764 = vmatmul.mubr.msk.bf16.vlgmr.msra.gmra.mrb[28].mxu1 %vm3548_vm2, %v6678_v27  ;;  %v5602_v27 = vld [vmem:[%s6956_s16 + $0x88] sm:$0xff]  }
 0x6a8   :  { %3689 = vmatpush1.bf16.msra.mxu1 %v5570_v20  ;;  %3720 = vmatprep.mubr.bf16.mxu1 %v5993_v22  ;;  %v3646_v20 = vld [vmem:[#allocation16] sm:$0xf] }
 0x6a9   :  { %3690 = vmatprep.subr.bf16.mxu1 %v5578_v28  ;;  %4892 = vmatpush3.bf16.msra.mxu0 %v5602_v27  ;;  %v3651_v28 = vrot.slane %v3646_v20, %v6671_v29 }
 0x6aa   :  { %4893 = vmatprep.subr.bf16.mxu0 %v5604_v35 }
 0x6ac   :  { %3691 = vmatpush1.bf16.msra.mxu1 %v5576_v21 }
 0x6ad   :  { %3731 = vmatprep.subr.bf16.mxu1 %v5584_v24  ;;  %4894 = vmatpush3.bf16.msra.mxu0 %v5606_v36 }
 0x6ae   :  { %4895 = vmatprep.subr.bf16.mxu0 %v5608_v37 }
 0x6b1   :  { %4896 = vmatpush3.bf16.msra.mxu0 %v5610_v38 }
 0x6b2   :  { %4897 = vmatprep.subr.bf16.mxu0 %v5612_v39 }
 0x6b5   :  { %4898 = vmatpush3.bf16.msra.mxu0 %v5614_v40  ;;  %v3659_v40 = vrot.slane %v3646_v20, %v6681_v2 }
 0x6b6   :  { %4899 = vmatprep.subr.bf16.mxu0 %v5616_v42 }
 0x6b9   :  { %4900 = vmatpush3.bf16.msra.mxu0 %v5618_v44 }
 0x6ba   :  { %4901 = vmatprep.subr.bf16.mxu0 %v5619_v48 }
 0x6bd   :  { %4902 = vmatpush3.bf16.msra.mxu0 %v5620_v49 }
 0x6be   :  { %4903 = vmatprep.subr.bf16.mxu0 %v5621_v50 }
 0x6c1   :  { %4904 = vmatpush3.bf16.msra.mxu0 %v5622_v51 }
 0x72a   :  { %v4855_v52 = vpop.f32.mrb[16].mxu1 }
 0x72b   :  { %v4856_v53 = vpop.f32.mrb[17].mxu1 }
 0x72c   :  { %v4857_v54 = vadd.f32 %v4856_v53, %v4855_v52  ;;  %v4858_v55 = vpop.f32.mrb[18].mxu1 }
 0x72d   :  { %v4859_v57 = vpop.f32.mrb[19].mxu1 }
 0x72e   :  { %v4860_v58 = vadd.f32 %v4859_v57, %v4858_v55  ;;  %v6824_v59 = vadd.f32 %v4857_v54, %v4674_v56 }
 0x730   :  { %v6826_v60 = vadd.f32 %v4860_v58, %v4674_v56 }
 0x732   :  { %v3684_v61 = vpack.c.bf16 %v6826_v60, %v6824_v59 }
 0x734   :  { %4765 = vmatmul.mubr.msk.bf16.vlgmr.msra.gmra.mrb[32].mxu1 %vm3548_vm2, %v3684_v61 }
 0x735   :  { %3732 = vmatpush1.bf16.msra.mxu1 %v6756_v13  ;;  %3763 = vmatprep.mubr.bf16.mxu1 %v5993_v22  ;;  %v3655_v22 = vrot.slane %v3646_v20, %v6674_v31  ;;  %v3663_v31 = vrot.slane %v3646_v20, %v6684_v4 }
 0x736   :  { %3733 = vmatprep.subr.bf16.mxu1 %v5590_v30 }
 0x739   :  { %3734 = vmatpush1.bf16.msra.mxu1 %v5588_v32 }
 0x73a   :  { %4861 = vmatprep.subr.bf16.mxu1 %v5591_v15 }
 0x73c   :  { %4766 = vmatmul.mubr.msk.bf16.vlgmr.msra.gmra.mrb[36].mxu1 %vm3548_vm2, %v3684_v61 }
 0x73d   :  { %4862 = vmatpush3.bf16.msra.mxu1 %v5592_v62 }
 0x73e   :  { %4863 = vmatprep.subr.bf16.mxu1 %v5593_v63 }
 0x741   :  { %4864 = vmatpush3.bf16.msra.mxu1 %v5594_v41 }
 0x742   :  { %4865 = vmatprep.subr.bf16.mxu1 %v5595_v0 }
 0x745   :  { %4866 = vmatpush3.bf16.msra.mxu1 %v5597_v1 }
 0x746   :  { %4867 = vmatprep.subr.bf16.mxu1 %v5599_v3 }
 0x749   :  { %4868 = vmatpush3.bf16.msra.mxu1 %v5601_v5 }
 0x74a   :  { %4869 = vmatprep.subr.bf16.mxu1 %v5603_v6 }
 0x74d   :  { %4870 = vmatpush3.bf16.msra.mxu1 %v5605_v7 }
 0x74e   :  { %4871 = vmatprep.subr.bf16.mxu1 %v5607_v8 }
 0x751   :  { %4872 = vmatpush3.bf16.msra.mxu1 %v5609_v9 }
 0x752   :  { %4873 = vmatprep.subr.bf16.mxu1 %v5611_v10 }
 0x755   :  { %4874 = vmatpush3.bf16.msra.mxu1 %v5613_v11 }
 0x756   :  { %4875 = vmatprep.subr.bf16.mxu1 %v5615_v14 }
 0x759   :  { %4876 = vmatpush3.bf16.msra.mxu1 %v5617_v16 }
 0x76a   :  { %v3447_v17 = vpop.f32.mrb[20].mxu1 }
 0x76b   :  { %v3449_v18 = vpop.f32.mrb[21].mxu1 }
 0x76c   :  { %v3451_v12 = vpop.f32.mrb[22].mxu1 }
 0x76d   :  { %v3453_v19 = vpop.f32.mrb[23].mxu1 }
 0x772   :  { %v3586_v21 = vpop.f32.mrb[24].mxu1 }
 0x773   :  { %v3638_v24 = vadd.f32 %v3586_v21, %v3447_v17  ;;  %v3588_v13 = vpop.f32.mrb[25].mxu1 }
 0x774   :  { %v3639_v30 = vadd.f32 %v3588_v13, %v3449_v18  ;;  %v3590_v32 = vpop.f32.mrb[26].mxu1 }
 0x775   :  { %v3668_v26 = vadd.f32 %v3651_v28, %v3638_v24  ;;  %v3642_v33 = vadd.f32 %v3590_v32, %v3451_v12  ;;  %v3592_v34 = vpop.f32.mrb[27].mxu1 }
 0x776   :  { %v3669_v27 = vadd.f32 %v3655_v22, %v3639_v30  ;;  %v3643_v35 = vadd.f32 %v3592_v34, %v3453_v19 }
 0x777   :  { %v3672_v36 = vadd.f32 %v3651_v28, %v3642_v33  ;;  %v3676_v38 = vmax.f32 %v3668_v26, 0.0 }
 0x778   :  { %v3673_v37 = vadd.f32 %v3655_v22, %v3643_v35  ;;  %v3677_v42 = vmax.f32 %v3669_v27, 0.0 }
 0x779   :  { %v3680_v39 = vmax.f32 %v3672_v36, 0.0 }
 0x77a   :  { %v3681_v29 = vmax.f32 %v3673_v37, 0.0  ;;  %v3629_v44 = vpop.f32.mrb[28].mxu1 }
 0x77b   :  { %v3798_v48 = vpack.c.bf16 %v3680_v39, %v3676_v38  ;;  %v3640_v49 = vadd.f32 %v3629_v44, %v6798_v43  ;;  %v3631_v50 = vpop.f32.mrb[29].mxu1 }
 0x77c   :  { %v3641_v51 = vadd.f32 %v3631_v50, %v6803_v45  ;;  %v3633_v52 = vpop.f32.mrb[30].mxu1  ;;  %v3799_v53 = vpack.c.bf16 %v3681_v29, %v3677_v42 }
 0x77d   :  { %v3670_v54 = vadd.f32 %v3659_v40, %v3640_v49  ;;  %v3644_v55 = vadd.f32 %v3633_v52, %v6805_v46  ;;  %v3635_v56 = vpop.f32.mrb[31].mxu1  ;;  %v4767_v52 = vld [vmem:[#allocation18] ss:$0 sm:$0xff] }
 0x77e   :  { %v3671_v57 = vadd.f32 %v3663_v31, %v3641_v51  ;;  %v3645_v2 = vadd.f32 %v3635_v56, %v6807_v47  ;;  %4101 = vmatprep.mubr.bf16.mxu1 %v3799_v53 }
 0x77f   :  { %v3674_v58 = vadd.f32 %v3659_v40, %v3644_v55  ;;  %4102 = vmatmul.mubr.bf16.vlgmr.msra.gmra.mrb[40].mxu1 %v3798_v48  ;;  %v3678_v4 = vmax.f32 %v3670_v54, 0.0 }
 0x780   :  { %v3675_v61 = vadd.f32 %v3663_v31, %v3645_v2  ;;  %v3679_v62 = vmax.f32 %v3671_v57, 0.0 }
 0x781   :  { %v3682_v15 = vmax.f32 %v3674_v58, 0.0 }
 0x782   :  { %v3683_v63 = vmax.f32 %v3675_v61, 0.0 }
 0x783   :  { %v3800_v41 = vpack.c.bf16 %v3682_v15, %v3678_v4 }
 0x784   :  { %v3801_v0 = vpack.c.bf16 %v3683_v63, %v3679_v62 }
 0x786   :  { %4150 = vmatprep.mubr.bf16.mxu0 %v3801_v0 }
 0x787   :  { %4151 = vmatmul.mubr.bf16.vlgmr.msra.gmra.mrb[24].mxu0 %v3800_v41 }
 0x807   :  { %v3722_v1 = vpop.f32.mrb[32].mxu1 }
 0x808   :  { %v3774_v3 = vadd.f32 %v3722_v1, %v3447_v17  ;;  %v3724_v5 = vpop.f32.mrb[33].mxu1 }
 0x809   :  { %v3775_v6 = vadd.f32 %v3724_v5, %v3449_v18  ;;  %v3726_v7 = vpop.f32.mrb[34].mxu1 }
 0x80a   :  { %v3782_v8 = vadd.f32 %v3774_v3, %v3651_v28  ;;  %v3778_v9 = vadd.f32 %v3726_v7, %v3451_v12  ;;  %v3728_v10 = vpop.f32.mrb[35].mxu1 }
 0x80b   :  { %v3783_v11 = vadd.f32 %v3775_v6, %v3655_v22  ;;  %v3779_v14 = vadd.f32 %v3728_v10, %v3453_v19 }
 0x80c   :  { %v3786_v16 = vadd.f32 %v3778_v9, %v3651_v28  ;;  %v3790_v21 = vmax.f32 %v3782_v8, 0.0 }
 0x80d   :  { %v3787_v20 = vadd.f32 %v3779_v14, %v3655_v22  ;;  %v3791_v13 = vmax.f32 %v3783_v11, 0.0 }
 0x80e   :  { %v3794_v24 = vmax.f32 %v3786_v16, 0.0 }
 0x80f   :  { %v3795_v30 = vmax.f32 %v3787_v20, 0.0  ;;  %v3765_v32 = vpop.f32.mrb[36].mxu1 }
 0x810   :  { %v3776_v26 = vadd.f32 %v3765_v32, %v6798_v43  ;;  %v3767_v33 = vpop.f32.mrb[37].mxu1  ;;  %v3802_v34 = vpack.c.bf16 %v3794_v24, %v3790_v21 }
 0x811   :  { %v3777_v17 = vadd.f32 %v3767_v33, %v6803_v45  ;;  %v3769_v18 = vpop.f32.mrb[38].mxu1  ;;  %v3803_v27 = vpack.c.bf16 %v3795_v30, %v3791_v13 }
 0x812   :  { %v3784_v35 = vadd.f32 %v3776_v26, %v3659_v40  ;;  %v3780_v12 = vadd.f32 %v3769_v18, %v6805_v46  ;;  %v3771_v36 = vpop.f32.mrb[39].mxu1 }
 0x813   :  { %v3785_v19 = vadd.f32 %v3777_v17, %v3663_v31  ;;  %v3781_v28 = vadd.f32 %v3771_v36, %v6807_v47  ;;  %4109 = vmatprep.mubr.bf16.mxu1 %v3803_v27  ;;  %v4375_v17 = vld [vmem:[#allocation22] ss:$0 sm:$0xff] }
 0x814   :  { %v3788_v22 = vadd.f32 %v3780_v12, %v3659_v40  ;;  %4110 = vmatmul.mubr.bf16.gmra.mrb[44].mxu1 %v3802_v34  ;;  %v3792_v38 = vmax.f32 %v3784_v35, 0.0 }
 0x815   :  { %v3789_v37 = vadd.f32 %v3781_v28, %v3663_v31  ;;  %v3793_v43 = vmax.f32 %v3785_v19, 0.0  ;;  %v542_v28 = vadd.f32 %v4375_v17, %v6664_v23 }
 0x816   :  { %v3796_v39 = vmax.f32 %v3788_v22, 0.0 }
 0x817   :  { %v3797_v42 = vmax.f32 %v3789_v37, 0.0 }
 0x818   :  { %v3804_v29 = vpack.c.bf16 %v3796_v39, %v3792_v38  ;;  %v545_v38 = vadd.f32 %v4375_v17, %v6666_v25  ;;  %v5623_v25 = vld [vmem:[%s6958_s18] sm:$0xff]  }
 0x819   :  { %v3805_v44 = vpack.c.bf16 %v3797_v42, %v3793_v43  ;;  %v549_v43 = vsel %vm548_vm1, %v542_v28, -inf  ;;  %4949 = vmatprep.subr.bf16.mxu1 %v5623_v25 }
 0x81a   :  { %v552_v42 = vsel %vm548_vm1, %v545_v38, -inf  ;;  %4950 = vmatpush3.bf16.msra.mxu1 %v5623_v25 }
 0x81b   :  { %4158 = vmatprep.mubr.bf16.mxu0 %v3805_v44 }
 0x81c   :  { %4159 = vmatmul.mubr.bf16.gmra.mrb[28].mxu0 %v3804_v29 }
 0x852   :  { %v4877_v45 = vpop.f32.mrb[40].mxu1 }
 0x853   :  { %v4878_v48 = vpop.f32.mrb[41].mxu1 }
 0x854   :  { %v4879_v49 = vadd.f32 %v4878_v48, %v4877_v45  ;;  %v4880_v46 = vpop.f32.mrb[42].mxu1 }
 0x855   :  { %v4881_v50 = vpop.f32.mrb[43].mxu1 }
 0x856   :  { %v4882_v51 = vadd.f32 %v4881_v50, %v4880_v46  ;;  %v4104_v40 = vadd.f32 %v4879_v49, %v4767_v52  ;;  %v5624_v49 = vld [vmem:[%s6958_s18 + $0x8] sm:$0xff]   ;;  %v5625_v46 = vld [vmem:[%s6958_s18 + $0x10] sm:$0xff]   ;;  %v5626_v50 = vld [vmem:[%s6958_s18 + $0x18] sm:$0xff]   ;;  %s5994_s18 = smov 96  }
 0x857   :  { %4951 = vmatprep.subr.bf16.mxu1 %v5624_v49 }
 0x858   :  { %v4107_v56 = vadd.f32 %v4882_v51, %v4767_v52  ;;  %4952 = vmatpush3.bf16.msra.mxu1 %v5624_v49 }
 0x859   :  { %4953 = vmatprep.subr.bf16.mxu1 %v5625_v46 }
 0x85a   :  { %v4905_v47 = vpop.f32.mrb[24].mxu0 }
 0x85b   :  { %v4906_v53 = vpop.f32.mrb[25].mxu0 }
 0x85c   :  { %v4907_v54 = vadd.f32 %v4906_v53, %v4905_v47  ;;  %v4908_v31 = vpop.f32.mrb[26].mxu0  ;;  %4954 = vmatpush3.bf16.msra.mxu1 %v5625_v46 }
 0x85d   :  { %v4909_v55 = vpop.f32.mrb[27].mxu0  ;;  %4955 = vmatprep.subr.bf16.mxu1 %v5626_v50 }
 0x85e   :  { %v4153_v57 = vadd.f32 %v4907_v54, %v4104_v40  ;;  %v4910_v2 = vadd.f32 %v4909_v55, %v4908_v31 }
 0x860   :  { %v4171_v58 = vmul.f32 0.01, %v4153_v57  ;;  %v4156_v61 = vadd.f32 %v4910_v2, %v4107_v56  ;;  %vm4167_vm3 = vcmp.gt.f32.partialorder %v4153_v57, 0.0  ;;  %4956 = vmatpush3.bf16.msra.mxu1 %v5626_v50 }
 0x862   :  { %v4172_v4 = vmul.f32 0.01, %v4156_v61  ;;  %v4175_v15 = vsel %vm4167_vm3, %v4153_v57, %v4171_v58  ;;  %vm4168_vm5 = vcmp.gt.f32.partialorder %v4156_v61, 0.0 }
 0x863   :  { %v4179_v62 = vmul.f32 %v4175_v15, %v4175_v15 }
 0x864   :  { %v4176_v63 = vsel %vm4168_vm5, %v4156_v61, %v4172_v4 }
 0x865   :  { %v4184_v41 = vsel %vm4183_vm4, %v4179_v62, 0.0  ;;  %v4180_v0 = vmul.f32 %v4176_v63, %v4176_v63 }
 0x866   :  { %4185 = vadd.xlane.f32.xlu1 %v4184_v41 }
 0x867   :  { %v4187_v1 = vsel %vm4183_vm4, %v4180_v0, 0.0 }
 0x86a   :  { %4188 = vadd.xlane.f32.xlu1 %v4187_v1 }
 0x8e7   :  { %v4883_v3 = vpop.f32.mrb[44].mxu1 }
 0x8e8   :  { %v4884_v5 = vpop.f32.mrb[45].mxu1 }
 0x8e9   :  { %v4885_v6 = vadd.f32 %v4884_v5, %v4883_v3  ;;  %v4886_v7 = vpop.f32.mrb[46].mxu1 }
 0x8ea   :  { %v4887_v8 = vpop.f32.mrb[47].mxu1 }
 0x8eb   :  { %v4888_v9 = vadd.f32 %v4887_v8, %v4886_v7  ;;  %v4112_v14 = vadd.f32 %v4885_v6, %v4767_v52 }
 0x8ed   :  { %v4115_v24 = vadd.f32 %v4888_v9, %v4767_v52 }
 0x8ef   :  { %v4911_v10 = vpop.f32.mrb[28].mxu0 }
 0x8f0   :  { %v4912_v11 = vpop.f32.mrb[29].mxu0 }
 0x8f1   :  { %v4913_v16 = vadd.f32 %v4912_v11, %v4911_v10  ;;  %v4914_v20 = vpop.f32.mrb[30].mxu0 }
 0x8f2   :  { %v4915_v21 = vpop.f32.mrb[31].mxu0 }
 0x8f3   :  { %v4161_v13 = vadd.f32 %v4913_v16, %v4112_v14  ;;  %v4186_v30 = vpop.xlane.xlu1 %4185  ;;  %v4916_v32 = vadd.f32 %v4915_v21, %v4914_v20 }
 0x8f4   :  { %v4196_v26 = vmax.f32 %v4186_v30, 1e-24 }
 0x8f5   :  { %v4173_v33 = vmul.f32 0.01, %v4161_v13  ;;  %v4164_v34 = vadd.f32 %v4916_v32, %v4115_v24  ;;  %vm4169_vm6 = vcmp.gt.f32.partialorder %v4161_v13, 0.0 }
 0x8f6   :  { %5631 = vrsqrt.f32 %v4196_v26 }
 0x8f7   :  { %v4174_v18 = vmul.f32 0.01, %v4164_v34  ;;  %v4189_v27 = vpop.xlane.xlu1 %4188  ;;  %v4177_v35 = vsel %vm4169_vm6, %v4161_v13, %v4173_v33  ;;  %vm4170_vm7 = vcmp.gt.f32.partialorder %v4164_v34, 0.0 }
 0x8f8   :  { %v4197_v12 = vmax.f32 %v4189_v27, 1e-24  ;;  %v4181_v36 = vmul.f32 %v4177_v35, %v4177_v35 }
 0x8f9   :  { %v4178_v19 = vsel %vm4170_vm7, %v4164_v34, %v4174_v18 }
 0x8fa   :  { %5633 = vrsqrt.f32 %v4197_v12  ;;  %v4190_v22 = vsel %vm4183_vm4, %v4181_v36, 0.0  ;;  %v4182_v37 = vmul.f32 %v4178_v19, %v4178_v19 }
 0x8fb   :  { %4191 = vadd.xlane.f32.xlu0 %v4190_v22 }
 0x8fc   :  { %v4193_v39 = vsel %vm4183_vm4, %v4182_v37, 0.0 }
 0x8fd   :  { %4194 = vadd.xlane.f32.xlu1 %v4193_v39 }
 0x8ff   :  { %550 = vmax.xlane.f32.xlu0 %v549_v43 }
 0x900   :  { %v5632_v29 = vpop.eup %5631 }
 0x901   :  { %553 = vmax.xlane.f32.xlu1 %v552_v42  ;;  %v4204_v45 = vmul.f32 %v5632_v29, %v4175_v15 }
 0x904   :  { %v5634_v44 = vpop.eup %5633 }
 0x905   :  { %v4205_v23 = vmul.f32 %v5634_v44, %v4176_v63 }
 0x907   :  { %v4208_v48 = vpack.c.bf16 %v4205_v23, %v4204_v45 }
 0x909   :  { %4957 = vmatprep.mubr.msk.bf16.mxu1 %vm4183_vm4, %v4208_v48 }
 0x988   :  { %v4192_v51 = vpop.xlane.xlu0 %4191 }
 0x989   :  { %v4198_v52 = vmax.f32 %v4192_v51, 1e-24 }
 0x98a   :  { %v4195_v47 = vpop.xlane.xlu1 %4194 }
 0x98b   :  { %5635 = vrsqrt.f32 %v4198_v52  ;;  %v4199_v53 = vmax.f32 %v4195_v47, 1e-24 }
 0x98c   :  { %v551_v40 = vpop.xlane.xlu0 %550 }
 0x98d   :  { %5637 = vrsqrt.f32 %v4199_v53  ;;  %v555_v54 = vsub.f32 %v542_v28, %v551_v40 }
 0x98e   :  { %v554_v31 = vpop.xlane.xlu1 %553 }
 0x98f   :  { %v557_v55 = vmul.f32 1.442695, %v555_v54  ;;  %v556_v56 = vsub.f32 %v545_v38, %v554_v31 }
 0x991   :  { %5639 = vpow2.f32 %v557_v55  ;;  %v559_v57 = vmul.f32 1.442695, %v556_v56 }
 0x993   :  { %5641 = vpow2.f32 %v559_v57 }
 0x995   :  { %v5636_v2 = vpop.eup %5635 }
 0x996   :  { %v4206_v61 = vmul.f32 %v5636_v2, %v4177_v35 }
 0x997   :  { %v5638_v58 = vpop.eup %5637 }
 0x998   :  { %v4207_v4 = vmul.f32 %v5638_v58, %v4178_v19 }
 0x99a   :  { %v4209_v15 = vpack.c.bf16 %v4207_v4, %v4206_v61 }
 0x99b   :  { %v5640_v62 = vpop.eup %5639 }
 0x99c   :  { %4958 = vmatmul.mubr.msk.bf16.vlgmr.msra.gmra.mrb[48].mxu1 %vm4183_vm4, %v4209_v15  ;;  %v561_v63 = vsel %vm548_vm1, %v5640_v62, 0.0 }
 0x99d   :  { %v5642_v41 = vpop.eup %5641  ;;  %562 = vadd.xlane.f32.xlu0 %v561_v63 }
 0x99e   :  { %v564_v0 = vsel %vm548_vm1, %v5642_v41, 0.0 }
 0x99f   :  { %565 = vadd.xlane.f32.xlu1 %v564_v0 }
 0xa2a   :  { %v563_v1 = vpop.xlane.xlu0 %562 }
 0xa2b   :  { %5643 = vrcp.f32 %v563_v1 }
 0xa2c   :  { %v566_v3 = vpop.xlane.xlu1 %565 }
 0xa2d   :  { %5645 = vrcp.f32 %v566_v3 }
 0xa35   :  { %v5644_v5 = vpop.eup %5643 }
 0xa36   :  { %v569_v6 = vmul.f32 %v5644_v5, %v5640_v62 }
 0xa37   :  { %v5646_v7 = vpop.eup %5645 }
 0xa38   :  { %4323 = vrot.lane.b32.xlu0 %v569_v6, %s5994_s18  ;;  %v570_v8 = vmul.f32 %v5646_v7, %v5642_v41 }
 0xa3a   :  { %4325 = vrot.lane.b32.xlu1 %v570_v8, %s5994_s18 }
 0xa6f   :  { %v4959_v9 = vpop.f32.mrb[48].mxu1 }
 0xa70   :  { %4315 = vrot.lane.b32.xlu1 %v4959_v9, %s5995_s15  ;;  %v4282_v10 = vpop.f32.mrb[49].mxu1 }
 0xa71   :  { %v4960_v11 = vpop.f32.mrb[50].mxu1  ;;  %4307 = vrot.lane.b32.xlu0 %v4282_v10, %s5982_s6 }
 0xa72   :  { %v4285_v14 = vpop.f32.mrb[51].mxu1 }
 0xa74   :  { %4317 = vrot.lane.b32.xlu1 %v4960_v11, %s5995_s15 }
 0xa75   :  { %4299 = vrot.lane.b32.xlu0 %v4204_v45, %s5982_s6 }
 0xa78   :  { %4309 = vrot.lane.b32.xlu1 %v4285_v14, %s5982_s6 }
 0xa7c   :  { %4301 = vrot.lane.b32.xlu1 %v4205_v23, %s5982_s6 }
 0xaaa   :  { %v4324_v20 = vpop.permute.xlu0 %4323 }
 0xaac   :  { %v4326_v16 = vpop.permute.xlu1 %4325 }
 0xae2   :  { %v4316_v21 = vpop.permute.xlu1 %4315 }
 0xae3   :  { %v4308_v24 = vpop.permute.xlu0 %4307 }
 0xae4   :  { %v4331_v13 = vsel %vm4183_vm4, %v4206_v61, %v4308_v24 }
 0xae5   :  { %v4334_v30 = vsel %vm4333_vm8, %v4331_v13, %v4316_v21 }
 0xae6   :  { %v4337_v32 = vsel %vm4336_vm9, %v4334_v30, %v4324_v20  ;;  %v4318_v26 = vpop.permute.xlu1 %4317 }
 0xae7   :  { %v4340_v33 = vsel %vm4339_vm10, %v4337_v32, 0.0  ;;  %v4300_v34 = vpop.permute.xlu0 %4299 }
 0xae8   :  { %4343 = vst [vmem:[%s6996_s25 + $0x8] sm:$0xff] %v4340_v33  ;;  %v4329_v17 = vsel %vm4183_vm4, %v6824_v59, %v4300_v34 }
 0xae9   :  { %4342 = vst [vmem:[%s6996_s25] sm:$0xff] %v4329_v17 }
 0xaea   :  { %v4310_v18 = vpop.permute.xlu1 %4309 }
 0xaeb   :  { %v4332_v27 = vsel %vm4183_vm4, %v4207_v4, %v4310_v18 }
 0xaec   :  { %v4335_v35 = vsel %vm4333_vm8, %v4332_v27, %v4318_v26 }
 0xaed   :  { %v4338_v12 = vsel %vm4336_vm9, %v4335_v35, %v4326_v16 }
 0xaee   :  { %v4341_v36 = vsel %vm4339_vm10, %v4338_v12, 0.0  ;;  %v4302_v19 = vpop.permute.xlu1 %4301 }
 0xaef   :  { %4345 = vst [vmem:[%s6996_s25 + $0x18] sm:$0xff] %v4341_v36  ;;  %v4330_v28 = vsel %vm4183_vm4, %v6826_v60, %v4302_v19 }
 0xaf0   :  { %4344 = vst [vmem:[%s6996_s25 + $0x10] sm:$0xff] %v4330_v28 }
 0xaf1   :  { %4350 = vsyncpa [#allocation3], 1 }
 0xaf2   :  { %4351 = vsyncpa [#allocation5], 1 }
 0xaf3   :  { %4352 = vsyncpa [#allocation8], 1 }
 0xaf4   :  { %4353 = vsyncpa [#allocation11], 1 }
 0xaf5   :  { %4354 = vsyncpa [#allocation14], 1 }
 0xaf6   :  { %4355 = vsyncpa [#allocation17], 1 }
 0xaf7   :  { %4356 = vsyncpa [#allocation20], 1 }
 0xaf8   :  { %4357 = vsyncpa [#allocation23], 1 }

</bundles_post_ra>
